<compile_context>
chip_gen: v7x
topology: tpu7x:2x2x1
jax: 0.10.0
libtpu: 0.0.40
codegen_flags: <defaults>
</compile_context>

<pallas_src>
import jax
import jax.numpy as jnp
from jax.experimental import pallas as pl
from jax.experimental.pallas import tpu as pltpu


def _input_gate_kernel(x1_ref, x2_ref,
                       w12_ref, b12_ref,
                       w3_ref, b3_ref,
                       out_ref,
                       x1pad_ref, catpad_ref):
    # Shapes (per grid step):
    #   x1_ref     : (1, C1, H, W)            unpadded X1 (NCHW block)
    #   x2_ref     : (1, C2, H, W)            unpadded X2
    #   w12_ref    : (2*C1, 9*C1)  bf16       conv1+conv2 fused im2col weights
    #   b12_ref    : (2*C1, 1)     f32
    #   w3_ref     : (C2, 9*(C1+C2)) bf16     full conv3 im2col weights
    #   b3_ref     : (C2, 1)       f32
    #   out_ref    : (1, C2, H*W)             lane-dense output block
    #   x1pad_ref  : (C1, H+2, W+2)      f32  VMEM scratch, padded X1
    #   catpad_ref : (C1+C2, H+2, W+2)   f32  VMEM scratch, padded cat(in1, X2)
    C1 = x1_ref.shape[1]
    H = x1_ref.shape[2]
    W = x1_ref.shape[3]
    HW = H * W

    # Zero-pad X1 and X2 into VMEM scratch (SAME padding of the 3x3 convs).
    # Full memset every step: cheap at these sizes and correct on every core
    # regardless of how the parallel grid is sharded across TensorCores.
    x1pad_ref[...] = jnp.zeros_like(x1pad_ref)
    x1pad_ref[:, 1:H + 1, 1:W + 1] = x1_ref[0].astype(x1pad_ref.dtype)

    catpad_ref[...] = jnp.zeros_like(catpad_ref)
    catpad_ref[C1:, 1:H + 1, 1:W + 1] = x2_ref[0].astype(catpad_ref.dtype)

    def im2col(pad_ref):
        # (C, H+2, W+2) padded scratch -> (9*C, H*W) patch matrix, tap-major
        # (ky, kx) then channel — matches the wrapper's weight reordering.
        c = pad_ref.shape[0]
        taps = []
        for ky in range(3):
            for kx in range(3):
                taps.append(pad_ref[:, ky:ky + H, kx:kx + W].reshape(c, HW))
        return jnp.concatenate(taps, axis=0)

    # conv1 & conv2 fused: single (2*C1, 9*C1) @ (9*C1, H*W) bf16 MXU matmul.
    p1 = im2col(x1pad_ref).astype(jnp.bfloat16)
    r12 = jnp.dot(w12_ref[...], p1, preferred_element_type=jnp.float32)
    r12 = r12 + b12_ref[...]                      # f32 bias add
    a = r12[:C1]                                  # conv1(X1)
    g = r12[C1:]                                  # conv2(X1)
    sig = pl.reciprocal(1.0 + jnp.exp(-g), approx=True)   # EUP exp + rcp
    in1 = a * sig                                 # (C1, H*W) f32

    # Place the gated activations into the padded concat scratch (X2 already
    # occupies channels [C1:]); the concat never touches HBM.
    catpad_ref[:C1, 1:H + 1, 1:W + 1] = in1.reshape(C1, H, W).astype(
        catpad_ref.dtype)

    # conv3 over concatenated channels: single (C2, 9*(C1+C2)) @ (..., H*W).
    p3 = im2col(catpad_ref).astype(jnp.bfloat16)
    out = jnp.dot(w3_ref[...], p3, preferred_element_type=jnp.float32)
    out = out + b3_ref[...]
    out_ref[0] = out.astype(out_ref.dtype)        # lane-dense (C2, H*W) store


def input_gate_forward(x1_nchw, x2_nchw, params):
    """Runs InputGateModule.forward. Inputs/outputs are NCHW (PyTorch layout)."""
    w1, b1, w2, b2, w3, b3 = params
    N, C1, H, W = x1_nchw.shape
    C2 = x2_nchw.shape[1]
    HW = H * W

    # OIHW -> (Cout, 9*Cin) im2col weights, tap-major (ky,kx) then ci.
    def to_mat(w):
        co, ci = w.shape[0], w.shape[1]
        return jnp.transpose(w, (0, 2, 3, 1)).reshape(co, 9 * ci)

    w12 = jnp.concatenate([to_mat(w1), to_mat(w2)], axis=0).astype(jnp.bfloat16)
    w3m = to_mat(w3).astype(jnp.bfloat16)
    b12 = jnp.concatenate([b1, b2], axis=0).reshape(2 * C1, 1).astype(jnp.float32)
    b3r = b3.reshape(C2, 1).astype(jnp.float32)

    full = lambda shape: pl.BlockSpec(shape, lambda n: (0,) * len(shape))

    out_flat = pl.pallas_call(
        _input_gate_kernel,
        out_shape=jax.ShapeDtypeStruct((N, C2, HW), x1_nchw.dtype),
        grid_spec=pltpu.PrefetchScalarGridSpec(
            num_scalar_prefetch=0,
            grid=(N,),
            in_specs=[
                pl.BlockSpec((1, C1, H, W), lambda n: (n, 0, 0, 0)),
                pl.BlockSpec((1, C2, H, W), lambda n: (n, 0, 0, 0)),
                full((2 * C1, 9 * C1)), full((2 * C1, 1)),
                full((C2, 9 * (C1 + C2))), full((C2, 1)),
            ],
            out_specs=pl.BlockSpec((1, C2, HW), lambda n: (n, 0, 0)),
            scratch_shapes=[
                pltpu.VMEM((C1, H + 2, W + 2), jnp.float32),
                pltpu.VMEM((C1 + C2, H + 2, W + 2), jnp.float32),
            ],
        ),
        compiler_params=pltpu.CompilerParams(
            dimension_semantics=("parallel",),
            vmem_limit_bytes=32 * 1024 * 1024),
    )(x1_nchw, x2_nchw, w12, b12, w3m, b3r)

    # (N, C2, H*W) -> (N, C2, H, W): pure row-major reshape, no data movement.
    return out_flat.reshape(N, C2, H, W)


# ----------------------------- reference (f32) ------------------------------

def _conv_ref(x, w, b):
    y = jax.lax.conv_general_dilated(
        x, w, window_strides=(1, 1), padding="SAME",
        dimension_numbers=("NCHW", "OIHW", "NCHW"),
        precision=jax.lax.Precision.HIGHEST)
    return y + b.reshape(1, -1, 1, 1)


def _reference_forward(x1, x2, params):
    w1, b1, w2, b2, w3, b3 = params
    in1 = _conv_ref(x1, w1, b1) * jax.nn.sigmoid(_conv_ref(x1, w2, b2))
    cat = jnp.concatenate([in1, x2], axis=1)
    return _conv_ref(cat, w3, b3)


if __name__ == "__main__":
    N, C1, C2, H, W = 2, 4, 4, 16, 16
    key = jax.random.PRNGKey(0)
    k = jax.random.split(key, 8)

    x1 = jax.random.normal(k[0], (N, C1, H, W), jnp.float32)
    x2 = jax.random.normal(k[1], (N, C2, H, W), jnp.float32)

    # Deterministic synthetic parameters (PyTorch OIHW layout, as in nn.Conv2d).
    scale = 0.1
    w1 = scale * jax.random.normal(k[2], (C1, C1, 3, 3), jnp.float32)
    b1 = scale * jax.random.normal(k[3], (C1,), jnp.float32)
    w2 = scale * jax.random.normal(k[4], (C1, C1, 3, 3), jnp.float32)
    b2 = scale * jax.random.normal(k[5], (C1,), jnp.float32)
    w3 = scale * jax.random.normal(k[6], (C2, C1 + C2, 3, 3), jnp.float32)
    b3 = scale * jax.random.normal(k[7], (C2,), jnp.float32)
    params = (w1, b1, w2, b2, w3, b3)

    out = jax.block_until_ready(input_gate_forward(x1, x2, params))
    ref = jax.block_until_ready(_reference_forward(x1, x2, params))

    assert out.shape == (N, C2, H, W)
    # Tolerance accounts for bf16 MXU operands (f32 accumulation) and the
    # EUP approximate reciprocal in the sigmoid.
    assert jnp.allclose(out, ref, atol=2e-2, rtol=2e-2), "mismatch vs reference"

    print("KERNEL_OK")
</pallas_src>

<mosaic_0001>
module attributes {stable_mosaic.version = 11 : i64} {
  func.func @_input_gate_kernel(%arg0: i32, %arg1: memref<1x4x16x16xf32, #tpu.memory_space<vmem>>, %arg2: memref<1x4x16x16xf32, #tpu.memory_space<vmem>>, %arg3: memref<8x36xbf16, #tpu.memory_space<vmem>>, %arg4: memref<8x1xf32, #tpu.memory_space<vmem>>, %arg5: memref<4x72xbf16, #tpu.memory_space<vmem>>, %arg6: memref<4x1xf32, #tpu.memory_space<vmem>>, %arg7: memref<1x4x256xf32, #tpu.memory_space<vmem>>, %arg8: memref<4x18x18xf32, #tpu.memory_space<vmem>>, %arg9: memref<8x18x18xf32, #tpu.memory_space<vmem>>) attributes {dimension_semantics = [#tpu.dimension_semantics<parallel>], iteration_bounds = array<i64: 2>, scalar_prefetch = 0 : i64, scratch_operands = 2 : i64, tpu.core_type = #tpu.core_type<tc>, window_params = [{transform_indices = @transform_0, window_bounds = array<i64: 1, 4, 16, 16>}, {transform_indices = @transform_1, window_bounds = array<i64: 1, 4, 16, 16>}, {pipeline_mode = #tpu.pipeline_mode<synchronous>, transform_indices = @transform_2, window_bounds = array<i64: 8, 36>}, {pipeline_mode = #tpu.pipeline_mode<synchronous>, transform_indices = @transform_3, window_bounds = array<i64: 8, 1>}, {pipeline_mode = #tpu.pipeline_mode<synchronous>, transform_indices = @transform_4, window_bounds = array<i64: 4, 72>}, {pipeline_mode = #tpu.pipeline_mode<synchronous>, transform_indices = @transform_5, window_bounds = array<i64: 4, 1>}, {transform_indices = @transform_6, window_bounds = array<i64: 1, 4, 256>}]} {
    %cst = arith.constant 0.000000e+00 : f32
    %0 = vector.broadcast %cst : f32 to vector<4x18x18xf32>
    %c0 = arith.constant 0 : index
    %c0_0 = arith.constant 0 : index
    %c0_1 = arith.constant 0 : index
    %1 = vector.load %arg8[%c0, %c0_0, %c0_1] : memref<4x18x18xf32, #tpu.memory_space<vmem>>, vector<4x18x18xf32>
    tpu.vector_store %arg8[%c0, %c0_0, %c0_1], %0 {strides = array<i32>} : memref<4x18x18xf32, #tpu.memory_space<vmem>>, vector<4x18x18xf32>,
    %c0_2 = arith.constant 0 : index
    %c0_3 = arith.constant 0 : index
    %c0_4 = arith.constant 0 : index
    %c0_5 = arith.constant 0 : index
    %2 = vector.load %arg1[%c0_2, %c0_3, %c0_4, %c0_5] : memref<1x4x16x16xf32, #tpu.memory_space<vmem>>, vector<1x4x16x16xf32>
    %3 = vector.shape_cast %2 : vector<1x4x16x16xf32> to vector<4x16x16xf32>
    %c0_6 = arith.constant 0 : index
    %c1 = arith.constant 1 : index
    %c1_7 = arith.constant 1 : index
    %4 = vector.load %arg8[%c0_6, %c1, %c1_7] : memref<4x18x18xf32, #tpu.memory_space<vmem>>, vector<4x16x16xf32>
    tpu.vector_store %arg8[%c0_6, %c1, %c1_7], %3 {strides = array<i32>} : memref<4x18x18xf32, #tpu.memory_space<vmem>>, vector<4x16x16xf32>,
    %cst_8 = arith.constant 0.000000e+00 : f32
    %5 = vector.broadcast %cst_8 : f32 to vector<8x18x18xf32>
    %c0_9 = arith.constant 0 : index
    %c0_10 = arith.constant 0 : index
    %c0_11 = arith.constant 0 : index
    %6 = vector.load %arg9[%c0_9, %c0_10, %c0_11] : memref<8x18x18xf32, #tpu.memory_space<vmem>>, vector<8x18x18xf32>
    tpu.vector_store %arg9[%c0_9, %c0_10, %c0_11], %5 {strides = array<i32>} : memref<8x18x18xf32, #tpu.memory_space<vmem>>, vector<8x18x18xf32>,
    %c0_12 = arith.constant 0 : index
    %c0_13 = arith.constant 0 : index
    %c0_14 = arith.constant 0 : index
    %c0_15 = arith.constant 0 : index
    %7 = vector.load %arg2[%c0_12, %c0_13, %c0_14, %c0_15] : memref<1x4x16x16xf32, #tpu.memory_space<vmem>>, vector<1x4x16x16xf32>
    %8 = vector.shape_cast %7 : vector<1x4x16x16xf32> to vector<4x16x16xf32>
    %c4 = arith.constant 4 : index
    %c1_16 = arith.constant 1 : index
    %c1_17 = arith.constant 1 : index
    %9 = vector.load %arg9[%c4, %c1_16, %c1_17] : memref<8x18x18xf32, #tpu.memory_space<vmem>>, vector<4x16x16xf32>
    tpu.vector_store %arg9[%c4, %c1_16, %c1_17], %8 {strides = array<i32>} : memref<8x18x18xf32, #tpu.memory_space<vmem>>, vector<4x16x16xf32>,
    %c0_18 = arith.constant 0 : index
    %c0_19 = arith.constant 0 : index
    %c0_20 = arith.constant 0 : index
    %10 = vector.load %arg8[%c0_18, %c0_19, %c0_20] : memref<4x18x18xf32, #tpu.memory_space<vmem>>, vector<4x16x16xf32>
    %11 = vector.shape_cast %10 : vector<4x16x16xf32> to vector<4x256xf32>
    %c0_21 = arith.constant 0 : index
    %c0_22 = arith.constant 0 : index
    %c1_23 = arith.constant 1 : index
    %12 = vector.load %arg8[%c0_21, %c0_22, %c1_23] : memref<4x18x18xf32, #tpu.memory_space<vmem>>, vector<4x16x16xf32>
    %13 = vector.shape_cast %12 : vector<4x16x16xf32> to vector<4x256xf32>
    %c0_24 = arith.constant 0 : index
    %c0_25 = arith.constant 0 : index
    %c2 = arith.constant 2 : index
    %14 = vector.load %arg8[%c0_24, %c0_25, %c2] : memref<4x18x18xf32, #tpu.memory_space<vmem>>, vector<4x16x16xf32>
    %15 = vector.shape_cast %14 : vector<4x16x16xf32> to vector<4x256xf32>
    %c0_26 = arith.constant 0 : index
    %c1_27 = arith.constant 1 : index
    %c0_28 = arith.constant 0 : index
    %16 = vector.load %arg8[%c0_26, %c1_27, %c0_28] : memref<4x18x18xf32, #tpu.memory_space<vmem>>, vector<4x16x16xf32>
    %17 = vector.shape_cast %16 : vector<4x16x16xf32> to vector<4x256xf32>
    %c0_29 = arith.constant 0 : index
    %c1_30 = arith.constant 1 : index
    %c1_31 = arith.constant 1 : index
    %18 = vector.load %arg8[%c0_29, %c1_30, %c1_31] : memref<4x18x18xf32, #tpu.memory_space<vmem>>, vector<4x16x16xf32>
    %19 = vector.shape_cast %18 : vector<4x16x16xf32> to vector<4x256xf32>
    %c0_32 = arith.constant 0 : index
    %c1_33 = arith.constant 1 : index
    %c2_34 = arith.constant 2 : index
    %20 = vector.load %arg8[%c0_32, %c1_33, %c2_34] : memref<4x18x18xf32, #tpu.memory_space<vmem>>, vector<4x16x16xf32>
    %21 = vector.shape_cast %20 : vector<4x16x16xf32> to vector<4x256xf32>
    %c0_35 = arith.constant 0 : index
    %c2_36 = arith.constant 2 : index
    %c0_37 = arith.constant 0 : index
    %22 = vector.load %arg8[%c0_35, %c2_36, %c0_37] : memref<4x18x18xf32, #tpu.memory_space<vmem>>, vector<4x16x16xf32>
    %23 = vector.shape_cast %22 : vector<4x16x16xf32> to vector<4x256xf32>
    %c0_38 = arith.constant 0 : index
    %c2_39 = arith.constant 2 : index
    %c1_40 = arith.constant 1 : index
    %24 = vector.load %arg8[%c0_38, %c2_39, %c1_40] : memref<4x18x18xf32, #tpu.memory_space<vmem>>, vector<4x16x16xf32>
    %25 = vector.shape_cast %24 : vector<4x16x16xf32> to vector<4x256xf32>
    %c0_41 = arith.constant 0 : index
    %c2_42 = arith.constant 2 : index
    %c2_43 = arith.constant 2 : index
    %26 = vector.load %arg8[%c0_41, %c2_42, %c2_43] : memref<4x18x18xf32, #tpu.memory_space<vmem>>, vector<4x16x16xf32>
    %27 = vector.shape_cast %26 : vector<4x16x16xf32> to vector<4x256xf32>
    %28 = tpu.concatenate %11, %13, %15, %17, %19, %21, %23, %25, %27 in 0 : vector<4x256xf32>, vector<4x256xf32>, vector<4x256xf32>, vector<4x256xf32>, vector<4x256xf32>, vector<4x256xf32>, vector<4x256xf32>, vector<4x256xf32>, vector<4x256xf32> -> vector<36x256xf32>
    %29 = arith.truncf %28 : vector<36x256xf32> to vector<36x256xbf16>
    %c0_44 = arith.constant 0 : index
    %c0_45 = arith.constant 0 : index
    %30 = vector.load %arg3[%c0_44, %c0_45] : memref<8x36xbf16, #tpu.memory_space<vmem>>, vector<8x36xbf16>
    %cst_46 = arith.constant dense<0.000000e+00> : vector<8x256xf32>
    %31 = tpu.matmul %30, %29, %cst_46 {dimension_numbers = #tpu.dot_dimension_numbers<[1], [0], [0], [1], [0, 0, 1, 1], [], []>} : vector<8x36xbf16>, vector<36x256xbf16>, vector<8x256xf32> -> vector<8x256xf32>
    %c0_47 = arith.constant 0 : index
    %c0_48 = arith.constant 0 : index
    %32 = vector.load %arg4[%c0_47, %c0_48] : memref<8x1xf32, #tpu.memory_space<vmem>>, vector<8x1xf32>
    %33 = vector.broadcast %32 : vector<8x1xf32> to vector<8x256xf32>
    %34 = arith.addf %31, %33 : vector<8x256xf32>
    %35 = vector.extract_strided_slice %34 {offsets = [0, 0], sizes = [4, 256], strides = [1, 1]} : vector<8x256xf32> to vector<4x256xf32>
    %36 = vector.extract_strided_slice %34 {offsets = [4, 0], sizes = [4, 256], strides = [1, 1]} : vector<8x256xf32> to vector<4x256xf32>
    %cst_49 = arith.constant 0.000000e+00 : f32
    %37 = vector.broadcast %cst_49 : f32 to vector<4x256xf32>
    %38 = arith.subf %37, %36 : vector<4x256xf32>
    %39 = math.exp %38 : vector<4x256xf32>
    %cst_50 = arith.constant 1.000000e+00 : f32
    %40 = vector.broadcast %cst_50 : f32 to vector<4x256xf32>
    %41 = arith.addf %40, %39 : vector<4x256xf32>
    %42 = tpu.reciprocal %41 {approx = true} : vector<4x256xf32> -> vector<4x256xf32>
    %43 = arith.mulf %35, %42 : vector<4x256xf32>
    %44 = vector.shape_cast %43 : vector<4x256xf32> to vector<4x16x16xf32>
    %c0_51 = arith.constant 0 : index
    %c1_52 = arith.constant 1 : index
    %c1_53 = arith.constant 1 : index
    %45 = vector.load %arg9[%c0_51, %c1_52, %c1_53] : memref<8x18x18xf32, #tpu.memory_space<vmem>>, vector<4x16x16xf32>
    tpu.vector_store %arg9[%c0_51, %c1_52, %c1_53], %44 {strides = array<i32>} : memref<8x18x18xf32, #tpu.memory_space<vmem>>, vector<4x16x16xf32>,
    %c0_54 = arith.constant 0 : index
    %c0_55 = arith.constant 0 : index
    %c0_56 = arith.constant 0 : index
    %46 = vector.load %arg9[%c0_54, %c0_55, %c0_56] : memref<8x18x18xf32, #tpu.memory_space<vmem>>, vector<8x16x16xf32>
    %47 = vector.shape_cast %46 : vector<8x16x16xf32> to vector<8x256xf32>
    %c0_57 = arith.constant 0 : index
    %c0_58 = arith.constant 0 : index
    %c1_59 = arith.constant 1 : index
    %48 = vector.load %arg9[%c0_57, %c0_58, %c1_59] : memref<8x18x18xf32, #tpu.memory_space<vmem>>, vector<8x16x16xf32>
    %49 = vector.shape_cast %48 : vector<8x16x16xf32> to vector<8x256xf32>
    %c0_60 = arith.constant 0 : index
    %c0_61 = arith.constant 0 : index
    %c2_62 = arith.constant 2 : index
    %50 = vector.load %arg9[%c0_60, %c0_61, %c2_62] : memref<8x18x18xf32, #tpu.memory_space<vmem>>, vector<8x16x16xf32>
    %51 = vector.shape_cast %50 : vector<8x16x16xf32> to vector<8x256xf32>
    %c0_63 = arith.constant 0 : index
    %c1_64 = arith.constant 1 : index
    %c0_65 = arith.constant 0 : index
    %52 = vector.load %arg9[%c0_63, %c1_64, %c0_65] : memref<8x18x18xf32, #tpu.memory_space<vmem>>, vector<8x16x16xf32>
    %53 = vector.shape_cast %52 : vector<8x16x16xf32> to vector<8x256xf32>
    %c0_66 = arith.constant 0 : index
    %c1_67 = arith.constant 1 : index
    %c1_68 = arith.constant 1 : index
    %54 = vector.load %arg9[%c0_66, %c1_67, %c1_68] : memref<8x18x18xf32, #tpu.memory_space<vmem>>, vector<8x16x16xf32>
    %55 = vector.shape_cast %54 : vector<8x16x16xf32> to vector<8x256xf32>
    %c0_69 = arith.constant 0 : index
    %c1_70 = arith.constant 1 : index
    %c2_71 = arith.constant 2 : index
    %56 = vector.load %arg9[%c0_69, %c1_70, %c2_71] : memref<8x18x18xf32, #tpu.memory_space<vmem>>, vector<8x16x16xf32>
    %57 = vector.shape_cast %56 : vector<8x16x16xf32> to vector<8x256xf32>
    %c0_72 = arith.constant 0 : index
    %c2_73 = arith.constant 2 : index
    %c0_74 = arith.constant 0 : index
    %58 = vector.load %arg9[%c0_72, %c2_73, %c0_74] : memref<8x18x18xf32, #tpu.memory_space<vmem>>, vector<8x16x16xf32>
    %59 = vector.shape_cast %58 : vector<8x16x16xf32> to vector<8x256xf32>
    %c0_75 = arith.constant 0 : index
    %c2_76 = arith.constant 2 : index
    %c1_77 = arith.constant 1 : index
    %60 = vector.load %arg9[%c0_75, %c2_76, %c1_77] : memref<8x18x18xf32, #tpu.memory_space<vmem>>, vector<8x16x16xf32>
    %61 = vector.shape_cast %60 : vector<8x16x16xf32> to vector<8x256xf32>
    %c0_78 = arith.constant 0 : index
    %c2_79 = arith.constant 2 : index
    %c2_80 = arith.constant 2 : index
    %62 = vector.load %arg9[%c0_78, %c2_79, %c2_80] : memref<8x18x18xf32, #tpu.memory_space<vmem>>, vector<8x16x16xf32>
    %63 = vector.shape_cast %62 : vector<8x16x16xf32> to vector<8x256xf32>
    %64 = tpu.concatenate %47, %49, %51, %53, %55, %57, %59, %61, %63 in 0 : vector<8x256xf32>, vector<8x256xf32>, vector<8x256xf32>, vector<8x256xf32>, vector<8x256xf32>, vector<8x256xf32>, vector<8x256xf32>, vector<8x256xf32>, vector<8x256xf32> -> vector<72x256xf32>
    %65 = arith.truncf %64 : vector<72x256xf32> to vector<72x256xbf16>
    %c0_81 = arith.constant 0 : index
    %c0_82 = arith.constant 0 : index
    %66 = vector.load %arg5[%c0_81, %c0_82] : memref<4x72xbf16, #tpu.memory_space<vmem>>, vector<4x72xbf16>
    %cst_83 = arith.constant dense<0.000000e+00> : vector<4x256xf32>
    %67 = tpu.matmul %66, %65, %cst_83 {dimension_numbers = #tpu.dot_dimension_numbers<[1], [0], [0], [1], [0, 0, 1, 1], [], []>} : vector<4x72xbf16>, vector<72x256xbf16>, vector<4x256xf32> -> vector<4x256xf32>
    %c0_84 = arith.constant 0 : index
    %c0_85 = arith.constant 0 : index
    %68 = vector.load %arg6[%c0_84, %c0_85] : memref<4x1xf32, #tpu.memory_space<vmem>>, vector<4x1xf32>
    %69 = vector.broadcast %68 : vector<4x1xf32> to vector<4x256xf32>
    %70 = arith.addf %67, %69 : vector<4x256xf32>
    %c0_86 = arith.constant 0 : index
    %c0_87 = arith.constant 0 : index
    %c0_88 = arith.constant 0 : index
    %71 = vector.load %arg7[%c0_86, %c0_87, %c0_88] : memref<1x4x256xf32, #tpu.memory_space<vmem>>, vector<1x4x256xf32>
    %72 = vector.shape_cast %71 : vector<1x4x256xf32> to vector<4x256xf32>
    %73 = vector.shape_cast %70 : vector<4x256xf32> to vector<1x4x256xf32>
    tpu.vector_store %arg7[%c0_86, %c0_87, %c0_88], %73 {strides = array<i32>} : memref<1x4x256xf32, #tpu.memory_space<vmem>>, vector<1x4x256xf32>,
    return
  }
  func.func @transform_0(%arg0: i32) -> (i32, i32, i32, i32) {
    %c0_i32 = arith.constant 0 : i32
    %c0_i32_0 = arith.constant 0 : i32
    %c0_i32_1 = arith.constant 0 : i32
    %c0_i32_2 = arith.constant 0 : i32
    return %arg0, %c0_i32, %c0_i32_0, %c0_i32_1 : i32, i32, i32, i32
  }
  func.func @transform_1(%arg0: i32) -> (i32, i32, i32, i32) {
    %c0_i32 = arith.constant 0 : i32
    %c0_i32_0 = arith.constant 0 : i32
    %c0_i32_1 = arith.constant 0 : i32
    %c0_i32_2 = arith.constant 0 : i32
    return %arg0, %c0_i32, %c0_i32_0, %c0_i32_1 : i32, i32, i32, i32
  }
  func.func @transform_2(%arg0: i32) -> (i32, i32) {
    %c0_i32 = arith.constant 0 : i32
    %c0_i32_0 = arith.constant 0 : i32
    %c0_i32_1 = arith.constant 0 : i32
    return %c0_i32, %c0_i32_0 : i32, i32
  }
  func.func @transform_3(%arg0: i32) -> (i32, i32) {
    %c0_i32 = arith.constant 0 : i32
    %c0_i32_0 = arith.constant 0 : i32
    %c0_i32_1 = arith.constant 0 : i32
    return %c0_i32, %c0_i32_0 : i32, i32
  }
  func.func @transform_4(%arg0: i32) -> (i32, i32) {
    %c0_i32 = arith.constant 0 : i32
    %c0_i32_0 = arith.constant 0 : i32
    %c0_i32_1 = arith.constant 0 : i32
    return %c0_i32, %c0_i32_0 : i32, i32
  }
  func.func @transform_5(%arg0: i32) -> (i32, i32) {
    %c0_i32 = arith.constant 0 : i32
    %c0_i32_0 = arith.constant 0 : i32
    %c0_i32_1 = arith.constant 0 : i32
    return %c0_i32, %c0_i32_0 : i32, i32
  }
  func.func @transform_6(%arg0: i32) -> (i32, i32, i32) {
    %c0_i32 = arith.constant 0 : i32
    %c0_i32_0 = arith.constant 0 : i32
    %c0_i32_1 = arith.constant 0 : i32
    return %arg0, %c0_i32, %c0_i32_0 : i32, i32, i32
  }
}

</mosaic_0001>

<bundles_post_ra>
// kernel: tpu_custom_call.1
= control target key start
LH: loop header
LB: loop body
LE: loop exit
PB: predicated region body
PF: predicated region fallthrough
CT: control target
= control target key end

     0   :  { %s11660_s0 = inlined_call_operand.hbm [shape: f32[2,4,16,16], index: 0, kind: input, shape index: {}]   ;;  %s11661_s1 = inlined_call_operand.hbm [shape: f32[2,4,16,16], index: 1, kind: input, shape index: {}]   ;;  %s11662_s2 = inlined_call_operand.vmem [shape: bf16[8,36], index: 2, kind: input, shape index: {}]   ;;  %s11663_s3 = inlined_call_operand.vmem [shape: f32[8,1], index: 3, kind: input, shape index: {}]   ;;  %s11664_s4 = inlined_call_operand.vmem [shape: bf16[4,72], index: 4, kind: input, shape index: {}]   ;;  %s11665_s5 = inlined_call_operand.vmem [shape: f32[4,1], index: 5, kind: input, shape index: {}]   ;;  %s11666_s6 = inlined_call_operand.hbm [shape: f32[2,4,256], index: 6, kind: output, shape index: {}]  }
   0x1   :  { %11902 = sst [smem:[#allocation108_spill]] %s11660_s0 }
   0x2   :  { %11 = vsyncpa [#allocation5], 0 }
   0x3   :  { %13 = vsyncpa [#allocation5 + $0x1], 0 }
   0x4   :  { %14 = vsyncpa [#allocation8], 0 }
   0x5   :  { %16 = vsyncpa [#allocation8 + $0x1], 0 }
   0x6   :  { %17 = vsyncpa [#allocation6], 0 }
   0x7   :  { %19 = vsyncpa [#allocation6 + $0x1], 0  ;;  %s7461_s21 = smov 0   ;;  %s7463_s22 = smov 0  }
   0x8   :  { %s7465_s23 = smov 0   ;;  %s7467_s24 = smov 0  }
   0x9 LB: > { %s7482_s25 = sadd.s32 4294967295, %s7405_s24   ;;  %s6479_s26 = sadd.s32 4294967294, %s7405_s24   ;;  %s7405_s24 = sphi %s7467_s24, %s12433_s24   ;;  %s7401_s23 = sphi %s7465_s23, %s12432_s23   ;;  %s7397_s22 = sphi %s7463_s22, %s12431_s22   ;;  %s7393_s21 = sphi %s7461_s21, %s12430_s21  }
   0xa   : > { %s7486_s27 = sadd.s32 1, %s7405_s24   ;;  %s32_s28 = sadd.s32 1, %s7401_s23 }
   0xb   : > { %s29_s29 = ssub.s32 %s7405_s24, %s7486_s27  ;;  %p39_p0 = scmp.ne.s32.totalorder %s7401_s23, %s7397_s22 }
   0xc   : > { %p30_p1 = scmp.eq.s32.totalorder %s29_s29, 0  ;;  %p40_p2 = scmp.eq.s32.totalorder %s7405_s24, 0 }
   0xd   : > { %p45_p3 = scmp.ne.s32.totalorder %s7397_s22, %s7393_s21  ;;  %p46_p4 = scmp.eq.s32.totalorder %s7482_s25, 0 }
   0xe   : > { %s7498_s30 = scalar_select %p30_p1, %s7401_s23, %s32_s28  }
   0xf   : > { %p7500_p5 = por %p40_p2, %p39_p0  ;;  %p7504_p6 = por %p46_p4, %p45_p3 }
  0x10   : > { %p179_p7 = scmp.eq.s32.totalorder %s7482_s25, 1  ;;  %p185_p8 = scmp.eq.s32.totalorder %s6479_s26, 1 }
  0x11   : > { %s11904_s8 = scalar_select %p7504_p6, 1, 0 }
  0x12   : > { %p6521_p10 = scmp.lt.s32.totalorder %s7405_s24, 2  ;;  %p7511_p11 = por %p179_p7, %p39_p0 }
  0x13   : > { %p7515_p12 = por %p185_p8, %p45_p3  ;;  %s7520_s11 = sand.u32 1, %s7401_s23  }
  0x14   : > { %s11905_s9 = scalar_select %p7511_p11, 1, 0 }
  0x15   : > { %s11906_s10 = scalar_select %p7515_p12, 1, 0 }
  0x16   : > { %s6501_s12 = sshll.u32 %s7405_s24, 10  ;;  %s6482_s13 = sshll.u32 %s7520_s11, 6 }
  0x17   : > { %s11907_s0 = sld [smem:[#allocation108_spill]]  ;;  %s221_s17 = scalar_lea.vmem [#allocation4], %s6482_s13 }
  0x18   : > { %s228_s18 = sshll.u32 %s221_s17, 4  ;;  %p7535_p13 = pnand %p6521_p10, %p7500_p5  ;;  %s7539_s18 = int_to_ptr.vmem [resolvable:$true] %s228_s18 }
  0x19   : > { %s218_s20 = scalar_lea.sflag [#allocation5], %s7520_s11 }
  0x1a   : > { %p7277_p1 = pneg %p7535_p13 }
  0x1d   : > { %s7529_s16 = scalar_lea.hbm %s11907_s0, %s6501_s12  ;;  %s7280_s7 = scalar_lea.hbm %s11907_s0, 2048 }
  0x1e   : > { %s7275_s26 = scalar_lea.hbm %s7529_s16, 1024  ;;  %p7281_p4 = scmp.lt.u32.totalorder %s7529_s16, %s11907_s0 }
  0x1f   : > { %p7276_p0 = scmp.ne.s32.totalorder %s7529_s16, %s7275_s26  ;;  %p7282_p5 = scmp.lt.u32.totalorder %s7280_s7, %s7275_s26 }
  0x20   : > { %p7284_p8 = scmp.lt.u32.totalorder %s7275_s26, %s7529_s16 }
  0x21   : > { %p7278_p2 = pnand %p7277_p1, %p7276_p0  ;;  %p7283_p7 = por %p7282_p5, %p7281_p4 }
  0x23   : > { %p7279_p3 = pneg %p7278_p2  ;;  %p7285_p10 = por %p7284_p8, %p7283_p7 }
  0x25   : > { %p7286_p9 = pnand %p7285_p10, %p7279_p3 }
  0x27   : > { %7289 = shalt.err (!%p7286_p9)
}
  0x28   : > { %s7290_s17 = scalar_lea.vmem %s7539_s18, 1024  ;;  %s7407_s28 = smov [#allocation4]  }
  0x29   : > { %p7291_p0 = scmp.ne.s32.totalorder %s7539_s18, %s7290_s17  ;;  %s7295_s29 = sshll.u32 %s7407_s28, 4  ;;  %s7296_s29 = int_to_ptr.vmem [resolvable:$false] %s7295_s29 }
  0x2a   : > { %s7297_s14 = scalar_lea.vmem %s7296_s29, 2048  ;;  %p7298_p11 = scmp.lt.s32.totalorder %s7539_s18, %s7296_s29 }
  0x2b   : > { %p7293_p2 = pnand %p7291_p0, %p7277_p1  ;;  %p7299_p4 = scmp.lt.s32.totalorder %s7297_s14, %s7290_s17 }
  0x2d   : > { %p7294_p12 = pneg %p7293_p2  ;;  %p7300_p5 = por %p7299_p4, %p7298_p11 }
  0x2f   : > { %p7301_p7 = pnand %p7300_p5, %p7294_p12 }
  0x31   : > { %7304 = shalt.err (!%p7301_p7)
}
  0x32   : > { %s11668_s26 = smov 128   ;;  %s7409_s7 = smov 8  }
  0x33   : > { %6513 = dma.hbm_to_vmem [thread:$0]  (!%p7535_p13), %s7529_s16, 1024, %s7539_s18, %s218_s20, %s11668_s26, %s11668_s26, %s7409_s7  }
  0x34   : > { %p6488_p9 = scmp.ge.s32.totalorder %s7405_s24, 1  ;;  %p257_p11 = scmp.lt.s32.totalorder %s7405_s24, 3 }
  0x35   : > { %s7583_s29 = scalar_lea.hbm %s11661_s1, %s6501_s12  ;;  %s242_s14 = scalar_lea.vmem [#allocation7], %s6482_s13 }
  0x36   : > { %p7574_p12 = pnand %p6488_p9, %p257_p11  ;;  %s249_s0 = sshll.u32 %s242_s14, 4  ;;  %s7587_s0 = int_to_ptr.vmem [resolvable:$true] %s249_s0 }
  0x37   : > { %s239_s16 = scalar_lea.sflag [#allocation8], %s7520_s11  ;;  %s7305_s18 = scalar_lea.hbm %s7583_s29, 1024 }
  0x38   : > { %p7306_p3 = scmp.ne.s32.totalorder %s7583_s29, %s7305_s18  ;;  %s7310_s12 = scalar_lea.hbm %s11661_s1, 2048 }
  0x39   : > { %p7311_p0 = scmp.lt.u32.totalorder %s7583_s29, %s11661_s1  ;;  %p7312_p2 = scmp.lt.u32.totalorder %s7310_s12, %s7305_s18 }
  0x3a   : > { %p7308_p8 = pnand %p7306_p3, %p7277_p1  ;;  %p7314_p5 = scmp.lt.u32.totalorder %s7305_s18, %s7583_s29 }
  0x3b   : > { %p7313_p4 = por %p7312_p2, %p7311_p0 }
  0x3c   : > { %p7309_p10 = pneg %p7308_p8 }
  0x3d   : > { %p7315_p7 = por %p7314_p5, %p7313_p4 }
  0x3f   : > { %p7316_p9 = pnand %p7315_p7, %p7309_p10 }
  0x41   : > { %7319 = shalt.err (!%p7316_p9)
}
  0x42   : > { %s7320_s13 = scalar_lea.vmem %s7587_s0, 1024  ;;  %s7410_s14 = smov [#allocation7]  }
  0x43   : > { %p7321_p11 = scmp.ne.s32.totalorder %s7587_s0, %s7320_s13  ;;  %s7325_s20 = sshll.u32 %s7410_s14, 4  ;;  %s7326_s20 = int_to_ptr.vmem [resolvable:$false] %s7325_s20 }
  0x44   : > { %s7327_s26 = scalar_lea.vmem %s7326_s20, 2048  ;;  %p7328_p6 = scmp.lt.s32.totalorder %s7587_s0, %s7326_s20 }
  0x45   : > { %p7323_p3 = pnand %p7321_p11, %p7277_p1  ;;  %p7329_p0 = scmp.lt.s32.totalorder %s7327_s26, %s7320_s13 }
  0x47   : > { %p7324_p8 = pneg %p7323_p3  ;;  %p7330_p2 = por %p7329_p0, %p7328_p6 }
  0x49   : > { %p7331_p4 = pnand %p7330_p2, %p7324_p8 }
  0x4b   : > { %7334 = shalt.err (!%p7331_p4)
}
  0x4c   : > { %s11910_s18 = smov 128   ;;  %261 = sbr.rel (%p7574_p12) target bundleno = 1782 (0x6f6), region = 44 }
  0x4d   : > { %6516 = dma.hbm_to_vmem [thread:$0]  (!%p7535_p13), %s7583_s29, 1024, %s7587_s0, %s239_s16, %s11910_s18, %s11910_s18, %s7409_s7  }
  0x53   : > { %s7621_s17 = sand.u32 1, %s7397_s22   ;;  %p11911_p6 = scmp.ne.s32.totalorder %s11904_s8, 0 }
  0x54   : > { %s6489_s12 = sshll.u32 %s7621_s17, 6  ;;  %s264_s28 = scalar_lea.sflag [#allocation5], %s7621_s17 }
  0x55   : > { %s7625_s19 = scalar_lea.vmem [#allocation4], %s6489_s12 }
  0x56   : > { %7380 = dma.done.wait (%p11911_p6), %s264_s28, 1024  }
  0x57   : > { %7382 = vsyncadd (%p11911_p6), %s264_s28, 4294966272  ;;  %s273_s0 = scalar_lea.sflag [#allocation8], %s7621_s17  ;;  %s7632_s11 = scalar_lea.vmem [#allocation7], %s6489_s12 }
  0x58   : > { %7384 = dma.done.wait (%p11911_p6), %s273_s0, 1024  }
  0x59   : > { %7386 = vsyncadd (%p11911_p6), %s273_s0, 4294966272  ;;  %vm311_vm0 = vcmask 146432   ;;  %vm314_vm1 = vcmask 140288   ;;  %v11670_v0 = vmov 0.0   ;;  %v327_v1 = vld [vmem:[%s7625_s19 + $0x10] sm:$0xff]  ;;  %v325_v2 = vld [vmem:[%s7625_s19] sm:$0xff]  ;;  %v460_v21 = vlaneseq }
  0x5a   : > { %316 = vst.msk [vmem:[#allocation2 + $0x18] sm:$0xff] %vm311_vm0, %v11670_v0  ;;  %317 = vst.msk [vmem:[#allocation2 + $0x20] sm:$0xff] %vm311_vm0, %v11670_v0  ;;  %s7412_s8 = smov 1   ;;  %v328_v3 = vld [vmem:[%s7625_s19 + $0x18] sm:$0xff]  ;;  %v326_v4 = vld [vmem:[%s7625_s19 + $0x8] sm:$0xff]  ;;  %vm365_vm2 = vcmask 138248  }
  0x5b   : > { %312 = vst.msk [vmem:[#allocation2] sm:$0xff] %vm311_vm0, %v11670_v0  ;;  %313 = vst.msk [vmem:[#allocation2 + $0x8] sm:$0xff] %vm311_vm0, %v11670_v0  ;;  %345 = vrot.lane.b32.xlu1 %v327_v1, %s7412_s8  ;;  %341 = vrot.lane.b32.xlu0 %v325_v2, %s7412_s8  ;;  %v330_v5 = vld [vmem:[%s7625_s19 + $0x28] sm:$0xff]  ;;  %v329_v6 = vld [vmem:[%s7625_s19 + $0x20] sm:$0xff]  ;;  %v7413_v19 = vmov 1983009808  }
  0x5c   : > { %319 = vst.msk [vmem:[#allocation2 + $0x30] sm:$0xff] %vm311_vm0, %v11670_v0  ;;  %320 = vst.msk [vmem:[#allocation2 + $0x38] sm:$0xff] %vm311_vm0, %v11670_v0  ;;  %v332_v7 = vld [vmem:[%s7625_s19 + $0x38] sm:$0xff]  ;;  %v331_v8 = vld [vmem:[%s7625_s19 + $0x30] sm:$0xff]  ;;  %v458_v20 = vunpack.c.l.s4 %v7413_v19  ;;  %s7414_s7 = smov 127   ;;  %v7746_v25 = vshrl.u32 %v460_v21, 7 }
  0x5d   : > { %322 = vst.msk [vmem:[#allocation2 + $0x48] sm:$0xff] %vm311_vm0, %v11670_v0  ;;  %323 = vst.msk [vmem:[#allocation2 + $0x50] sm:$0xff] %vm311_vm0, %v11670_v0  ;;  %s7415_s15 = smov 126   ;;  %s7417_s29 = smov 32   ;;  %vm647_vm3 = vcmask 130048   ;;  %vm649_vm4 = vcmask 261120  }
  0x5e   : > { %374 = vst.msk [vmem:[#allocation3] sm:$0xff] %vm311_vm0, %v11670_v0  ;;  %375 = vst.msk [vmem:[#allocation3 + $0x8] sm:$0xff] %vm311_vm0, %v11670_v0  ;;  %v459_v24 = vunpack.c.0.s8 %v458_v20  ;;  %s7418_s16 = smov 64   ;;  %s7419_s13 = smov 96   ;;  %vm651_vm5 = vcmask 392192   ;;  %vm653_vm6 = vcmask 523264  }
  0x5f   : > { %377 = vst.msk [vmem:[#allocation3 + $0x18] sm:$0xff] %vm311_vm0, %v11670_v0  ;;  %378 = vst.msk [vmem:[#allocation3 + $0x20] sm:$0xff] %vm311_vm0, %v11670_v0  ;;  %347 = vrot.lane.b32.xlu1 %v328_v3, %s7412_s8  ;;  %343 = vrot.lane.b32.xlu0 %v326_v4, %s7412_s8  ;;  %s7421_s14 = smov 16   ;;  %s7422_s20 = smov 48   ;;  %vm655_vm7 = vcmask 654336   ;;  %vm657_vm8 = vcmask 785408  }
  0x60   : > { %380 = vst.msk [vmem:[#allocation3 + $0x30] sm:$0xff] %vm311_vm0, %v11670_v0  ;;  %381 = vst.msk [vmem:[#allocation3 + $0x38] sm:$0xff] %vm311_vm0, %v11670_v0  ;;  %v7769_v36 = vsub.s32 %v459_v24, %v7746_v25  ;;  %s7423_s26 = smov 80   ;;  %s7424_s18 = smov 112   ;;  %vm659_vm9 = vcmask 916480   ;;  %vm2524_vm10 = vcmask 1043456  }
  0x61   : > { %383 = vst.msk [vmem:[#allocation3 + $0x48] sm:$0xff] %vm311_vm0, %v11670_v0  ;;  %384 = vst.msk [vmem:[#allocation3 + $0x50] sm:$0xff] %vm311_vm0, %v11670_v0  ;;  %vm2550_vm11 = vcmask 1041408   ;;  %vm2546_vm12 = vcmask 293888   ;;  %vm6315_vm13 = vcmask 588800   ;;  %s6372_s12 = scalar_lea.sflag [#allocation6], %s7621_s17 }
  0x62   : > { %386 = vst.msk [vmem:[#allocation3 + $0x60] sm:$0xff] %vm311_vm0, %v11670_v0  ;;  %387 = vst.msk [vmem:[#allocation3 + $0x68] sm:$0xff] %vm311_vm0, %v11670_v0  ;;  %p12427_p1 = scmp.ne.s32.totalorder %s11905_s9, 0 }
  0x63   : > { %389 = vst.msk [vmem:[#allocation3 + $0x78] sm:$0xff] %vm311_vm0, %v11670_v0  ;;  %390 = vst.msk [vmem:[#allocation3 + $0x80] sm:$0xff] %vm311_vm0, %v11670_v0  ;;  %351 = vrot.lane.b32.xlu1 %v330_v5, %s7412_s8  ;;  %349 = vrot.lane.b32.xlu0 %v329_v6, %s7412_s8 }
  0x64   : > { %392 = vst.msk [vmem:[#allocation3 + $0x90] sm:$0xff] %vm311_vm0, %v11670_v0  ;;  %393 = vst.msk [vmem:[#allocation3 + $0x98] sm:$0xff] %vm311_vm0, %v11670_v0 }
  0x65   : > { %395 = vst.msk [vmem:[#allocation3 + $0xa8] sm:$0xff] %vm311_vm0, %v11670_v0  ;;  %396 = vst.msk [vmem:[#allocation3 + $0xb0] sm:$0xff] %vm311_vm0, %v11670_v0 }
  0x66   : > { %318 = vst.msk [vmem:[#allocation2 + $0x28] sm:$0x3] %vm314_vm1, %v11670_v0  ;;  %315 = vst.msk [vmem:[#allocation2 + $0x10] sm:$0x3] %vm314_vm1, %v11670_v0 }
  0x67   : > { %321 = vst.msk [vmem:[#allocation2 + $0x40] sm:$0x3] %vm314_vm1, %v11670_v0  ;;  %324 = vst.msk [vmem:[#allocation2 + $0x58] sm:$0x3] %vm314_vm1, %v11670_v0  ;;  %355 = vrot.lane.b32.xlu1 %v332_v7, %s7412_s8  ;;  %353 = vrot.lane.b32.xlu0 %v331_v8, %s7412_s8 }
  0x68   : > { %376 = vst.msk [vmem:[#allocation3 + $0x10] sm:$0x3] %vm314_vm1, %v11670_v0  ;;  %379 = vst.msk [vmem:[#allocation3 + $0x28] sm:$0x3] %vm314_vm1, %v11670_v0 }
  0x69   : > { %382 = vst.msk [vmem:[#allocation3 + $0x40] sm:$0x3] %vm314_vm1, %v11670_v0  ;;  %385 = vst.msk [vmem:[#allocation3 + $0x58] sm:$0x3] %vm314_vm1, %v11670_v0 }
  0x6a   : > { %388 = vst.msk [vmem:[#allocation3 + $0x70] sm:$0x3] %vm314_vm1, %v11670_v0  ;;  %391 = vst.msk [vmem:[#allocation3 + $0x88] sm:$0x3] %vm314_vm1, %v11670_v0 }
  0x6b   : > { %394 = vst.msk [vmem:[#allocation3 + $0xa0] sm:$0x3] %vm314_vm1, %v11670_v0  ;;  %397 = vst.msk [vmem:[#allocation3 + $0xb8] sm:$0x3] %vm314_vm1, %v11670_v0 }
  0x6c   : > { %11912 = vst [vmem:[#allocation13_spill] sm:$0xff] %v7769_v36 }
  0xcd   : > { %v346_v9 = vpop.permute.xlu1 %345  ;;  %v342_v10 = vpop.permute.xlu0 %341 }
  0xce   : > { %368 = vst.msk [vmem:[#allocation2 + $0x19] sm:$0xff] %vm365_vm2, %v346_v9  ;;  %366 = vst.msk [vmem:[#allocation2 + $0x1] sm:$0xff] %vm365_vm2, %v342_v10 }
  0xd1   : > { %v348_v11 = vpop.permute.xlu1 %347  ;;  %v344_v12 = vpop.permute.xlu0 %343 }
  0xd2   : > { %369 = vst.msk [vmem:[#allocation2 + $0x21] sm:$0xff] %vm365_vm2, %v348_v11  ;;  %367 = vst.msk [vmem:[#allocation2 + $0x9] sm:$0xff] %vm365_vm2, %v344_v12 }
  0xd5   : > { %v352_v13 = vpop.permute.xlu1 %351  ;;  %v350_v14 = vpop.permute.xlu0 %349  ;;  %v7742_v22 = vld [vmem:[#allocation2] sm:$0xff]  ;;  %v449_v35 = vld [vmem:[#allocation2 + $0x18] sm:$0xff] }
  0xd6   : > { %371 = vst.msk [vmem:[#allocation2 + $0x39] sm:$0xff] %vm365_vm2, %v352_v13  ;;  %370 = vst.msk [vmem:[#allocation2 + $0x31] sm:$0xff] %vm365_vm2, %v350_v14  ;;  %v7794_v51 = vld [vmem:[#allocation2 + $0x1] sm:$0xff]  ;;  %v7802_v53 = vld [vmem:[#allocation2 + $0x19] sm:$0xff] }
  0xd9   : > { %v356_v15 = vpop.permute.xlu1 %355  ;;  %v354_v16 = vpop.permute.xlu0 %353  ;;  %v7732_v17 = vld [vmem:[#allocation2 + $0x20] sm:$0xff]  ;;  %v7734_v18 = vld [vmem:[#allocation2 + $0x8] sm:$0xff] }
  0xda   : > { %373 = vst.msk [vmem:[#allocation2 + $0x51] sm:$0xff] %vm365_vm2, %v356_v15  ;;  %372 = vst.msk [vmem:[#allocation2 + $0x49] sm:$0xff] %vm365_vm2, %v354_v16  ;;  %682 = vrot.lane.b32.xlu1 %v7732_v17, %s7414_s7  ;;  %678 = vrot.lane.b32.xlu0 %v7734_v18, %s7414_s7  ;;  %v7762_v32 = vld [vmem:[#allocation2 + $0x9] sm:$0xff]  ;;  %v7778_v43 = vld [vmem:[#allocation2 + $0x21] sm:$0xff] }
  0xdd   : > { %v7744_v23 = vld [vmem:[#allocation2 + $0x38] sm:$0xff]  ;;  %v7748_v26 = vld [vmem:[#allocation2 + $0x30] sm:$0xff] }
  0xde   : > { %v7750_v27 = vld [vmem:[#allocation2 + $0x39] sm:$0xff]  ;;  %686 = vrot.lane.b32.xlu0 %v7744_v23, %s7414_s7  ;;  %v523_v28 = vcombine.low %v7734_v18, %v7744_v23  ;;  %v524_v29 = vcombine.high %v7734_v18, %v7744_v23  ;;  %v455_v30 = vcombine.low %v7742_v22, %v7748_v26  ;;  %v456_v31 = vcombine.high %v7742_v22, %v7748_v26  ;;  %v7784_v47 = vld [vmem:[#allocation2 + $0x31] sm:$0xff] }
  0xdf   : > { %v1212_v33 = vcombine.low %v7762_v32, %v7750_v27  ;;  %v1213_v34 = vcombine.high %v7762_v32, %v7750_v27  ;;  %v1144_v54 = vcombine.low %v7794_v51, %v7784_v47  ;;  %v1145_v55 = vcombine.high %v7794_v51, %v7784_v47 }
  0xe0   : > { %v7789_v49 = vrot.slane %v523_v28, %v7769_v36  ;;  %v7819_v60 = vrot.slane %v455_v30, %v7769_v36  ;;  %v7822_v61 = vrot.slane %v456_v31, %v7769_v36  ;;  %v7866_v14 = vrot.slane %v524_v29, %v7769_v36  ;;  %v7911_v28 = vld [vmem:[#allocation2 + $0x3a] sm:$0xff]  ;;  %v7927_v30 = vld [vmem:[#allocation2 + $0x2] sm:$0xff] }
  0xe1   : > { %v454_v37 = vld [vmem:[#allocation2 + $0x50] sm:$0xff]  ;;  %v453_v38 = vld [vmem:[#allocation2 + $0x48] sm:$0xff]  ;;  %v7828_v63 = vrot.slane %v1212_v33, %v7769_v36  ;;  %v7831_v1 = vrot.slane %v1213_v34, %v7769_v36  ;;  %v7834_v2 = vrot.slane %v1144_v54, %v7769_v36  ;;  %v7849_v6 = vrot.slane %v1145_v55, %v7769_v36  ;;  %v7933_v31 = vld [vmem:[#allocation2 + $0x1a] sm:$0xff] }
  0xe2   : > { %v7771_v39 = vld [vmem:[#allocation2 + $0x51] sm:$0xff]  ;;  %690 = vrot.lane.b32.xlu1 %v454_v37, %s7414_s7  ;;  %v539_v40 = vcombine.low %v7732_v17, %v454_v37  ;;  %v540_v41 = vcombine.high %v7732_v17, %v454_v37  ;;  %676 = vrot.lane.b32.xlu0 %v7742_v22, %s7414_s7  ;;  %v471_v42 = vcombine.low %v449_v35, %v453_v38  ;;  %v7786_v48 = vld [vmem:[#allocation2 + $0x49] sm:$0xff] }
  0xe3   : > { %v472_v44 = vcombine.high %v449_v35, %v453_v38  ;;  %v1228_v45 = vcombine.low %v7778_v43, %v7771_v39  ;;  %v1229_v46 = vcombine.high %v7778_v43, %v7771_v39  ;;  %v1160_v58 = vcombine.low %v7802_v53, %v7786_v48  ;;  %v7917_v29 = vld [vmem:[#allocation2 + $0x52] sm:$0xff]  ;;  %v7941_v34 = vld [vmem:[#allocation2 + $0x4a] sm:$0xff] }
  0xe4   : > { %v7792_v50 = vrot.slane %v539_v40, %v7769_v36  ;;  %v1161_v59 = vcombine.high %v7802_v53, %v7786_v48  ;;  %v7825_v62 = vrot.slane %v471_v42, %v7769_v36  ;;  %v7843_v5 = vrot.slane %v540_v41, %v7769_v36  ;;  %v7935_v33 = vld [vmem:[#allocation2 + $0x32] sm:$0xff] }
  0xe5   : > { %v7800_v52 = vrot.slane %v1228_v45, %v7769_v36  ;;  %v7809_v56 = vrot.slane %v472_v44, %v7769_v36  ;;  %v7812_v57 = vrot.slane %v1229_v46, %v7769_v36  ;;  %v7837_v3 = vrot.slane %v1160_v58, %v7769_v36 }
  0xe6   : > { %680 = vrot.lane.b32.xlu1 %v449_v35, %s7414_s7  ;;  %684 = vrot.lane.b32.xlu0 %v7748_v26, %s7414_s7  ;;  %v7840_v4 = vrot.slane %v1161_v59, %v7769_v36  ;;  %v556_v9 = vcombine.high %v7789_v49, %v7792_v50 }
  0xe7   : > { %v1245_v7 = vcombine.high %v7828_v63, %v7800_v52  ;;  %v1177_v8 = vcombine.high %v7834_v2, %v7837_v3  ;;  %v1260_v10 = vcombine.low %v7831_v1, %v7812_v57  ;;  %v503_v11 = vcombine.low %v7822_v61, %v7809_v56 }
  0xea   : > { %688 = vrot.lane.b32.xlu1 %v453_v38, %s7414_s7  ;;  %908 = vrot.lane.b32.xlu0 %v7734_v18, %s7415_s15 }
  0xee   : > { %912 = vrot.lane.b32.xlu1 %v7732_v17, %s7415_s15  ;;  %916 = vrot.lane.b32.xlu0 %v7744_v23, %s7415_s15 }
  0xf2   : > { %920 = vrot.lane.b32.xlu1 %v454_v37, %s7415_s15  ;;  %906 = vrot.lane.b32.xlu0 %v7742_v22, %s7415_s15  ;;  %v7903_v22 = vld [vmem:[#allocation2 + $0xa] sm:$0xff] }
  0xf6   : > { %910 = vrot.lane.b32.xlu1 %v449_v35, %s7415_s15  ;;  %914 = vrot.lane.b32.xlu0 %v7748_v26, %s7415_s15  ;;  %v7909_v26 = vld [vmem:[#allocation2 + $0x22] sm:$0xff] }
  0xfa   : > { %918 = vrot.lane.b32.xlu1 %v453_v38, %s7415_s15  ;;  %1590 = vrot.lane.b32.xlu0 %v7762_v32, %s7415_s15 }
  0xfe   : > { %1594 = vrot.lane.b32.xlu1 %v7778_v43, %s7415_s15  ;;  %1598 = vrot.lane.b32.xlu0 %v7750_v27, %s7415_s15 }
 0x102   : > { %1602 = vrot.lane.b32.xlu1 %v7771_v39, %s7415_s15  ;;  %2042 = vrot.lane.b32.xlu0 %v7903_v22, %s7414_s7 }
 0x106   : > { %2046 = vrot.lane.b32.xlu1 %v7909_v26, %s7414_s7  ;;  %2050 = vrot.lane.b32.xlu0 %v7911_v28, %s7414_s7 }
 0x10a   : > { %2054 = vrot.lane.b32.xlu1 %v7917_v29, %s7414_s7  ;;  %1588 = vrot.lane.b32.xlu0 %v7794_v51, %s7415_s15 }
 0x10e   : > { %1592 = vrot.lane.b32.xlu1 %v7802_v53, %s7415_s15  ;;  %1596 = vrot.lane.b32.xlu0 %v7784_v47, %s7415_s15 }
 0x112   : > { %1600 = vrot.lane.b32.xlu1 %v7786_v48, %s7415_s15  ;;  %2040 = vrot.lane.b32.xlu0 %v7927_v30, %s7414_s7 }
 0x116   : > { %2044 = vrot.lane.b32.xlu1 %v7933_v31, %s7414_s7  ;;  %2048 = vrot.lane.b32.xlu0 %v7935_v33, %s7414_s7 }
 0x11a   : > { %2052 = vrot.lane.b32.xlu1 %v7941_v34, %s7414_s7  ;;  %1360 = vrot.lane.b32.xlu0 %v7762_v32, %s7414_s7  ;;  %v7416_v32 = vmov 1934713408  }
 0x11b   : > { %v490_v35 = vunpack.c.l.s4 %v7416_v32 }
 0x11d   : > { %v491_v40 = vunpack.c.0.s8 %v490_v35 }
 0x11e   : > { %1364 = vrot.lane.b32.xlu1 %v7778_v43, %s7414_s7  ;;  %1368 = vrot.lane.b32.xlu0 %v7750_v27, %s7414_s7 }
 0x11f   : > { %v7984_v46 = vsub.s32 %v491_v40, %v7746_v25 }
 0x121   : > { %11913 = vst [vmem:[#allocation14_spill] sm:$0xff] %v7984_v46  ;;  %v7997_v58 = vrot.slane %v1245_v7, %v7984_v46 }
 0x122   : > { %1372 = vrot.lane.b32.xlu1 %v7771_v39, %s7414_s7  ;;  %1358 = vrot.lane.b32.xlu0 %v7794_v51, %s7414_s7 }
 0x123   : > { %11915 = vst [vmem:[#allocation16_spill] sm:$0xff] %v7997_v58 }
 0x126   : > { %1362 = vrot.lane.b32.xlu1 %v7802_v53, %s7414_s7  ;;  %1366 = vrot.lane.b32.xlu0 %v7784_v47, %s7414_s7 }
 0x12a   : > { %1370 = vrot.lane.b32.xlu1 %v7786_v48, %s7414_s7  ;;  %2270 = vrot.lane.b32.xlu0 %v7927_v30, %s7415_s15 }
 0x12e   : > { %2272 = vrot.lane.b32.xlu1 %v7903_v22, %s7415_s15  ;;  %2274 = vrot.lane.b32.xlu0 %v7933_v31, %s7415_s15 }
 0x132   : > { %2276 = vrot.lane.b32.xlu1 %v7909_v26, %s7415_s15  ;;  %2278 = vrot.lane.b32.xlu0 %v7935_v33, %s7415_s15 }
 0x136   : > { %2280 = vrot.lane.b32.xlu1 %v7911_v28, %s7415_s15  ;;  %2282 = vrot.lane.b32.xlu0 %v7941_v34, %s7415_s15 }
 0x13a   : > { %2284 = vrot.lane.b32.xlu1 %v7917_v29, %s7415_s15 }
 0x14c   : > { %v679_v27 = vpop.permute.xlu0 %678  ;;  %v683_v37 = vpop.permute.xlu1 %682 }
 0x150   : > { %v687_v38 = vpop.permute.xlu0 %686 }
 0x151   : > { %v768_v39 = vcombine.low %v679_v27, %v687_v38  ;;  %v769_v21 = vcombine.high %v679_v27, %v687_v38 }
 0x153   : > { %v7978_v44 = vrot.slane %v768_v39, %v7769_v36  ;;  %v8027_v27 = vrot.slane %v769_v21, %v7769_v36 }
 0x154   : > { %v691_v41 = vpop.permute.xlu1 %690  ;;  %v677_v42 = vpop.permute.xlu0 %676 }
 0x155   : > { %v784_v43 = vcombine.low %v683_v37, %v691_v41  ;;  %v785_v24 = vcombine.high %v683_v37, %v691_v41 }
 0x157   : > { %v7981_v45 = vrot.slane %v784_v43, %v7769_v36  ;;  %v8022_v37 = vrot.slane %v785_v24, %v7769_v36 }
 0x158   : > { %v681_v47 = vpop.permute.xlu1 %680  ;;  %v685_v48 = vpop.permute.xlu0 %684 }
 0x159   : > { %v801_v53 = vcombine.high %v7978_v44, %v7981_v45  ;;  %v700_v54 = vcombine.low %v677_v42, %v685_v48  ;;  %v816_v24 = vcombine.low %v8027_v27, %v8022_v37  ;;  %v701_v18 = vcombine.high %v677_v42, %v685_v48 }
 0x15b   : > { %v7991_v55 = vrot.slane %v801_v53, %v7984_v46  ;;  %v8002_v39 = vrot.slane %v700_v54, %v7769_v36  ;;  %v715_v48 = vrot.slane %v701_v18, %v7769_v36 }
 0x15c   : > { %v689_v25 = vpop.permute.xlu1 %688  ;;  %v909_v59 = vpop.permute.xlu0 %908 }
 0x15d   : > { %11914 = vst [vmem:[#allocation15_spill] sm:$0xff] %v7991_v55  ;;  %v716_v32 = vcombine.low %v681_v47, %v689_v25  ;;  %v6571_v35 = vpack.i.bf16 %v7997_v58, %v7991_v55 }
 0x15f   : > { %v8005_v40 = vrot.slane %v716_v32, %v7769_v36  ;;  %6572 = vrot.lane.b32.xlu0 %v6571_v35, %s7417_s29  ;;  %v8019_v32 = vrot.slane %v1177_v8, %v7984_v46  ;;  %v717_v8 = vcombine.high %v681_v47, %v689_v25 }
 0x160   : > { %v913_v43 = vpop.permute.xlu1 %912  ;;  %v917_v53 = vpop.permute.xlu0 %916 }
 0x161   : > { %v733_v23 = vcombine.high %v8002_v39, %v8005_v40  ;;  %v998_v17 = vcombine.low %v909_v59, %v917_v53  ;;  %v731_v25 = vrot.slane %v717_v8, %v7769_v36 }
 0x163   : > { %v8013_v54 = vrot.slane %v733_v23, %v7984_v46  ;;  %v8030_v23 = vrot.slane %v998_v17, %v7769_v36  ;;  %v748_v18 = vcombine.low %v715_v48, %v731_v25 }
 0x164   : > { %v921_v35 = vpop.permute.xlu1 %920  ;;  %v907_v51 = vpop.permute.xlu0 %906 }
 0x165   : > { %v1014_v41 = vcombine.low %v913_v43, %v921_v35  ;;  %v6576_v7 = vpack.i.bf16 %v8019_v32, %v8013_v54 }
 0x167   : > { %v8033_v38 = vrot.slane %v1014_v41, %v7769_v36  ;;  %6577 = vrot.lane.b32.xlu0 %v6576_v7, %s7417_s29  ;;  %v8046_v7 = vrot.slane %v556_v9, %v7984_v46  ;;  %v1015_v41 = vcombine.high %v913_v43, %v921_v35  ;;  %v999_v9 = vcombine.high %v909_v59, %v917_v53 }
 0x168   : > { %v911_v0 = vpop.permute.xlu1 %910  ;;  %v915_v20 = vpop.permute.xlu0 %914  ;;  %v749_v59 = vcombine.high %v715_v48, %v731_v25 }
 0x169   : > { %v1031_v21 = vcombine.high %v8030_v23, %v8033_v38  ;;  %v930_v17 = vcombine.low %v907_v51, %v915_v20  ;;  %v931_v16 = vcombine.high %v907_v51, %v915_v20  ;;  %11916 = vst [vmem:[#allocation17_spill] sm:$0xff] %v8046_v7  ;;  %v8055_v20 = vrot.slane %v816_v24, %v7984_v46 }
 0x16a   : > { %v8062_v51 = vrot.slane %v1260_v10, %v7984_v46  ;;  %v1029_v53 = vrot.slane %v1015_v41, %v7769_v36 }
 0x16b   : > { %v8049_v47 = vrot.slane %v1031_v21, %v7984_v46  ;;  %11918 = vst [vmem:[#allocation19_spill] sm:$0xff] %v8055_v20  ;;  %v8065_v43 = vrot.slane %v930_v17, %v7769_v36  ;;  %v8085_v17 = vrot.slane %v503_v11, %v7984_v46 }
 0x16c   : > { %v919_v15 = vpop.permute.xlu1 %918  ;;  %v1591_v19 = vpop.permute.xlu0 %1590  ;;  %11919 = vst [vmem:[#allocation20_spill] sm:$0xff] %v8062_v51 }
 0x16d   : > { %11917 = vst [vmem:[#allocation18_spill] sm:$0xff] %v8049_v47  ;;  %v946_v13 = vcombine.low %v911_v0, %v919_v15  ;;  %v947_v12 = vcombine.high %v911_v0, %v919_v15  ;;  %v6581_v42 = vpack.i.bf16 %v8049_v47, %v8046_v7  ;;  %v945_v0 = vrot.slane %v931_v16, %v7769_v36 }
 0x16e   : > { %11920 = vst [vmem:[#allocation21_spill] sm:$0xff] %v8085_v17  ;;  %v8101_v7 = vrot.slane %v749_v59, %v7984_v46 }
 0x16f   : > { %v8069_v15 = vrot.slane %v946_v13, %v7769_v36  ;;  %v961_v35 = vrot.slane %v947_v12, %v7769_v36  ;;  %6582 = vrot.lane.b32.xlu1 %v6581_v42, %s7417_s29  ;;  %v6586_v13 = vpack.i.bf16 %v8062_v51, %v8055_v20  ;;  %v1013_v12 = vrot.slane %v999_v9, %v7769_v36 }
 0x170   : > { %v1595_v8 = vpop.permute.xlu1 %1594  ;;  %v1599_v24 = vpop.permute.xlu0 %1598  ;;  %v11922_v42 = vcombine.high %v7819_v60, %v7825_v62  ;;  %11925 = vst [vmem:[#allocation25_spill] sm:$0xff] %v8101_v7 }
 0x171   : > { %v963_v21 = vcombine.high %v8065_v43, %v8069_v15  ;;  %v978_v16 = vcombine.low %v945_v0, %v961_v35  ;;  %v1680_v25 = vcombine.low %v1591_v19, %v1599_v24  ;;  %v1046_v10 = vcombine.low %v1013_v12, %v1029_v53 }
 0x172   : > { %v8095_v48 = vrot.slane %v11922_v42, %v7984_v46  ;;  %v1047_v51 = vcombine.high %v1013_v12, %v1029_v53  ;;  %v11927_v53 = vcombine.high %v7849_v6, %v7840_v4 }
 0x173   : > { %6587 = vrot.lane.b32.xlu1 %v6586_v13, %s7418_s16  ;;  %v8089_v41 = vrot.slane %v978_v16, %v7984_v46  ;;  %v8098_v9 = vrot.slane %v963_v21, %v7984_v46  ;;  %v8104_v13 = vrot.slane %v748_v18, %v7984_v46  ;;  %v1681_v21 = vcombine.high %v1591_v19, %v1599_v24 }
 0x174   : > { %11923 = vst [vmem:[#allocation23_spill] sm:$0xff] %v8095_v48  ;;  %v1603_v11 = vpop.permute.xlu1 %1602  ;;  %v2043_v20 = vpop.permute.xlu0 %2042  ;;  %v8114_v12 = vrot.slane %v11927_v53, %v7984_v46  ;;  %v8117_v59 = vrot.slane %v1680_v25, %v7769_v36  ;;  %v11931_v19 = vcombine.low %v7849_v6, %v7840_v4  ;;  %v817_v24 = vcombine.high %v8027_v27, %v8022_v37 }
 0x175   : > { %11921 = vst [vmem:[#allocation22_spill] sm:$0xff] %v8089_v41  ;;  %11924 = vst [vmem:[#allocation24_spill] sm:$0xff] %v8098_v9  ;;  %v1696_v16 = vcombine.low %v1595_v8, %v1603_v11  ;;  %v1697_v47 = vcombine.high %v1595_v8, %v1603_v11  ;;  %v6616_v58 = vpack.i.bf16 %v8089_v41, %v8085_v17 }
 0x176   : > { %11926 = vst [vmem:[#allocation26_spill] sm:$0xff] %v8104_v13  ;;  %v6591_v42 = vpack.i.bf16 %v8098_v9, %v8095_v48  ;;  %11928 = vst [vmem:[#allocation27_spill] sm:$0xff] %v8114_v12  ;;  %v8128_v8 = vrot.slane %v11931_v19, %v7984_v46  ;;  %v979_v11 = vcombine.high %v945_v0, %v961_v35 }
 0x177   : > { %11929 = vst [vmem:[#allocation28_spill] sm:$0xff] %v8117_v59  ;;  %v8120_v18 = vrot.slane %v1696_v16, %v7769_v36  ;;  %6617 = vrot.lane.b32.xlu1 %v6616_v58, %s7418_s16  ;;  %v1711_v25 = vrot.slane %v1697_v47, %v7769_v36  ;;  %v6621_v16 = vpack.i.bf16 %v8114_v12, %v8101_v7 }
 0x178   : > { %6592 = vrot.lane.b32.xlu0 %v6591_v42, %s7417_s29  ;;  %11932 = vst [vmem:[#allocation30_spill] sm:$0xff] %v8128_v8  ;;  %v2047_v53 = vpop.permute.xlu1 %2046  ;;  %v2051_v17 = vpop.permute.xlu0 %2050  ;;  %v6596_v42 = vpack.i.bf16 %v8128_v8, %v8104_v13  ;;  %v8140_v4 = vrot.slane %v1047_v51, %v7984_v46  ;;  %v8143_v6 = vrot.slane %v1046_v10, %v7984_v46 }
 0x179   : > { %11930 = vst [vmem:[#allocation29_spill] sm:$0xff] %v8120_v18  ;;  %v1695_v37 = vrot.slane %v1681_v21, %v7769_v36  ;;  %v2132_v27 = vcombine.low %v2043_v20, %v2051_v17  ;;  %v2133_v47 = vcombine.high %v2043_v20, %v2051_v17  ;;  %v11935_v0 = vcombine.high %v7866_v14, %v7843_v5 }
 0x17a   : > { %11933 = vst [vmem:[#allocation31_spill] sm:$0xff] %v8140_v4  ;;  %11934 = vst [vmem:[#allocation32_spill] sm:$0xff] %v8143_v6  ;;  %v11937_v51 = vcombine.low %v7866_v14, %v7843_v5  ;;  %v1713_v20 = vcombine.high %v8117_v59, %v8120_v18 }
 0x17b   : > { %6622 = vrot.lane.b32.xlu1 %v6621_v16, %s7419_s13  ;;  %v8152_v35 = vrot.slane %v11935_v0, %v7984_v46  ;;  %v1728_v17 = vcombine.low %v1695_v37, %v1711_v25  ;;  %v8163_v16 = vrot.slane %v979_v11, %v7984_v46  ;;  %v1729_v14 = vcombine.high %v1695_v37, %v1711_v25 }
 0x17c   : > { %6597 = vrot.lane.b32.xlu0 %v6596_v42, %s7418_s16  ;;  %v8158_v10 = vrot.slane %v11937_v51, %v7984_v46  ;;  %v2055_v21 = vpop.permute.xlu1 %2054  ;;  %v1589_v19 = vpop.permute.xlu0 %1588  ;;  %v8166_v42 = vrot.slane %v817_v24, %v7984_v46  ;;  %v8173_v51 = vrot.slane %v2132_v27, %v7769_v36  ;;  %v11941_v11 = vcombine.high %v7822_v61, %v7809_v56 }
 0x17d   : > { %11936 = vst [vmem:[#allocation33_spill] sm:$0xff] %v8152_v35  ;;  %11939 = vst [vmem:[#allocation35_spill] sm:$0xff] %v8163_v16  ;;  %v2148_v0 = vcombine.low %v2047_v53, %v2055_v21  ;;  %v2149_v58 = vcombine.high %v2047_v53, %v2055_v21  ;;  %v6631_v12 = vpack.i.bf16 %v8140_v4, %v8152_v35 }
 0x17e   : > { %11938 = vst [vmem:[#allocation34_spill] sm:$0xff] %v8158_v10  ;;  %11940 = vst [vmem:[#allocation36_spill] sm:$0xff] %v8166_v42  ;;  %v6601_v5 = vpack.i.bf16 %v8143_v6, %v8158_v10  ;;  %v8179_v8 = vrot.slane %v11941_v11, %v7984_v46  ;;  %v11943_v24 = vcombine.high %v7831_v1, %v7812_v57 }
 0x17f   : > { %v2147_v21 = vrot.slane %v2133_v47, %v7769_v36  ;;  %v8189_v35 = vrot.slane %v2148_v0, %v7769_v36  ;;  %v2163_v25 = vrot.slane %v2149_v58, %v7769_v36  ;;  %6632 = vrot.lane.b32.xlu1 %v6631_v12, %s7419_s13  ;;  %v1727_v1 = vrot.slane %v1713_v20, %v7984_v46 }
 0x180   : > { %11942 = vst [vmem:[#allocation37_spill] sm:$0xff] %v8179_v8  ;;  %v8185_v53 = vrot.slane %v11943_v24, %v7984_v46  ;;  %6602 = vrot.lane.b32.xlu0 %v6601_v5, %s7418_s16  ;;  %v1593_v56 = vpop.permute.xlu1 %1592  ;;  %v1597_v61 = vpop.permute.xlu0 %1596  ;;  %v6646_v37 = vpack.i.bf16 %v8163_v16, %v8179_v8  ;;  %v8200_v27 = vrot.slane %v1728_v17, %v7984_v46  ;;  %v11945_v16 = vmov 0.0  }
 0x181   : > { %v2165_v12 = vcombine.high %v8173_v51, %v8189_v35  ;;  %v2180_v47 = vcombine.low %v2147_v21, %v2163_v25  ;;  %v2181_v0 = vcombine.high %v2147_v21, %v2163_v25  ;;  %v1612_v5 = vcombine.low %v1589_v19, %v1597_v61 }
 0x182   : > { %11944 = vst [vmem:[#allocation38_spill] sm:$0xff] %v8185_v53  ;;  %v6606_v57 = vpack.i.bf16 %v8185_v53, %v8166_v42  ;;  %v8207_v11 = vrot.slane %v1729_v14, %v7984_v46  ;;  %v8219_v21 = vcombine.high %v1727_v1, %v11945_v16 }
 0x183   : > { %6647 = vrot.lane.b32.xlu1 %v6646_v37, %s7419_s13  ;;  %v2179_v20 = vrot.slane %v2165_v12, %v7984_v46  ;;  %v8213_v17 = vrot.slane %v2180_v47, %v7984_v46  ;;  %v8216_v24 = vrot.slane %v2181_v0, %v7984_v46  ;;  %v8226_v37 = vcombine.high %v8200_v27, %v11945_v16 }
 0x184   : > { %6607 = vrot.lane.b32.xlu0 %v6606_v57, %s7419_s13  ;;  %v1601_v58 = vpop.permute.xlu1 %1600  ;;  %v2041_v8 = vpop.permute.xlu0 %2040  ;;  %11946 = vst [vmem:[#allocation39_spill] sm:$0xff] %v8219_v21  ;;  %v8234_v47 = vcombine.high %v8207_v11, %v11945_v16 }
 0x185   : > { %v1628_v25 = vcombine.low %v1593_v56, %v1601_v58  ;;  %v6611_v14 = vpack.i.bf16 %v2179_v20, %v1727_v1  ;;  %v8222_v4 = vcombine.high %v2179_v20, %v11945_v16  ;;  %11948 = vst [vmem:[#allocation41_spill] sm:$0xff] %v8226_v37  ;;  %v1629_v57 = vcombine.high %v1593_v56, %v1601_v58 }
 0x186   : > { %v8230_v12 = vcombine.high %v8213_v17, %v11945_v16  ;;  %11950 = vst [vmem:[#allocation43_spill] sm:$0xff] %v8234_v47  ;;  %v8238_v0 = vcombine.high %v8216_v24, %v11945_v16  ;;  %v8241_v1 = vrot.slane %v1612_v5, %v7769_v36  ;;  %v1613_v58 = vcombine.high %v1589_v19, %v1597_v61 }
 0x187   : > { %11947 = vst [vmem:[#allocation40_spill] sm:$0xff] %v8222_v4  ;;  %v8244_v20 = vrot.slane %v1628_v25, %v7769_v36  ;;  %v1643_v25 = vrot.slane %v1629_v57, %v7769_v36  ;;  %v1894_v5 = vcombine.low %v7903_v22, %v7911_v28 }
 0x188   : > { %11949 = vst [vmem:[#allocation42_spill] sm:$0xff] %v8230_v12  ;;  %11951 = vst [vmem:[#allocation44_spill] sm:$0xff] %v8238_v0  ;;  %6612 = vrot.lane.b32.xlu0 %v6611_v14, %s7417_s29  ;;  %v2045_v7 = vpop.permute.xlu1 %2044  ;;  %v2049_v13 = vpop.permute.xlu0 %2048  ;;  %v1910_v14 = vcombine.low %v7909_v26, %v7917_v29  ;;  %v1627_v19 = vrot.slane %v1613_v58, %v7769_v36 }
 0x189   : > { %11952 = vst [vmem:[#allocation45_spill] sm:$0xff] %v8241_v1  ;;  %11953 = vst [vmem:[#allocation46_spill] sm:$0xff] %v8244_v20  ;;  %v2064_v9 = vcombine.low %v2041_v8, %v2049_v13  ;;  %v2065_v53 = vcombine.high %v2041_v8, %v2049_v13  ;;  %v1645_v61 = vcombine.high %v8241_v1, %v8244_v20 }
 0x18a   : > { %v1660_v47 = vcombine.low %v1627_v19, %v1643_v25  ;;  %v1661_v57 = vcombine.high %v1627_v19, %v1643_v25  ;;  %v8274_v12 = vrot.slane %v1910_v14, %v7769_v36  ;;  %v8286_v19 = vrot.slane %v1894_v5, %v7769_v36 }
 0x18b   : > { %v8266_v13 = vrot.slane %v2064_v9, %v7769_v36  ;;  %v2079_v8 = vrot.slane %v2065_v53, %v7769_v36 }
 0x18c   : > { %v2053_v56 = vpop.permute.xlu1 %2052  ;;  %v8261_v48 = vpop.permute.xlu0 %1360  ;;  %11956 = vst [vmem:[#allocation49_spill] sm:$0xff] %v8274_v12  ;;  %11957 = vst [vmem:[#allocation50_spill] sm:$0xff] %v8286_v19  ;;  %v8292_v14 = vrot.slane %v1661_v57, %v7984_v46 }
 0x18d   : > { %v2080_v37 = vcombine.low %v2045_v7, %v2053_v56  ;;  %v2081_v41 = vcombine.high %v2045_v7, %v2053_v56  ;;  %11954 = vst [vmem:[#allocation47_spill] sm:$0xff] %v8266_v13  ;;  %v1659_v56 = vrot.slane %v1645_v61, %v7984_v46 }
 0x18f   : > { %v8270_v58 = vrot.slane %v2080_v37, %v7769_v36  ;;  %v2095_v0 = vrot.slane %v2081_v41, %v7769_v36  ;;  %v8289_v41 = vrot.slane %v1660_v47, %v7984_v46  ;;  %v1842_v47 = vcombine.low %v7933_v31, %v7941_v34 }
 0x190   : > { %v8276_v21 = vpop.permute.xlu1 %1364  ;;  %v8278_v7 = vpop.permute.xlu0 %1368 }
 0x191   : > { %11955 = vst [vmem:[#allocation48_spill] sm:$0xff] %v8270_v58  ;;  %v2097_v53 = vcombine.high %v8266_v13, %v8270_v58  ;;  %v2112_v25 = vcombine.low %v2079_v8, %v2095_v0  ;;  %v2113_v37 = vcombine.high %v2079_v8, %v2095_v0  ;;  %v1450_v61 = vcombine.low %v8261_v48, %v8278_v7 }
 0x192   : > { %v1826_v0 = vcombine.low %v7927_v30, %v7935_v33  ;;  %v1927_v8 = vcombine.high %v8286_v19, %v8274_v12  ;;  %v8318_v58 = vcombine.high %v8289_v41, %v11945_v16  ;;  %v8326_v19 = vcombine.high %v8292_v14, %v11945_v16 }
 0x193   : > { %v2111_v4 = vrot.slane %v2097_v53, %v7984_v46  ;;  %v8298_v9 = vrot.slane %v2112_v25, %v7984_v46  ;;  %v8301_v20 = vrot.slane %v2113_v37, %v7984_v46  ;;  %v8311_v53 = vcombine.high %v1659_v56, %v11945_v16 }
 0x194   : > { %v1373_v5 = vpop.permute.xlu1 %1372  ;;  %v1359_v57 = vpop.permute.xlu0 %1358  ;;  %11960 = vst [vmem:[#allocation53_spill] sm:$0xff] %v8318_v58  ;;  %11962 = vst [vmem:[#allocation55_spill] sm:$0xff] %v8326_v19  ;;  %v8344_v6 = vrot.slane %v1842_v47, %v7769_v36  ;;  %v1941_v59 = vrot.slane %v1927_v8, %v7984_v46 }
 0x195   : > { %v1466_v1 = vcombine.low %v8276_v21, %v1373_v5  ;;  %11958 = vst [vmem:[#allocation51_spill] sm:$0xff] %v8311_v53  ;;  %v6626_v25 = vpack.i.bf16 %v2111_v4, %v1659_v56  ;;  %v8314_v37 = vcombine.high %v2111_v4, %v11945_v16  ;;  %v8322_v13 = vcombine.high %v8298_v9, %v11945_v16 }
 0x196   : > { %v8330_v12 = vcombine.high %v8301_v20, %v11945_v16  ;;  %v1843_v4 = vcombine.high %v7933_v31, %v7941_v34  ;;  %v8335_v56 = vrot.slane %v1450_v61, %v7769_v36  ;;  %v1827_v61 = vcombine.high %v7927_v30, %v7935_v33 }
 0x197   : > { %11959 = vst [vmem:[#allocation52_spill] sm:$0xff] %v8314_v37  ;;  %11961 = vst [vmem:[#allocation54_spill] sm:$0xff] %v8322_v13  ;;  %v8338_v42 = vrot.slane %v1466_v1, %v7769_v36  ;;  %6627 = vrot.lane.b32.xlu0 %v6626_v25, %s7417_s29  ;;  %v8356_v25 = vrot.slane %v1826_v0, %v7769_v36  ;;  %v1467_v31 = vcombine.high %v8276_v21, %v1373_v5 }
 0x198   : > { %11963 = vst [vmem:[#allocation56_spill] sm:$0xff] %v8330_v12  ;;  %v1363_v55 = vpop.permute.xlu1 %1362  ;;  %v1367_v18 = vpop.permute.xlu0 %1366  ;;  %v8360_v8 = vrot.slane %v1843_v4, %v7769_v36  ;;  %v8364_v19 = vcombine.high %v1941_v59, %v11945_v16  ;;  %v1841_v4 = vrot.slane %v1827_v61, %v7769_v36  ;;  %v1451_v21 = vcombine.high %v8261_v48, %v8278_v7 }
 0x199   : > { %v1483_v1 = vcombine.high %v8335_v56, %v8338_v42  ;;  %v1382_v47 = vcombine.low %v1359_v57, %v1367_v18  ;;  %v1383_v10 = vcombine.high %v1359_v57, %v1367_v18  ;;  %v1859_v30 = vcombine.high %v8356_v25, %v8344_v6 }
 0x19a   : > { %v1911_v57 = vcombine.high %v7909_v26, %v7917_v29  ;;  %v1895_v29 = vcombine.high %v7903_v22, %v7911_v28  ;;  %v1874_v7 = vcombine.low %v1841_v4, %v8360_v8  ;;  %v1465_v22 = vrot.slane %v1451_v21, %v7769_v36 }
 0x19b   : > { %v1497_v53 = vrot.slane %v1483_v1, %v7984_v46  ;;  %v8377_v5 = vrot.slane %v1382_v47, %v7769_v36  ;;  %v1397_v1 = vrot.slane %v1383_v10, %v7769_v36  ;;  %v8392_v10 = vrot.slane %v1467_v31, %v7769_v36 }
 0x19c   : > { %v1371_v58 = vpop.permute.xlu1 %1370  ;;  %v2271_v34 = vpop.permute.xlu0 %2270  ;;  %v8399_v47 = vrot.slane %v1911_v57, %v7769_v36  ;;  %v8408_v31 = vrot.slane %v1895_v29, %v7769_v36  ;;  %v8411_v26 = vrot.slane %v1874_v7, %v7984_v46 }
 0x19d   : > { %v1398_v33 = vcombine.low %v1363_v55, %v1371_v58  ;;  %v1399_v0 = vcombine.high %v1363_v55, %v1371_v58  ;;  %v6636_v12 = vpack.i.bf16 %v1941_v59, %v1497_v53  ;;  %v8369_v18 = vcombine.high %v1497_v53, %v11945_v16 }
 0x19e   : > { %v1873_v58 = vrot.slane %v1859_v30, %v7984_v46  ;;  %11966 = vst [vmem:[#allocation59_spill] sm:$0xff] %v8411_v26 }
 0x19f   : > { %11964 = vst [vmem:[#allocation57_spill] sm:$0xff] %v8369_v18  ;;  %v8381_v13 = vrot.slane %v1398_v33, %v7769_v36  ;;  %v1413_v55 = vrot.slane %v1399_v0, %v7769_v36  ;;  %6637 = vrot.lane.b32.xlu0 %v6636_v12, %s7417_s29  ;;  %v6641_v12 = vpack.i.bf16 %v8213_v17, %v8200_v27 }
 0x1a0   : > { %v2273_v59 = vpop.permute.xlu1 %2272  ;;  %v2275_v48 = vpop.permute.xlu0 %2274  ;;  %v1498_v27 = vcombine.low %v1465_v22, %v8392_v10  ;;  %v8415_v17 = vcombine.high %v1873_v58, %v11945_v16 }
 0x1a1   : > { %v1415_v53 = vcombine.high %v8377_v5, %v8381_v13  ;;  %v1430_v61 = vcombine.low %v1397_v1, %v1413_v55 }
 0x1a3   : > { %6642 = vrot.lane.b32.xlu0 %v6641_v12, %s7418_s16  ;;  %v1429_v28 = vrot.slane %v1415_v53, %v7984_v46  ;;  %v8405_v30 = vrot.slane %v1430_v61, %v7984_v46  ;;  %v1431_v53 = vcombine.high %v1397_v1, %v1413_v55  ;;  %v1942_v12 = vcombine.low %v8408_v31, %v8399_v47 }
 0x1a4   : > { %v2277_v33 = vpop.permute.xlu1 %2276  ;;  %v2279_v0 = vpop.permute.xlu0 %2278 }
 0x1a5   : > { %11965 = vst [vmem:[#allocation58_spill] sm:$0xff] %v8405_v30  ;;  %v6651_v57 = vpack.i.bf16 %v1873_v58, %v1429_v28  ;;  %v8418_v21 = vcombine.high %v1429_v28, %v11945_v16  ;;  %v2294_v61 = vcombine.low %v2271_v34, %v2279_v0  ;;  %v6671_v29 = vpack.i.bf16 %v8411_v26, %v8405_v30 }
 0x1a6   : > { %v2295_v37 = vcombine.high %v2271_v34, %v2279_v0  ;;  %v1875_v28 = vcombine.high %v1841_v4, %v8360_v8  ;;  %v6656_v26 = vpack.i.bf16 %v8298_v9, %v8289_v41  ;;  %v8432_v30 = vrot.slane %v1498_v27, %v7984_v46 }
 0x1a7   : > { %6652 = vrot.lane.b32.xlu1 %v6651_v57, %s7417_s29  ;;  %v6821_v7 = vpack.i.bf16 %v8415_v17, %v8418_v21  ;;  %6672 = vrot.lane.b32.xlu0 %v6671_v29, %s7418_s16  ;;  %v8435_v34 = vrot.slane %v2294_v61, %v7769_v36  ;;  %v6676_v0 = vpack.i.bf16 %v8301_v20, %v8292_v14  ;;  %v12025_v21 = vld [vmem:[#allocation54_spill] sm:$0xff] }
 0x1a8   : > { %v2281_v58 = vpop.permute.xlu1 %2280  ;;  %v2283_v18 = vpop.permute.xlu0 %2282  ;;  %v8440_v57 = vrot.slane %v1942_v12, %v7984_v46  ;;  %v8443_v29 = vrot.slane %v1431_v53, %v7984_v46  ;;  %v2309_v8 = vrot.slane %v2295_v37, %v7769_v36  ;;  %v1499_v4 = vcombine.high %v1465_v22, %v8392_v10 }
 0x1a9   : > { %v2310_v1 = vcombine.low %v2275_v48, %v2283_v18  ;;  %v2311_v55 = vcombine.high %v2275_v48, %v2283_v18  ;;  %v2362_v18 = vcombine.low %v2273_v59, %v2281_v58  ;;  %v2363_v48 = vcombine.high %v2273_v59, %v2281_v58 }
 0x1aa   : > { %v8454_v14 = vrot.slane %v1875_v28, %v7984_v46  ;;  %v6661_v61 = vpack.i.bf16 %v8440_v57, %v8432_v30  ;;  %v1943_v10 = vcombine.high %v8408_v31, %v8399_v47  ;;  %v11967_v31 = vcombine.low %v7978_v44, %v7981_v45 }
 0x1ab   : > { %v8447_v9 = vrot.slane %v2310_v1, %v7769_v36  ;;  %v2325_v41 = vrot.slane %v2311_v55, %v7769_v36  ;;  %6657 = vrot.lane.b32.xlu1 %v6656_v26, %s7418_s16  ;;  %6677 = vrot.lane.b32.xlu0 %v6676_v0, %s7419_s13  ;;  %v8463_v59 = vrot.slane %v2362_v18, %v7769_v36 }
 0x1ac   : > { %v2285_v20 = vpop.permute.xlu1 %2284  ;;  %v6686_v26 = vpack.i.bf16 %v8454_v14, %v8443_v29  ;;  %v2377_v22 = vrot.slane %v2363_v48, %v7769_v36  ;;  %v6666_v55 = vpack.i.bf16 %v8216_v24, %v8207_v11  ;;  %v8479_v0 = vrot.slane %v1499_v4, %v7984_v46 }
 0x1ad   : > { %v2326_v37 = vcombine.low %v8435_v34, %v8447_v9  ;;  %v2342_v27 = vcombine.low %v2309_v8, %v2325_v41  ;;  %v2343_v53 = vcombine.high %v2309_v8, %v2325_v41  ;;  %v2378_v12 = vcombine.low %v2277_v33, %v2285_v20 }
 0x1ae   : > { %v2379_v1 = vcombine.high %v2277_v33, %v2285_v20  ;;  %v2327_v58 = vcombine.high %v8435_v34, %v8447_v9  ;;  %v8486_v8 = vrot.slane %v11967_v31, %v7984_v46  ;;  %v8497_v24 = vrot.slane %v1943_v10, %v7984_v46  ;;  %v12033_v34 = vld [vmem:[#allocation44_spill] sm:$0xff]  ;;  %v12034_v9 = vld [vmem:[#allocation43_spill] sm:$0xff] }
 0x1af   : > { %6662 = vrot.lane.b32.xlu1 %v6661_v61, %s7418_s16  ;;  %v8472_v28 = vrot.slane %v2378_v12, %v7769_v36  ;;  %6687 = vrot.lane.b32.xlu0 %v6686_v26, %s7419_s13  ;;  %v2350_v47 = vrot.slane %v2342_v27, %v7984_v46  ;;  %v8493_v11 = vrot.slane %v2343_v53, %v7984_v46  ;;  %v7420_v12 = vmov 0  }
 0x1b0   : > { %v2393_v33 = vrot.slane %v2379_v1, %v7769_v36  ;;  %v11968_v44 = vcombine.low %v7828_v63, %v7800_v52  ;;  %v8509_v27 = vrot.slane %v2327_v58, %v7984_v46  ;;  %6886 = vset.pattern.permute.xlu1 %v7420_v12  ;;  %v6681_v1 = vpack.i.bf16 %v8497_v24, %v8479_v0 }
 0x1b1   : > { %v2394_v18 = vcombine.low %v8463_v59, %v8472_v28  ;;  %v2395_v41 = vcombine.high %v8463_v59, %v8472_v28  ;;  %v832_v52 = vcombine.high %v8486_v8, %v11945_v16  ;;  %v11969_v63 = vcombine.low %v8002_v39, %v8005_v40  ;;  %2589 = vmatprep.mubr.bf16.mxu0 %v7420_v12  ;;  %v12030_v59 = vld [vmem:[#allocation56_spill] sm:$0xff]  ;;  %v12031_v28 = vld [vmem:[#allocation55_spill] sm:$0xff] }
 0x1b2   : > { %v2410_v48 = vcombine.low %v2377_v22, %v2393_v33  ;;  %v2411_v20 = vcombine.high %v2377_v22, %v2393_v33  ;;  %v8503_v45 = vrot.slane %v11968_v44, %v7984_v46  ;;  %6357 = vmatprep.mubr.bf16.mxu1 %v7420_v12  ;;  %v8531_v58 = vcombine.high %v2350_v47, %v11945_v16 }
 0x1b3   : > { %6667 = vrot.lane.b32.xlu1 %v6666_v55, %s7419_s13  ;;  %v8512_v53 = vrot.slane %v2395_v41, %v7984_v46  ;;  %v8523_v26 = vrot.slane %v11969_v63, %v7984_v46  ;;  %v11970_v33 = vcombine.low %v8065_v43, %v8069_v15  ;;  %7202 = vset.pattern.permute.xlu0 %v7420_v12 }
 0x1b4   : > { %v8506_v4 = vrot.slane %v2411_v20, %v7984_v46  ;;  %v2418_v61 = vrot.slane %v2410_v48, %v7984_v46  ;;  %v11971_v39 = vcombine.low %v7834_v2, %v7837_v3  ;;  %v8548_v31 = vcombine.high %v8493_v11, %v11945_v16 }
 0x1b5   : > { %v6691_v10 = vpack.i.bf16 %v8512_v53, %v8509_v27  ;;  %v8537_v55 = vrot.slane %v11970_v33, %v7984_v46  ;;  %v1276_v15 = vcombine.high %v8503_v45, %v11945_v16  ;;  %v11972_v2 = vcombine.low %v7819_v60, %v7825_v62 }
 0x1b6   : > { %v8528_v22 = vcombine.high %v2418_v61, %v11945_v16  ;;  %v8544_v40 = vrot.slane %v11971_v39, %v7984_v46  ;;  %v8552_v41 = vcombine.high %v8506_v4, %v11945_v16  ;;  %v6866_v43 = vpack.i.bf16 %v8506_v4, %v8493_v11  ;;  %v404_v11 = vld [vmem:[%s7632_s11 + $0x30] sm:$0xff] }
 0x1b7   : > { %6682 = vrot.lane.b32.xlu1 %v6681_v1, %s7419_s13  ;;  %6692 = vrot.lane.b32.xlu0 %v6691_v10, %s7417_s29  ;;  %v8563_v3 = vrot.slane %v11972_v2, %v7984_v46  ;;  %v6696_v20 = vpack.i.bf16 %v2418_v61, %v2350_v47  ;;  %v764_v44 = vcombine.high %v8523_v26, %v11945_v16 }
 0x1b8   : > { %v6876_v48 = vpack.i.bf16 %v8528_v22, %v8531_v58  ;;  %v11973_v12 = vcombine.low %v8030_v23, %v8033_v38  ;;  %v6881_v63 = vpack.i.bf16 %v8552_v41, %v8548_v31  ;;  %v6701_v10 = vpack.i.bf16 %v1276_v15, %v832_v52  ;;  %v398_v58 = vld [vmem:[%s7632_s11] sm:$0xff] }
 0x1b9   : > { %v994_v60 = vcombine.high %v8537_v55, %v11945_v16  ;;  %v1208_v62 = vcombine.high %v8544_v40, %v11945_v16  ;;  %v11974_v47 = vcombine.low %v7789_v49, %v7792_v50  ;;  %v519_v23 = vcombine.high %v8563_v3, %v11945_v16 }
 0x1ba   : > { %v8573_v1 = vrot.slane %v11973_v12, %v7984_v46  ;;  %v765_v39 = vcombine.high %v8013_v54, %v11945_v16  ;;  %v11975_v49 = vcombine.low %v8173_v51, %v8189_v35  ;;  %v1209_v2 = vcombine.high %v8019_v32, %v11945_v16  ;;  %v11979_v35 = vld [vmem:[#allocation15_spill] sm:$0xff] }
 0x1bb   : > { %6697 = vrot.lane.b32.xlu1 %v6696_v20, %s7418_s16  ;;  %v8586_v61 = vrot.slane %v11974_v47, %v7984_v46  ;;  %6702 = vrot.lane.b32.xlu0 %v6701_v10, %s7421_s14  ;;  %v6706_v38 = vpack.i.bf16 %v1208_v62, %v764_v44  ;;  %v6721_v33 = vpack.i.bf16 %v994_v60, %v519_v23  ;;  %v11976_v20 = vld [vmem:[#allocation28_spill] sm:$0xff]  ;;  %v11977_v44 = vld [vmem:[#allocation29_spill] sm:$0xff] }
 0x1bc   : > { %v1062_v52 = vcombine.high %v8573_v1, %v11945_v16  ;;  %v8599_v50 = vrot.slane %v11975_v49, %v7984_v46  ;;  %v11978_v54 = vcombine.low %v11976_v20, %v11977_v44  ;;  %v833_v51 = vcombine.high %v11979_v35, %v11945_v16  ;;  %v11980_v47 = vld [vmem:[#allocation16_spill] sm:$0xff]  ;;  %v11984_v44 = vld [vmem:[#allocation34_spill] sm:$0xff]  ;;  %v11985_v35 = vld [vmem:[#allocation19_spill] sm:$0xff] }
 0x1bd   : > { %v587_v15 = vcombine.high %v8586_v61, %v11945_v16  ;;  %v6726_v60 = vpack.i.bf16 %v1209_v2, %v765_v39  ;;  %v1277_v23 = vcombine.high %v11980_v47, %v11945_v16  ;;  %v11982_v39 = vld [vmem:[#allocation32_spill] sm:$0xff]  ;;  %v11983_v2 = vld [vmem:[#allocation17_spill] sm:$0xff] }
 0x1be   : > { %v8611_v12 = vrot.slane %v11978_v54, %v7984_v46  ;;  %v2196_v62 = vcombine.high %v8599_v50, %v11945_v16  ;;  %v588_v20 = vcombine.high %v11983_v2, %v11945_v16  ;;  %v589_v54 = vcombine.high %v11984_v44, %v11945_v16  ;;  %v11991_v44 = vld [vmem:[#allocation23_spill] sm:$0xff] }
 0x1bf   : > { %6707 = vrot.lane.b32.xlu1 %v6706_v38, %s7421_s14  ;;  %6722 = vrot.lane.b32.xlu0 %v6721_v33, %s7421_s14  ;;  %v6711_v10 = vpack.i.bf16 %v1062_v52, %v587_v15  ;;  %v6716_v38 = vpack.i.bf16 %v1277_v23, %v833_v51  ;;  %v11981_v52 = vld [vmem:[#allocation18_spill] sm:$0xff]  ;;  %v1064_v15 = vcombine.high %v11982_v39, %v11945_v16  ;;  %v11987_v23 = vld [vmem:[#allocation20_spill] sm:$0xff] }
 0x1c0   : > { %v1744_v32 = vcombine.high %v8611_v12, %v11945_v16  ;;  %v1063_v33 = vcombine.high %v11981_v52, %v11945_v16  ;;  %v834_v51 = vcombine.high %v11985_v35, %v11945_v16 }
 0x1c2   : > { %v6741_v49 = vpack.i.bf16 %v2196_v62, %v1744_v32  ;;  %v11986_v62 = vld [vmem:[#allocation36_spill] sm:$0xff]  ;;  %v1278_v32 = vcombine.high %v11987_v23, %v11945_v16  ;;  %v11994_v23 = vld [vmem:[#allocation47_spill] sm:$0xff] }
 0x1c3   : > { %6712 = vrot.lane.b32.xlu1 %v6711_v10, %s7421_s14  ;;  %6727 = vrot.lane.b32.xlu0 %v6726_v60, %s7422_s20  ;;  %v6731_v10 = vpack.i.bf16 %v1063_v33, %v588_v20  ;;  %v6761_v60 = vpack.i.bf16 %v1064_v15, %v589_v54  ;;  %v835_v47 = vcombine.high %v11986_v62, %v11945_v16  ;;  %v11989_v33 = vld [vmem:[#allocation24_spill] sm:$0xff]  ;;  %v11990_v15 = vld [vmem:[#allocation22_spill] sm:$0xff] }
 0x1c4   : > { %v995_v39 = vcombine.high %v11989_v33, %v11945_v16  ;;  %v996_v20 = vcombine.high %v11990_v15, %v11945_v16  ;;  %v520_v54 = vcombine.high %v11991_v44, %v11945_v16  ;;  %v11993_v62 = vld [vmem:[#allocation26_spill] sm:$0xff] }
 0x1c5   : > { %v11998_v15 = vld [vmem:[#allocation30_spill] sm:$0xff] }
 0x1c6   : > { %v1210_v44 = vcombine.high %v11998_v15, %v11945_v16 }
 0x1c7   : > { %6717 = vrot.lane.b32.xlu1 %v6716_v38, %s7422_s20  ;;  %6742 = vrot.lane.b32.xlu0 %v6741_v49, %s7421_s14  ;;  %v11988_v38 = vld [vmem:[#allocation38_spill] sm:$0xff]  ;;  %v6736_v49 = vpack.i.bf16 %v1278_v32, %v834_v51  ;;  %v1482_v51 = vcombine.low %v8335_v56, %v8338_v42  ;;  %v11995_v32 = vld [vmem:[#allocation48_spill] sm:$0xff]  ;;  %v11999_v42 = vld [vmem:[#allocation45_spill] sm:$0xff] }
 0x1c8   : > { %v1279_v52 = vcombine.high %v11988_v38, %v11945_v16  ;;  %v11996_v38 = vcombine.low %v11994_v23, %v11995_v32  ;;  %v12000_v56 = vld [vmem:[#allocation46_spill] sm:$0xff]  ;;  %v12004_v32 = vld [vmem:[#allocation27_spill] sm:$0xff] }
 0x1ca   : > { %v6766_v2 = vpack.i.bf16 %v1279_v52, %v835_v47  ;;  %v766_v47 = vcombine.high %v11993_v62, %v11945_v16  ;;  %v8661_v52 = vrot.slane %v11996_v38, %v7984_v46  ;;  %v12003_v62 = vld [vmem:[#allocation50_spill] sm:$0xff]  ;;  %v1211_v38 = vcombine.high %v12004_v32, %v11945_v16 }
 0x1cb   : > { %6732 = vrot.lane.b32.xlu1 %v6731_v10, %s7422_s20  ;;  %6762 = vrot.lane.b32.xlu0 %v6761_v60, %s7423_s26  ;;  %v11992_v10 = vld [vmem:[#allocation21_spill] sm:$0xff]  ;;  %v6746_v60 = vpack.i.bf16 %v995_v39, %v520_v54  ;;  %v12001_v39 = vcombine.low %v11999_v42, %v12000_v56 }
 0x1cc   : > { %v521_v35 = vcombine.high %v11992_v10, %v11945_v16  ;;  %v12002_v10 = vld [vmem:[#allocation49_spill] sm:$0xff] }
 0x1cd   : > { %v8672_v54 = vrot.slane %v12001_v39, %v7984_v46  ;;  %v1926_v23 = vcombine.low %v12003_v62, %v12002_v10  ;;  %v1858_v62 = vcombine.low %v8356_v25, %v8344_v6 }
 0x1cf   : > { %6737 = vrot.lane.b32.xlu1 %v6736_v49, %s7423_s26  ;;  %6767 = vrot.lane.b32.xlu0 %v6766_v2, %s7424_s18  ;;  %v11997_v49 = vld [vmem:[#allocation25_spill] sm:$0xff]  ;;  %v6781_v2 = vpack.i.bf16 %v996_v20, %v521_v35  ;;  %v6751_v20 = vpack.i.bf16 %v1210_v44, %v766_v47  ;;  %v2128_v35 = vcombine.high %v8661_v52, %v11945_v16 }
 0x1d0   : > { %v767_v33 = vcombine.high %v11997_v49, %v11945_v16  ;;  %v12006_v49 = vld [vmem:[#allocation31_spill] sm:$0xff]  ;;  %v1676_v56 = vcombine.high %v8672_v54, %v11945_v16  ;;  %v8690_v39 = vrot.slane %v1926_v23, %v7984_v46  ;;  %v12007_v47 = vld [vmem:[#allocation33_spill] sm:$0xff] }
 0x1d1   : > { %v1065_v15 = vcombine.high %v12006_v49, %v11945_v16 }
 0x1d2   : > { %v6786_v42 = vpack.i.bf16 %v1211_v38, %v767_v33  ;;  %v6756_v44 = vpack.i.bf16 %v2128_v35, %v1676_v56  ;;  %v1958_v23 = vcombine.high %v8690_v39, %v11945_v16  ;;  %v12013_v35 = vld [vmem:[#allocation39_spill] sm:$0xff]  ;;  %v12016_v56 = vld [vmem:[#allocation41_spill] sm:$0xff] }
 0x1d3   : > { %6747 = vrot.lane.b32.xlu1 %v6746_v60, %s7422_s20  ;;  %6782 = vrot.lane.b32.xlu0 %v6781_v2, %s7423_s26  ;;  %v8682_v60 = vrot.slane %v1482_v51, %v7984_v46  ;;  %v590_v2 = vcombine.high %v12007_v47, %v11945_v16  ;;  %v1414_v51 = vcombine.low %v8377_v5, %v8381_v13  ;;  %v12010_v5 = vld [vmem:[#allocation57_spill] sm:$0xff] }
 0x1d4   : > { %v8710_v13 = vrot.slane %v1858_v62, %v7984_v46  ;;  %v12011_v6 = vpack.i.bf16 %v8364_v19, %v12010_v5  ;;  %v12018_v19 = vld [vmem:[#allocation35_spill] sm:$0xff]  ;;  %v12020_v62 = vld [vmem:[#allocation37_spill] sm:$0xff] }
 0x1d5   : > { %12005 = vst [vmem:[#allocation28_spill] sm:$0xff] %v8682_v60  ;;  %v1514_v33 = vcombine.high %v8682_v60, %v11945_v16  ;;  %v6801_v10 = vpack.i.bf16 %v1065_v15, %v590_v2  ;;  %v8706_v32 = vrot.slane %v1414_v51, %v7984_v46  ;;  %v997_v51 = vcombine.high %v12018_v19, %v11945_v16  ;;  %v12022_v5 = vld [vmem:[#allocation51_spill] sm:$0xff] }
 0x1d6   : > { %12009 = vst [vmem:[#allocation15_spill] sm:$0xff] %v8710_v13  ;;  %v1890_v15 = vcombine.high %v8710_v13, %v11945_v16  ;;  %v2427_v19 = vcombine.high %v8512_v53, %v11945_v16 }
 0x1d7   : > { %6752 = vrot.lane.b32.xlu1 %v6751_v20, %s7423_s26  ;;  %6787 = vrot.lane.b32.xlu0 %v6786_v42, %s7424_s18  ;;  %12008 = vst [vmem:[#allocation29_spill] sm:$0xff] %v8706_v32  ;;  %v6771_v38 = vpack.i.bf16 %v1958_v23, %v1514_v33  ;;  %v1446_v25 = vcombine.high %v8706_v32, %v11945_v16  ;;  %v12012_v20 = vld [vmem:[#allocation40_spill] sm:$0xff]  ;;  %v12015_v42 = vld [vmem:[#allocation42_spill] sm:$0xff] }
 0x1d8   : > { %v12014_v49 = vpack.i.bf16 %v12012_v20, %v12013_v35  ;;  %v12017_v47 = vpack.i.bf16 %v12015_v42, %v12016_v56  ;;  %v12019_v33 = vld [vmem:[#allocation58_spill] sm:$0xff]  ;;  %v522_v23 = vcombine.high %v12020_v62, %v11945_v16  ;;  %v1516_v35 = vcombine.high %v8432_v30, %v11945_v16 }
 0x1d9   : > { %v6791_v2 = vpack.i.bf16 %v1890_v15, %v1446_v25  ;;  %v12024_v25 = vld [vmem:[#allocation59_spill] sm:$0xff]  ;;  %v1960_v56 = vcombine.high %v8440_v57, %v11945_v16  ;;  %v8773_v57 = vrot.slane %v2326_v37, %v7984_v46  ;;  %v12035_v37 = vpack.i.bf16 %v12033_v34, %v12034_v9 }
 0x1da   : > { %v1892_v17 = vcombine.high %v12024_v25, %v11945_v16  ;;  %v6816_v15 = vpack.i.bf16 %v997_v51, %v522_v23  ;;  %v2359_v51 = vcombine.high %v8509_v27, %v11945_v16  ;;  %v1517_v23 = vcombine.high %v8479_v0, %v11945_v16 }
 0x1db   : > { %6757 = vrot.lane.b32.xlu1 %v6756_v44, %s7421_s14  ;;  %6802 = vrot.lane.b32.xlu0 %v6801_v10, %s7424_s18  ;;  %v8735_v44 = vpop.permute.xlu0 %6572  ;;  %v1448_v10 = vcombine.high %v12019_v33, %v11945_v16  ;;  %v6831_v30 = vpack.i.bf16 %v1960_v56, %v1516_v35  ;;  %12029 = vst [vmem:[#allocation18_spill] sm:$0xff] %v8773_v57  ;;  %v403_v35 = vld [vmem:[%s7632_s11 + $0x28] sm:$0xff]  ;;  %v405_v56 = vld [vmem:[%s7632_s11 + $0x38] sm:$0xff] }
 0x1dc   : > { %v6871_v53 = vpack.i.bf16 %v2427_v19, %v2359_v51  ;;  %v2358_v27 = vcombine.high %v8773_v57, %v11945_v16 }
 0x1dd   : > { %v6841_v42 = vpack.i.bf16 %v1892_v17, %v1448_v10 }
 0x1df   : > { %6772 = vrot.lane.b32.xlu1 %v6771_v38, %s7421_s14  ;;  %6807 = vrot.lane.b32.xlu0 %v12011_v6, %s7422_s20  ;;  %v12021_v38 = vld [vmem:[#allocation52_spill] sm:$0xff] }
 0x1e0   : > { %v12023_v6 = vpack.i.bf16 %v12021_v38, %v12022_v5  ;;  %v1961_v5 = vcombine.high %v8497_v24, %v11945_v16  ;;  %v1893_v24 = vcombine.high %v8454_v14, %v11945_v16  ;;  %v2540_v14 = vld [vmem:[%s11663_s3] sm:$0xff] }
 0x1e1   : > { %v8784_v10 = vpop.permute.xlu1 %6582 }
 0x1e2   : > { %v6856_v0 = vpack.i.bf16 %v1961_v5, %v1517_v23 }
 0x1e3   : > { %6777 = vrot.lane.b32.xlu1 %v12014_v49, %s7422_s20  ;;  %6812 = vrot.lane.b32.xlu0 %v12017_v47, %s7423_s26  ;;  %v8753_v49 = vpop.permute.xlu0 %6577  ;;  %v8763_v47 = vrot.slane %v2394_v18, %v7984_v46  ;;  %v12032_v18 = vpack.i.bf16 %v12030_v59, %v12031_v28 }
 0x1e5   : > { %12028 = vst [vmem:[#allocation16_spill] sm:$0xff] %v8763_v47  ;;  %v2426_v33 = vcombine.high %v8763_v47, %v11945_v16  ;;  %v8806_v25 = vpop.permute.xlu1 %6587 }
 0x1e7   : > { %6792 = vrot.lane.b32.xlu1 %v6791_v2, %s7421_s14  ;;  %6822 = vrot.lane.b32.xlu0 %v6821_v7, %s7422_s20  ;;  %v12026_v7 = vld [vmem:[#allocation53_spill] sm:$0xff]  ;;  %v6851_v38 = vpack.i.bf16 %v2426_v33, %v2358_v27 }
 0x1e8   : > { %v12027_v20 = vpack.i.bf16 %v12025_v21, %v12026_v7  ;;  %v399_v21 = vld [vmem:[%s7632_s11 + $0x8] sm:$0xff] }
 0x1ea   : > { %v8765_v2 = vpop.permute.xlu0 %6592 }
 0x1eb   : > { %6797 = vrot.lane.b32.xlu1 %v12023_v6, %s7422_s20  ;;  %6827 = vrot.lane.b32.xlu0 %v12027_v20, %s7423_s26  ;;  %v1449_v6 = vcombine.high %v8443_v29, %v11945_v16  ;;  %v8818_v29 = vpop.permute.xlu1 %6617  ;;  %v400_v16 = vld [vmem:[%s7632_s11 + $0x10] sm:$0xff] }
 0x1ed   : > { %v6861_v22 = vpack.i.bf16 %v1893_v24, %v1449_v6  ;;  %v6575_v6 = vunpack.i.h.bf16 %v8735_v44 }
 0x1ee   : > { %v8786_v62 = vpop.permute.xlu0 %6597 }
 0x1ef   : > { %6817 = vrot.lane.b32.xlu1 %v6816_v15, %s7424_s18  ;;  %6842 = vrot.lane.b32.xlu0 %v6841_v42, %s7423_s26  ;;  %v8833_v31 = vpop.permute.xlu1 %6622 }
 0x1f2   : > { %v8808_v17 = vpop.permute.xlu0 %6602 }
 0x1f3   : > { %6832 = vrot.lane.b32.xlu1 %v6831_v30, %s7423_s26  ;;  %6847 = vrot.lane.b32.xlu0 %v12032_v18, %s7424_s18  ;;  %v8843_v4 = vpop.permute.xlu1 %6632 }
 0x1f7   : > { %6837 = vrot.lane.b32.xlu1 %v12035_v37, %s7424_s18  ;;  %6872 = vrot.lane.b32.xlu0 %v6871_v53, %s7422_s20  ;;  %v8852_v15 = vpop.permute.xlu1 %6647 }
 0x1fb   : > { %6852 = vrot.lane.b32.xlu1 %v6851_v38, %s7421_s14  ;;  %6877 = vrot.lane.b32.xlu0 %v6876_v48, %s7423_s26  ;;  %v8820_v48 = vpop.permute.xlu0 %6607 }
 0x1ff   : > { %6857 = vrot.lane.b32.xlu1 %v6856_v0, %s7424_s18  ;;  %6882 = vrot.lane.b32.xlu0 %v6881_v63, %s7424_s18  ;;  %v8835_v41 = vpop.permute.xlu0 %6612  ;;  %v402_v63 = vld [vmem:[%s7632_s11 + $0x20] sm:$0xff]  ;;  %v6574_v0 = vunpack.i.l.bf16 %v8735_v44 }
 0x203   : > { %6862 = vrot.lane.b32.xlu1 %v6861_v22, %s7424_s18  ;;  %414 = vrot.lane.b32.xlu0 %v398_v58, %s7412_s8 }
 0x207   : > { %6867 = vrot.lane.b32.xlu1 %v6866_v43, %s7419_s13  ;;  %418 = vrot.lane.b32.xlu0 %v400_v16, %s7412_s8  ;;  %v401_v43 = vld [vmem:[%s7632_s11 + $0x18] sm:$0xff] }
 0x209   : > { %v8840_v7 = vpop.permute.xlu0 %6627 }
 0x20b   : > { %2543 = vperm.xlu1 %6886, %v2540_v14   ;;  %422 = vrot.lane.b32.xlu0 %v402_v63, %s7412_s8  ;;  %v6585_v14 = vunpack.i.h.bf16 %v8784_v10  ;;  %v6584_v63 = vunpack.i.l.bf16 %v8784_v10  ;;  %v6605_v10 = vunpack.i.h.bf16 %v8808_v17 }
 0x20f   : > { %416 = vrot.lane.b32.xlu1 %v399_v21, %s7412_s8  ;;  %426 = vrot.lane.b32.xlu0 %v404_v11, %s7412_s8  ;;  %v6590_v21 = vunpack.i.h.bf16 %v8806_v25 }
 0x211   : > { %v8848_v20 = vpop.permute.xlu0 %6637 }
 0x213   : > { %420 = vrot.lane.b32.xlu1 %v401_v43, %s7412_s8 }
 0x215   : > { %v8854_v42 = vpop.permute.xlu0 %6642 }
 0x217   : > { %424 = vrot.lane.b32.xlu1 %v403_v35, %s7412_s8  ;;  %v6589_v35 = vunpack.i.l.bf16 %v8806_v25 }
 0x219   : > { %v8858_v30 = vpop.permute.xlu1 %6652  ;;  %v8860_v19 = vpop.permute.xlu0 %6672 }
 0x21b   : > { %428 = vrot.lane.b32.xlu1 %v405_v56, %s7412_s8 }
 0x21d   : > { %v8863_v51 = vpop.permute.xlu1 %6657  ;;  %v8865_v59 = vpop.permute.xlu0 %6677 }
 0x221   : > { %v8867_v28 = vpop.permute.xlu1 %6662  ;;  %v8871_v33 = vpop.permute.xlu0 %6687 }
 0x225   : > { %v8869_v18 = vpop.permute.xlu1 %6667 }
 0x229   : > { %v8873_v53 = vpop.permute.xlu1 %6682  ;;  %v8875_v34 = vpop.permute.xlu0 %6692 }
 0x22d   : > { %v8877_v9 = vpop.permute.xlu1 %6697  ;;  %v6703_v37 = vpop.permute.xlu0 %6702 }
 0x22e   : > { %12036 = vst [vmem:[#allocation32_spill] sm:$0xff] %v8877_v9  ;;  %v6705_v58 = vunpack.i.h.bf16 %v6703_v37  ;;  %v6704_v11 = vunpack.i.l.bf16 %v6703_v37  ;;  %v6604_v37 = vunpack.i.l.bf16 %v8808_v17  ;;  %v6609_v9 = vunpack.i.l.bf16 %v8820_v48 }
 0x230   : > { %v1343_v44 = vsel %vm647_vm3, %v8503_v45, %v6705_v58  ;;  %v899_v24 = vsel %vm647_vm3, %v8486_v8, %v6704_v11  ;;  %v6610_v58 = vunpack.i.h.bf16 %v8820_v48 }
 0x231   : > { %v8879_v27 = vpop.permute.xlu1 %6707  ;;  %v8881_v23 = vpop.permute.xlu0 %6722  ;;  %v900_v13 = vsel %vm649_vm4, %v899_v24, %v6574_v0  ;;  %v1344_v32 = vsel %vm649_vm4, %v1343_v44, %v6575_v6  ;;  %v6629_v6 = vunpack.i.l.bf16 %v8840_v7  ;;  %v6639_v44 = vunpack.i.l.bf16 %v8848_v20 }
 0x235   : > { %v6713_v38 = vpop.permute.xlu1 %6712  ;;  %v8883_v5 = vpop.permute.xlu0 %6727 }
 0x236   : > { %v6715_v22 = vunpack.i.h.bf16 %v6713_v38  ;;  %v6714_v46 = vunpack.i.l.bf16 %v6713_v38 }
 0x238   : > { %v661_v57 = vsel %vm647_vm3, %v8586_v61, %v6714_v46  ;;  %v6710_v61 = vunpack.i.h.bf16 %v8879_v27 }
 0x239   : > { %v6718_v16 = vpop.permute.xlu1 %6717  ;;  %v8892_v43 = vpop.permute.xlu0 %6742 }
 0x23a   : > { %v6719_v47 = vunpack.i.l.bf16 %v6718_v16  ;;  %v6720_v25 = vunpack.i.h.bf16 %v6718_v16  ;;  %v1129_v16 = vsel %vm647_vm3, %v8573_v1, %v6715_v22  ;;  %v6655_v1 = vunpack.i.h.bf16 %v8858_v30 }
 0x23c   : > { %v901_v48 = vsel %vm651_vm5, %v900_v13, %v6719_v47  ;;  %v1345_v38 = vsel %vm651_vm5, %v1344_v32, %v6720_v25  ;;  %v6709_v13 = vunpack.i.l.bf16 %v8879_v27  ;;  %v662_v47 = vsel %vm649_vm4, %v661_v57, %v6584_v63 }
 0x23d   : > { %v6733_v56 = vpop.permute.xlu1 %6732  ;;  %v8909_v36 = vpop.permute.xlu0 %6762  ;;  %v902_v25 = vsel %vm653_vm6, %v901_v48, %v6589_v35  ;;  %v6654_v63 = vunpack.i.l.bf16 %v8858_v30  ;;  %v6725_v35 = vunpack.i.h.bf16 %v8881_v23 }
 0x23e   : > { %v6734_v45 = vunpack.i.l.bf16 %v6733_v56  ;;  %v6735_v11 = vunpack.i.h.bf16 %v6733_v56  ;;  %v1130_v56 = vsel %vm649_vm4, %v1129_v16, %v6585_v14  ;;  %v6674_v14 = vunpack.i.l.bf16 %v8860_v19 }
 0x23f   : > { %v6764_v48 = vunpack.i.l.bf16 %v8909_v36 }
 0x240   : > { %v663_v22 = vsel %vm651_vm5, %v662_v47, %v6734_v45  ;;  %v1131_v46 = vsel %vm651_vm5, %v1130_v56, %v6735_v11  ;;  %v6675_v45 = vunpack.i.h.bf16 %v8860_v19  ;;  %v6724_v11 = vunpack.i.l.bf16 %v8881_v23 }
 0x241   : > { %v6738_v17 = vpop.permute.xlu1 %6737  ;;  %v6768_v8 = vpop.permute.xlu0 %6767  ;;  %v1132_v56 = vsel %vm653_vm6, %v1131_v46, %v6605_v10  ;;  %v6660_v23 = vunpack.i.h.bf16 %v8863_v51 }
 0x242   : > { %v6740_v60 = vunpack.i.h.bf16 %v6738_v17  ;;  %v6739_v0 = vunpack.i.l.bf16 %v6738_v17  ;;  %v1346_v17 = vsel %vm653_vm6, %v1345_v38, %v6590_v21  ;;  %v1336_v21 = vsel %vm647_vm3, %v8544_v40, %v6710_v61 }
 0x243   : > { %v892_v38 = vsel %vm647_vm3, %v8523_v26, %v6709_v13  ;;  %v6729_v40 = vunpack.i.l.bf16 %v8883_v5  ;;  %v6765_v61 = vunpack.i.h.bf16 %v8909_v36  ;;  %v6770_v26 = vunpack.i.h.bf16 %v6768_v8 }
 0x244   : > { %v903_v27 = vsel %vm655_vm7, %v902_v25, %v6739_v0  ;;  %v1347_v57 = vsel %vm655_vm7, %v1346_v17, %v6740_v60  ;;  %v664_v60 = vsel %vm653_vm6, %v663_v22, %v6604_v37  ;;  %v6769_v13 = vunpack.i.l.bf16 %v6768_v8 }
 0x245   : > { %v8936_v32 = vpop.permute.xlu1 %6747  ;;  %v8942_v24 = vpop.permute.xlu0 %6782  ;;  %v904_v47 = vsel %vm657_vm8, %v903_v27, %v6609_v9  ;;  %v1348_v25 = vsel %vm657_vm8, %v1347_v57, %v6610_v58  ;;  %v6659_v37 = vunpack.i.l.bf16 %v8863_v51  ;;  %v6680_v22 = vunpack.i.h.bf16 %v8865_v59 }
 0x246   : > { %v665_v17 = vsel %vm655_vm7, %v664_v60, %v6764_v48  ;;  %v1122_v9 = vsel %vm647_vm3, %v8537_v55, %v6725_v35  ;;  %v905_v58 = vsel %vm659_vm9, %v904_v47, %v6769_v13  ;;  %v1133_v46 = vsel %vm655_vm7, %v1132_v56, %v6765_v61 }
 0x247   : > { %v1349_v36 = vsel %vm659_vm9, %v1348_v25, %v6770_v26  ;;  %v648_v8 = vsel %vm647_vm3, %v8563_v3, %v6724_v11  ;;  %v12037_v27 = vunpack.i.l.bf16 %v8753_v49  ;;  %v12038_v60 = vunpack.i.h.bf16 %v8753_v49 }
 0x248   : > { %v6730_v55 = vunpack.i.h.bf16 %v8883_v5  ;;  %v12039_v25 = vunpack.i.l.bf16 %v8843_v4  ;;  %v6750_v3 = vunpack.i.h.bf16 %v8936_v32  ;;  %v12040_v11 = vunpack.i.h.bf16 %v8843_v4 }
 0x249   : > { %v6753_v16 = vpop.permute.xlu1 %6752  ;;  %v8959_v0 = vpop.permute.xlu0 %6787  ;;  %v893_v57 = vsel %vm649_vm4, %v892_v38, %v12037_v27  ;;  %v1337_v48 = vsel %vm649_vm4, %v1336_v21, %v12038_v60  ;;  %v2503_v49 = vrot.slane %v905_v58, 4  ;;  %v2509_v26 = vrot.slane %v1349_v36, 4 }
 0x24a   : > { %v894_v47 = vsel %vm651_vm5, %v893_v57, %v6729_v40  ;;  %v666_v61 = vsel %vm657_vm8, %v665_v17, %v12039_v25  ;;  %v1134_v38 = vsel %vm657_vm8, %v1133_v46, %v12040_v11  ;;  %v6749_v21 = vunpack.i.l.bf16 %v8936_v32 }
 0x24b   : > { %v6754_v5 = vunpack.i.l.bf16 %v6753_v16  ;;  %v1338_v60 = vsel %vm651_vm5, %v1337_v48, %v6730_v55  ;;  %v6755_v17 = vunpack.i.h.bf16 %v6753_v16  ;;  %v6679_v58 = vunpack.i.l.bf16 %v8865_v59 }
 0x24c   : > { %v6665_v32 = vunpack.i.h.bf16 %v8867_v28  ;;  %v6664_v36 = vunpack.i.l.bf16 %v8867_v28  ;;  %v12042_v16 = vunpack.i.h.bf16 %v8765_v2 }
 0x24d   : > { %v8972_v10 = vpop.permute.xlu1 %6757  ;;  %v6803_v35 = vpop.permute.xlu0 %6802 }
 0x24e   : > { %v6805_v13 = vunpack.i.h.bf16 %v6803_v35  ;;  %v6804_v56 = vunpack.i.l.bf16 %v6803_v35  ;;  %v1123_v55 = vsel %vm649_vm4, %v1122_v9, %v12042_v16  ;;  %v6670_v9 = vunpack.i.h.bf16 %v8869_v18 }
 0x24f   : > { %v12047_v16 = vunpack.i.l.bf16 %v8833_v31 }
 0x250   : > { %v667_v40 = vsel %vm659_vm9, %v666_v61, %v6804_v56  ;;  %v1135_v57 = vsel %vm659_vm9, %v1134_v38, %v6805_v13  ;;  %v12041_v13 = vunpack.i.l.bf16 %v8765_v2  ;;  %v12043_v61 = vunpack.i.l.bf16 %v8786_v62 }
 0x251   : > { %v8995_v27 = vpop.permute.xlu1 %6772  ;;  %v9000_v35 = vpop.permute.xlu0 %6807  ;;  %v2526_v4 = vsel %vm2524_vm10, %v667_v40, %v2503_v49  ;;  %v2528_v46 = vsel %vm2524_vm10, %v1135_v57, %v2509_v26  ;;  %v1124_v49 = vsel %vm651_vm5, %v1123_v55, %v6750_v3  ;;  %v12044_v40 = vunpack.i.h.bf16 %v8786_v62 }
 0x252   : > { %v2534_v25 = vpack.c.bf16 %v2528_v46, %v2526_v4  ;;  %v650_v48 = vsel %vm649_vm4, %v648_v8, %v12041_v13  ;;  %v895_v11 = vsel %vm653_vm6, %v894_v47, %v12043_v61  ;;  %v6689_v2 = vunpack.i.l.bf16 %v8871_v33 }
 0x253   : > { %v652_v38 = vsel %vm651_vm5, %v650_v48, %v6749_v21  ;;  %v896_v26 = vsel %vm655_vm7, %v895_v11, %v6754_v5  ;;  %v1339_v57 = vsel %vm653_vm6, %v1338_v60, %v12044_v40  ;;  %v6745_v4 = vunpack.i.h.bf16 %v8892_v43 }
 0x254   : > { %2557 = vmatprep.subr.bf16.mxu0 %v2534_v25  ;;  %v1340_v47 = vsel %vm655_vm7, %v1339_v57, %v6755_v17  ;;  %v6669_v3 = vunpack.i.l.bf16 %v8869_v18  ;;  %v6685_v21 = vunpack.i.h.bf16 %v8873_v53  ;;  %v6744_v62 = vunpack.i.l.bf16 %v8892_v43 }
 0x255   : > { %v6778_v8 = vpop.permute.xlu1 %6777  ;;  %v9027_v46 = vpop.permute.xlu0 %6812  ;;  %v6785_v5 = vunpack.i.h.bf16 %v8942_v24  ;;  %v12045_v60 = vunpack.i.l.bf16 %v8818_v29  ;;  %v12046_v13 = vunpack.i.h.bf16 %v8818_v29  ;;  %v6759_v17 = vunpack.i.l.bf16 %v8972_v10 }
 0x256   : > { %v897_v55 = vsel %vm657_vm8, %v896_v26, %v12047_v16  ;;  %v6784_v61 = vunpack.i.l.bf16 %v8942_v24  ;;  %v6789_v43 = vunpack.i.l.bf16 %v8959_v0  ;;  %v6760_v11 = vunpack.i.h.bf16 %v8972_v10 }
 0x257   : > { %v654_v25 = vsel %vm653_vm6, %v652_v38, %v12045_v60  ;;  %v1125_v48 = vsel %vm653_vm6, %v1124_v49, %v12046_v13  ;;  %v12048_v57 = vunpack.i.h.bf16 %v8833_v31  ;;  %v6684_v29 = vunpack.i.l.bf16 %v8873_v53 }
 0x258   : > { %v6695_v49 = vunpack.i.h.bf16 %v8875_v34  ;;  %v2263_v60 = vsel %vm647_vm3, %v8599_v50, %v6745_v4  ;;  %v6790_v26 = vunpack.i.h.bf16 %v8959_v0  ;;  %v1811_v24 = vsel %vm647_vm3, %v8611_v12, %v6744_v62 }
 0x259   : > { %v6793_v40 = vpop.permute.xlu1 %6792  ;;  %v1341_v38 = vsel %vm657_vm8, %v1340_v47, %v12048_v57  ;;  %v9054_v13 = vpop.permute.xlu0 %6822  ;;  %v656_v10 = vsel %vm655_vm7, %v654_v25, %v6784_v61  ;;  %v1126_v31 = vsel %vm655_vm7, %v1125_v48, %v6785_v5  ;;  %v898_v47 = vsel %vm659_vm9, %v897_v55, %v6789_v43 }
 0x25a   : > { %v1804_v16 = vsel %vm647_vm3, %v8672_v54, %v6759_v17  ;;  %v6775_v57 = vunpack.i.h.bf16 %v8995_v27  ;;  %v6774_v50 = vunpack.i.l.bf16 %v8995_v27  ;;  %v1342_v0 = vsel %vm659_vm9, %v1341_v38, %v6790_v26 }
 0x25b   : > { %v2256_v4 = vsel %vm647_vm3, %v8661_v52, %v6760_v11  ;;  %v6780_v56 = vunpack.i.h.bf16 %v6778_v8  ;;  %v6779_v12 = vunpack.i.l.bf16 %v6778_v8  ;;  %v6794_v62 = vunpack.i.l.bf16 %v6793_v40 }
 0x25c   : > { %v12049_v5 = vunpack.i.l.bf16 %v8835_v41  ;;  %v12050_v55 = vunpack.i.h.bf16 %v8835_v41  ;;  %v12051_v27 = vunpack.i.l.bf16 %v8852_v15  ;;  %v12052_v52 = vunpack.i.h.bf16 %v8852_v15 }
 0x25d   : > { %v6798_v25 = vpop.permute.xlu1 %6797  ;;  %v9074_v17 = vpop.permute.xlu0 %6827  ;;  %v6795_v43 = vunpack.i.h.bf16 %v6793_v40  ;;  %v1805_v11 = vsel %vm649_vm4, %v1804_v16, %v6629_v6  ;;  %v2502_v38 = vrot.slane %v898_v47, 4  ;;  %v2508_v26 = vrot.slane %v1342_v0, 4  ;;  %v12055_v47 = vld [vmem:[#allocation29_spill] sm:$0xff] }
 0x25e   : > { %v1812_v48 = vsel %vm649_vm4, %v1811_v24, %v12049_v5  ;;  %v2264_v54 = vsel %vm649_vm4, %v2263_v60, %v12050_v55  ;;  %v658_v61 = vsel %vm657_vm8, %v656_v10, %v12051_v27  ;;  %v1127_v8 = vsel %vm657_vm8, %v1126_v31, %v12052_v52  ;;  %v12053_v60 = vld [vmem:[#allocation28_spill] sm:$0xff] }
 0x25f   : > { %v2025_v41 = vsel %vm647_vm3, %v8690_v39, %v6775_v57  ;;  %v1581_v24 = vsel %vm647_vm3, %v12053_v60, %v6774_v50  ;;  %v6810_v5 = vunpack.i.h.bf16 %v9000_v35  ;;  %v12054_v10 = vunpack.i.h.bf16 %v8840_v7 }
 0x260   : > { %v6809_v40 = vunpack.i.l.bf16 %v9000_v35  ;;  %v1813_v31 = vsel %vm651_vm5, %v1812_v48, %v6779_v12  ;;  %v2265_v6 = vsel %vm651_vm5, %v2264_v54, %v6780_v56  ;;  %v1574_v16 = vsel %vm647_vm3, %v12055_v47, %v6794_v62  ;;  %v12057_v12 = vld [vmem:[#allocation15_spill] sm:$0xff]  ;;  %v12060_v47 = vld [vmem:[#allocation32_spill] sm:$0xff] }
 0x261   : > { %v2257_v15 = vsel %vm649_vm4, %v2256_v4, %v12054_v10  ;;  %v6818_v0 = vpop.permute.xlu1 %6817  ;;  %v6800_v39 = vunpack.i.h.bf16 %v6798_v25  ;;  %v6799_v57 = vunpack.i.l.bf16 %v6798_v25  ;;  %v9098_v27 = vpop.permute.xlu0 %6842  ;;  %v1582_v7 = vsel %vm649_vm4, %v1581_v24, %v6639_v44 }
 0x262   : > { %v6820_v55 = vunpack.i.h.bf16 %v6818_v0  ;;  %v6819_v50 = vunpack.i.l.bf16 %v6818_v0  ;;  %v12056_v35 = vunpack.i.h.bf16 %v8848_v20  ;;  %v6815_v56 = vunpack.i.h.bf16 %v9027_v46 }
 0x263   : > { %v2018_v62 = vsel %vm647_vm3, %v12057_v12, %v6795_v43  ;;  %v6814_v48 = vunpack.i.l.bf16 %v9027_v46  ;;  %v12058_v25 = vunpack.i.l.bf16 %v8854_v42  ;;  %v12059_v44 = vunpack.i.h.bf16 %v8854_v42 }
 0x264   : > { %v2026_v4 = vsel %vm649_vm4, %v2025_v41, %v12056_v35  ;;  %v660_v52 = vsel %vm659_vm9, %v658_v61, %v6819_v50  ;;  %v1128_v60 = vsel %vm659_vm9, %v1127_v8, %v6820_v55  ;;  %v1575_v41 = vsel %vm649_vm4, %v1574_v16, %v6654_v63 }
 0x265   : > { %v1814_v54 = vsel %vm653_vm6, %v1813_v31, %v12058_v25  ;;  %v2266_v20 = vsel %vm653_vm6, %v2265_v6, %v12059_v44  ;;  %v6833_v24 = vpop.permute.xlu1 %6832  ;;  %v2525_v43 = vsel %vm2524_vm10, %v660_v52, %v2502_v38  ;;  %v2527_v46 = vsel %vm2524_vm10, %v1128_v60, %v2508_v26  ;;  %v9128_v42 = vpop.permute.xlu0 %6847  ;;  %v12061_v44 = vld [vmem:[#allocation16_spill] sm:$0xff] }
 0x266   : > { %v2019_v10 = vsel %vm649_vm4, %v2018_v62, %v6655_v1  ;;  %v1806_v61 = vsel %vm651_vm5, %v1805_v11, %v6799_v57  ;;  %v2258_v8 = vsel %vm651_vm5, %v2257_v15, %v6800_v39  ;;  %v2533_v31 = vpack.c.bf16 %v2527_v46, %v2525_v43 }
 0x267   : > { %v6694_v6 = vunpack.i.l.bf16 %v8875_v34  ;;  %v6700_v63 = vunpack.i.h.bf16 %v12060_v47  ;;  %v6825_v16 = vunpack.i.h.bf16 %v9054_v13  ;;  %v6824_v38 = vunpack.i.l.bf16 %v9054_v13 }
 0x268   : > { %v2027_v26 = vsel %vm651_vm5, %v2026_v4, %v6810_v5  ;;  %v1583_v30 = vsel %vm651_vm5, %v1582_v7, %v6809_v40  ;;  %v1815_v1 = vsel %vm655_vm7, %v1814_v54, %v6814_v48  ;;  %v2267_v11 = vsel %vm655_vm7, %v2266_v20, %v6815_v56  ;;  %2558 = vmatpush1.bf16.msra.mxu0 %v2533_v31 }
 0x269   : > { %v2020_v15 = vsel %vm651_vm5, %v2019_v10, %v6825_v16  ;;  %v1576_v0 = vsel %vm651_vm5, %v1575_v41, %v6824_v38  ;;  %v1807_v39 = vsel %vm653_vm6, %v1806_v61, %v6659_v37  ;;  %v2259_v13 = vsel %vm653_vm6, %v2258_v8, %v6660_v23  ;;  %v6838_v5 = vpop.permute.xlu1 %6837  ;;  %v6873_v7 = vpop.permute.xlu0 %6872  ;;  %v12062_v41 = vld [vmem:[#allocation18_spill] sm:$0xff] }
 0x26a   : > { %v6830_v40 = vunpack.i.h.bf16 %v9074_v17  ;;  %v6829_v57 = vunpack.i.l.bf16 %v9074_v17  ;;  %v6835_v55 = vunpack.i.h.bf16 %v6833_v24  ;;  %v6834_v50 = vunpack.i.l.bf16 %v6833_v24 }
 0x26b   : > { %v1584_v35 = vsel %vm653_vm6, %v1583_v30, %v6664_v36  ;;  %v2028_v37 = vsel %vm653_vm6, %v2027_v26, %v6665_v32  ;;  %v1816_v51 = vsel %vm657_vm8, %v1815_v1, %v6669_v3  ;;  %v2268_v23 = vsel %vm657_vm8, %v2267_v11, %v6670_v9 }
 0x26c   : > { %v2260_v17 = vsel %vm655_vm7, %v2259_v13, %v6830_v40  ;;  %v1808_v4 = vsel %vm655_vm7, %v1807_v39, %v6829_v57  ;;  %v6840_v56 = vunpack.i.h.bf16 %v6838_v5  ;;  %v6839_v12 = vunpack.i.l.bf16 %v6838_v5 }
 0x26d   : > { %v6845_v36 = vunpack.i.h.bf16 %v9098_v27  ;;  %v6844_v28 = vunpack.i.l.bf16 %v9098_v27  ;;  %v1577_v32 = vsel %vm653_vm6, %v1576_v0, %v6674_v14  ;;  %v2021_v18 = vsel %vm653_vm6, %v2020_v15, %v6675_v45  ;;  %v6853_v3 = vpop.permute.xlu1 %6852  ;;  %v6878_v54 = vpop.permute.xlu0 %6877 }
 0x26e   : > { %v1585_v9 = vsel %vm655_vm7, %v1584_v35, %v6834_v50  ;;  %v2029_v62 = vsel %vm655_vm7, %v2028_v37, %v6835_v55  ;;  %v6855_v48 = vunpack.i.h.bf16 %v6853_v3  ;;  %v6854_v25 = vunpack.i.l.bf16 %v6853_v3 }
 0x26f   : > { %v6850_v52 = vunpack.i.h.bf16 %v9128_v42  ;;  %v6849_v27 = vunpack.i.l.bf16 %v9128_v42  ;;  %v1809_v14 = vsel %vm657_vm8, %v1808_v4, %v6679_v58  ;;  %v2261_v19 = vsel %vm657_vm8, %v2260_v17, %v6680_v22 }
 0x270   : > { %v1817_v45 = vsel %vm659_vm9, %v1816_v51, %v6839_v12  ;;  %v2269_v60 = vsel %vm659_vm9, %v2268_v23, %v6840_v56  ;;  %v2493_v20 = vsel %vm647_vm3, %v12061_v44, %v6855_v48  ;;  %v2486_v24 = vsel %vm647_vm3, %v12062_v41, %v6854_v25 }
 0x271   : > { %v1578_v43 = vsel %vm655_vm7, %v1577_v32, %v6844_v28  ;;  %v2022_v46 = vsel %vm655_vm7, %v2021_v18, %v6845_v36  ;;  %v6858_v10 = vpop.permute.xlu1 %6857  ;;  %v1586_v59 = vsel %vm657_vm8, %v1585_v9, %v6684_v29  ;;  %v2030_v22 = vsel %vm657_vm8, %v2029_v62, %v6685_v21  ;;  %v6883_v31 = vpop.permute.xlu0 %6882 }
 0x272   : > { %v2494_v58 = vsel %vm649_vm4, %v2493_v20, %v6695_v49  ;;  %v2487_v61 = vsel %vm649_vm4, %v2486_v24, %v6694_v6  ;;  %v6860_v8 = vunpack.i.h.bf16 %v6858_v10  ;;  %v6859_v42 = vunpack.i.l.bf16 %v6858_v10 }
 0x273   : > { %v2515_v16 = vrot.slane %v1817_v45, 4  ;;  %v2521_v38 = vrot.slane %v2269_v60, 4  ;;  %v6875_v26 = vunpack.i.h.bf16 %v6873_v7  ;;  %v6874_v30 = vunpack.i.l.bf16 %v6873_v7  ;;  %v2539_v60 = vld [vmem:[%s11662_s2] sm:$0xf] }
 0x274   : > { %v1810_v1 = vsel %vm659_vm9, %v1809_v14, %v6849_v27  ;;  %v2262_v29 = vsel %vm659_vm9, %v2261_v19, %v6850_v52  ;;  %v1587_v53 = vsel %vm659_vm9, %v1586_v59, %v6859_v42  ;;  %v2031_v21 = vsel %vm659_vm9, %v2030_v22, %v6860_v8  ;;  %v12064_v59 = vld [vmem:[#allocation13_spill] sm:$0xff] }
 0x275   : > { %v2488_v34 = vsel %vm651_vm5, %v2487_v61, %v6874_v30  ;;  %v2495_v49 = vsel %vm651_vm5, %v2494_v58, %v6875_v26  ;;  %v6863_v6 = vpop.permute.xlu1 %6862  ;;  %v2530_v11 = vsel %vm2524_vm10, %v1587_v53, %v2515_v16  ;;  %v2532_v15 = vsel %vm2524_vm10, %v2031_v21, %v2521_v38  ;;  %v415_v40 = vpop.permute.xlu0 %414 }
 0x276   : > { %v6699_v0 = vunpack.i.l.bf16 %v12060_v47  ;;  %v6865_v39 = vunpack.i.h.bf16 %v6863_v6  ;;  %v6864_v13 = vunpack.i.l.bf16 %v6863_v6  ;;  %v2536_v5 = vpack.c.bf16 %v2532_v15, %v2530_v11  ;;  %439 = vst.msk [vmem:[#allocation3 + $0x61] sm:$0xff] %vm365_vm2, %v415_v40 }
 0x277   : > { %v2514_v57 = vrot.slane %v1810_v1, 4  ;;  %v2520_v55 = vrot.slane %v2262_v29, 4  ;;  %v1579_v50 = vsel %vm657_vm8, %v1578_v43, %v6689_v2  ;;  %v12063_v7 = vunpack.i.h.bf16 %v8871_v33 }
 0x278   : > { %v2489_v37 = vsel %vm653_vm6, %v2488_v34, %v6699_v0  ;;  %v2496_v51 = vsel %vm653_vm6, %v2495_v49, %v6700_v63  ;;  %2559 = vmatprep.subr.bf16.mxu0 %v2536_v5  ;;  %v1580_v23 = vsel %vm659_vm9, %v1579_v50, %v6864_v13  ;;  %v6880_v4 = vunpack.i.h.bf16 %v6878_v54 }
 0x279   : > { %v2023_v35 = vsel %vm657_vm8, %v2022_v46, %v12063_v7  ;;  %v6879_v56 = vunpack.i.l.bf16 %v6878_v54  ;;  %v6868_v2 = vpop.permute.xlu1 %6867  ;;  %v2529_v33 = vsel %vm2524_vm10, %v1580_v23, %v2514_v57  ;;  %v419_v18 = vpop.permute.xlu0 %418  ;;  %v6885_v3 = vunpack.i.h.bf16 %v6883_v31 }
 0x27a   : > { %v2024_v17 = vsel %vm659_vm9, %v2023_v35, %v6865_v39  ;;  %v6870_v36 = vunpack.i.h.bf16 %v6868_v2  ;;  %v6869_v28 = vunpack.i.l.bf16 %v6868_v2  ;;  %v2497_v63 = vsel %vm655_vm7, %v2496_v51, %v6880_v4  ;;  %441 = vst.msk [vmem:[#allocation3 + $0x79] sm:$0xff] %vm365_vm2, %v419_v18 }
 0x27b   : > { %v2531_v12 = vsel %vm2524_vm10, %v2024_v17, %v2520_v55  ;;  %v2490_v47 = vsel %vm655_vm7, %v2489_v37, %v6879_v56  ;;  %v6884_v9 = vunpack.i.l.bf16 %v6883_v31 }
 0x27c   : > { %v2535_v32 = vpack.c.bf16 %v2531_v12, %v2529_v33  ;;  %v2498_v62 = vsel %vm657_vm8, %v2497_v63, %v6870_v36  ;;  %v2491_v48 = vsel %vm657_vm8, %v2490_v47, %v6869_v28 }
 0x27d   : > { %v2499_v25 = vsel %vm659_vm9, %v2498_v62, %v6885_v3  ;;  %v2492_v54 = vsel %vm659_vm9, %v2491_v48, %v6884_v9  ;;  %v423_v14 = vpop.permute.xlu0 %422  ;;  %v9229_v19 = vld [vmem:[#allocation3 + $0x60] sm:$0xff] }
 0x27e   : > { %2560 = vmatpush1.bf16.msra.mxu0 %v2535_v32  ;;  %v2538_v52 = vpack.c.bf16 %v2499_v25, %v2499_v25  ;;  %v2537_v27 = vpack.c.bf16 %v2492_v54, %v2492_v54  ;;  %443 = vst.msk [vmem:[#allocation3 + $0x91] sm:$0xff] %vm365_vm2, %v423_v14  ;;  %3226 = vrot.lane.b32.xlu1 %v9229_v19, %s7414_s7 }
 0x280   : > { %6492 = vmatprep.subr.msk.bf16.mxu0 %vm2550_vm11, %v2538_v52  ;;  %v2552_v45 = vsel %vm2550_vm11, %v2537_v27, 0 }
 0x281   : > { %v427_v44 = vpop.permute.xlu0 %426  ;;  %v9237_v20 = vld [vmem:[#allocation3 + $0x78] sm:$0xff] }
 0x282   : > { %2562 = vmatpush1.bf16.msra.mxu0 %v2552_v45  ;;  %445 = vst.msk [vmem:[#allocation3 + $0xa9] sm:$0xff] %vm365_vm2, %v427_v44  ;;  %3230 = vrot.lane.b32.xlu1 %v9237_v20, %s7414_s7 }
 0x285   : > { %6493 = vmatmul.mubr.msk.bf16.vlgmr.msra.gmra.mrb[0].mxu0 %vm2546_vm12, %v2539_v60  ;;  %v9242_v41 = vld [vmem:[#allocation3 + $0x90] sm:$0xff] }
 0x286   : > { %3234 = vrot.lane.b32.xlu1 %v9242_v41, %s7414_s7  ;;  %v2884_v24 = vcombine.low %v9229_v19, %v9242_v41  ;;  %v2885_v43 = vcombine.high %v9229_v19, %v9242_v41 }
 0x288   : > { %v9255_v22 = vrot.slane %v2884_v24, %v12064_v59  ;;  %v9258_v58 = vrot.slane %v2885_v43, %v12064_v59 }
 0x289   : > { %v9252_v10 = vld [vmem:[#allocation3 + $0xa8] sm:$0xff] }
 0x28a   : > { %v9250_v46 = vpop.permute.xlu1 %2543  ;;  %3238 = vrot.lane.b32.xlu1 %v9252_v10, %s7414_s7  ;;  %v2900_v61 = vcombine.low %v9237_v20, %v9252_v10  ;;  %v2901_v8 = vcombine.high %v9237_v20, %v9252_v10 }
 0x28c   : > { %v9267_v42 = vrot.slane %v2900_v61, %v12064_v59  ;;  %v9270_v31 = vrot.slane %v2901_v8, %v12064_v59 }
 0x28e   : > { %v417_v16 = vpop.permute.xlu1 %416 }
 0x28f   : > { %440 = vst.msk [vmem:[#allocation3 + $0x69] sm:$0xff] %vm365_vm2, %v417_v16 }
 0x292   : > { %v421_v29 = vpop.permute.xlu1 %420 }
 0x293   : > { %442 = vst.msk [vmem:[#allocation3 + $0x81] sm:$0xff] %vm365_vm2, %v421_v29  ;;  %v9382_v29 = vld [vmem:[#allocation3 + $0x79] sm:$0xff] }
 0x296   : > { %v425_v53 = vpop.permute.xlu1 %424  ;;  %v2845_v21 = vld [vmem:[#allocation3 + $0x68] sm:$0xff] }
 0x297   : > { %444 = vst.msk [vmem:[#allocation3 + $0x99] sm:$0xff] %vm365_vm2, %v425_v53  ;;  %3228 = vrot.lane.b32.xlu0 %v2845_v21, %s7414_s7  ;;  %v3999_v11 = vld [vmem:[#allocation3 + $0x69] sm:$0xff] }
 0x298   : > { %v9288_v40 = vld [vmem:[#allocation3 + $0x6a] sm:$0xff] }
 0x29a   : > { %v429_v34 = vpop.permute.xlu1 %428  ;;  %v2847_v49 = vld [vmem:[#allocation3 + $0x80] sm:$0xff] }
 0x29b   : > { %446 = vst.msk [vmem:[#allocation3 + $0xb1] sm:$0xff] %vm365_vm2, %v429_v34  ;;  %3232 = vrot.lane.b32.xlu0 %v2847_v49, %s7414_s7  ;;  %3622 = vrot.lane.b32.xlu1 %v2847_v49, %s7415_s15  ;;  %v4001_v17 = vld [vmem:[#allocation3 + $0x81] sm:$0xff] }
 0x29c   : > { %v9310_v12 = vld [vmem:[#allocation3 + $0x82] sm:$0xff]  ;;  %v9412_v53 = vld [vmem:[#allocation3 + $0x7a] sm:$0xff] }
 0x29d   : > { %12065 = vst [vmem:[#allocation17_spill] sm:$0xff] %v9412_v53  ;;  %v9422_v34 = vld [vmem:[#allocation3 + $0x62] sm:$0xff] }
 0x29e   : > { %v2849_v6 = vld [vmem:[#allocation3 + $0x98] sm:$0xff]  ;;  %12067 = vst [vmem:[#allocation19_spill] sm:$0xff] %v9422_v34 }
 0x29f   : > { %v4003_v15 = vld [vmem:[#allocation3 + $0x99] sm:$0xff]  ;;  %3236 = vrot.lane.b32.xlu0 %v2849_v6, %s7414_s7  ;;  %v3020_v0 = vcombine.low %v2845_v21, %v2849_v6  ;;  %v3021_v39 = vcombine.high %v2845_v21, %v2849_v6 }
 0x2a0   : > { %v4174_v13 = vcombine.low %v3999_v11, %v4003_v15  ;;  %v4175_v5 = vcombine.high %v3999_v11, %v4003_v15  ;;  %v9290_v57 = vld [vmem:[#allocation3 + $0x9a] sm:$0xff] }
 0x2a1   : > { %v5328_v55 = vcombine.low %v9288_v40, %v9290_v57  ;;  %v5329_v50 = vcombine.high %v9288_v40, %v9290_v57  ;;  %v9297_v7 = vrot.slane %v3020_v0, %v12064_v59  ;;  %v9300_v35 = vrot.slane %v3021_v39, %v12064_v59 }
 0x2a2   : > { %v2851_v37 = vld [vmem:[#allocation3 + $0xb0] sm:$0xff]  ;;  %v9303_v51 = vrot.slane %v4174_v13, %v12064_v59  ;;  %v9306_v23 = vrot.slane %v4175_v5, %v12064_v59 }
 0x2a3   : > { %v4005_v4 = vld [vmem:[#allocation3 + $0xb1] sm:$0xff]  ;;  %3240 = vrot.lane.b32.xlu0 %v2851_v37, %s7414_s7  ;;  %v3036_v56 = vcombine.low %v2847_v49, %v2851_v37  ;;  %v3037_v2 = vcombine.high %v2847_v49, %v2851_v37  ;;  %3630 = vrot.lane.b32.xlu1 %v2851_v37, %s7415_s15  ;;  %v9315_v32 = vrot.slane %v5328_v55, %v12064_v59 }
 0x2a4   : > { %v4190_v33 = vcombine.low %v4001_v17, %v4005_v4  ;;  %v9312_v36 = vld [vmem:[#allocation3 + $0xb2] sm:$0xff]  ;;  %v4191_v28 = vcombine.high %v4001_v17, %v4005_v4  ;;  %v9331_v62 = vrot.slane %v5329_v50, %v12064_v59 }
 0x2a5   : > { %v5344_v18 = vcombine.low %v9310_v12, %v9312_v36  ;;  %v5345_v47 = vcombine.high %v9310_v12, %v9312_v36  ;;  %v9322_v63 = vrot.slane %v3036_v56, %v12064_v59  ;;  %v9325_v3 = vrot.slane %v3037_v2, %v12064_v59  ;;  %v9428_v49 = vld [vmem:[#allocation3 + $0x92] sm:$0xff] }
 0x2a6   : > { %v9328_v9 = vrot.slane %v4190_v33, %v12064_v59  ;;  %v9334_v48 = vrot.slane %v4191_v28, %v12064_v59  ;;  %12068 = vst [vmem:[#allocation36_spill] sm:$0xff] %v9428_v49 }
 0x2a7   : > { %v9337_v25 = vrot.slane %v5344_v18, %v12064_v59  ;;  %v9340_v54 = vrot.slane %v5345_v47, %v12064_v59  ;;  %3618 = vrot.lane.b32.xlu0 %v2845_v21, %s7415_s15  ;;  %3620 = vrot.lane.b32.xlu1 %v9237_v20, %s7415_s15  ;;  %v9418_v21 = vld [vmem:[#allocation3 + $0xaa] sm:$0xff] }
 0x2a8   : > { %12066 = vst [vmem:[#allocation34_spill] sm:$0xff] %v9418_v21 }
 0x2ab   : > { %3626 = vrot.lane.b32.xlu0 %v2849_v6, %s7415_s15  ;;  %3628 = vrot.lane.b32.xlu1 %v9252_v10, %s7415_s15  ;;  %v9396_v10 = vld [vmem:[#allocation3 + $0x91] sm:$0xff] }
 0x2af   : > { %3616 = vrot.lane.b32.xlu0 %v9229_v19, %s7415_s15  ;;  %4386 = vrot.lane.b32.xlu1 %v4001_v17, %s7414_s7  ;;  %v9387_v19 = vld [vmem:[#allocation3 + $0xa9] sm:$0xff] }
 0x2b3   : > { %3624 = vrot.lane.b32.xlu0 %v9242_v41, %s7415_s15  ;;  %4394 = vrot.lane.b32.xlu1 %v4005_v4, %s7414_s7  ;;  %v9390_v41 = vld [vmem:[#allocation3 + $0x61] sm:$0xff] }
 0x2b7   : > { %4382 = vrot.lane.b32.xlu0 %v3999_v11, %s7414_s7  ;;  %4776 = vrot.lane.b32.xlu1 %v4001_v17, %s7415_s15 }
 0x2bb   : > { %4390 = vrot.lane.b32.xlu0 %v4003_v15, %s7414_s7  ;;  %4784 = vrot.lane.b32.xlu1 %v4005_v4, %s7415_s15 }
 0x2bf   : > { %4772 = vrot.lane.b32.xlu0 %v3999_v11, %s7415_s15  ;;  %4384 = vrot.lane.b32.xlu1 %v9382_v29, %s7414_s7 }
 0x2c3   : > { %4780 = vrot.lane.b32.xlu0 %v4003_v15, %s7415_s15  ;;  %4392 = vrot.lane.b32.xlu1 %v9387_v19, %s7414_s7 }
 0x2c7   : > { %4380 = vrot.lane.b32.xlu0 %v9390_v41, %s7414_s7  ;;  %4774 = vrot.lane.b32.xlu1 %v9382_v29, %s7415_s15 }
 0x2cb   : > { %4388 = vrot.lane.b32.xlu0 %v9396_v10, %s7414_s7  ;;  %4782 = vrot.lane.b32.xlu1 %v9387_v19, %s7415_s15 }
 0x2cf   : > { %4770 = vrot.lane.b32.xlu0 %v9390_v41, %s7415_s15  ;;  %5540 = vrot.lane.b32.xlu1 %v9310_v12, %s7414_s7 }
 0x2d3   : > { %4778 = vrot.lane.b32.xlu0 %v9396_v10, %s7415_s15  ;;  %5548 = vrot.lane.b32.xlu1 %v9312_v36, %s7414_s7 }
 0x2d7   : > { %5536 = vrot.lane.b32.xlu0 %v9288_v40, %s7414_s7  ;;  %5538 = vrot.lane.b32.xlu1 %v9412_v53, %s7414_s7 }
 0x2db   : > { %5544 = vrot.lane.b32.xlu0 %v9290_v57, %s7414_s7  ;;  %5546 = vrot.lane.b32.xlu1 %v9418_v21, %s7414_s7 }
 0x2df   : > { %5534 = vrot.lane.b32.xlu0 %v9422_v34, %s7414_s7  ;;  %5926 = vrot.lane.b32.xlu1 %v9288_v40, %s7415_s15 }
 0x2e3   : > { %5542 = vrot.lane.b32.xlu0 %v9428_v49, %s7414_s7  ;;  %5930 = vrot.lane.b32.xlu1 %v9310_v12, %s7415_s15 }
 0x2e7   : > { %5924 = vrot.lane.b32.xlu0 %v9422_v34, %s7415_s15  ;;  %5934 = vrot.lane.b32.xlu1 %v9290_v57, %s7415_s15 }
 0x2eb   : > { %5928 = vrot.lane.b32.xlu0 %v9412_v53, %s7415_s15  ;;  %5938 = vrot.lane.b32.xlu1 %v9312_v36, %s7415_s15 }
 0x2ef   : > { %5932 = vrot.lane.b32.xlu0 %v9428_v49, %s7415_s15 }
 0x2f0   : > { %v9452_v50 = vpop.permute.xlu1 %3226 }
 0x2f1   : > { %12070 = vst [vmem:[#allocation38_spill] sm:$0xff] %v9452_v50 }
 0x2f3   : > { %5936 = vrot.lane.b32.xlu0 %v9418_v21, %s7415_s15 }
 0x2f4   : > { %v9456_v4 = vpop.permute.xlu1 %3230 }
 0x2f5   : > { %12072 = vst [vmem:[#allocation22_spill] sm:$0xff] %v9456_v4 }
 0x309   : > { %v9450_v55 = vpop.permute.xlu0 %3228 }
 0x30a   : > { %12069 = vst [vmem:[#allocation20_spill] sm:$0xff] %v9450_v55 }
 0x30d   : > { %v9454_v17 = vpop.permute.xlu0 %3232 }
 0x30e   : > { %12071 = vst [vmem:[#allocation24_spill] sm:$0xff] %v9454_v17 }
 0x311   : > { %v9458_v33 = vpop.permute.xlu0 %3236 }
 0x312   : > { %12073 = vst [vmem:[#allocation23_spill] sm:$0xff] %v9458_v33 }
 0x315   : > { %v9462_v28 = vpop.permute.xlu0 %3240 }
 0x316   : > { %12075 = vst [vmem:[#allocation26_spill] sm:$0xff] %v9462_v28 }
 0x358   : > { %v2591_v6 = vpop.f32.mrb[0].mxu0 }
 0x359   : > { %v2592_v11 = vadd.f32 %v2591_v6, %v9250_v46  ;;  %v2593_v15 = vpop.f32.mrb[1].mxu0  ;;  %v9466_v6 = vpop.permute.xlu0 %3618 }
 0x35a   : > { %v2594_v0 = vadd.f32 %v2593_v15, %v9250_v46  ;;  %v2595_v39 = vpop.f32.mrb[2].mxu0  ;;  %v9460_v46 = vpop.permute.xlu1 %3234  ;;  %12077 = vst [vmem:[#allocation48_spill] sm:$0xff] %v9466_v6 }
 0x35b   : > { %v2598_v13 = vsub.f32 0.0, %v2592_v11  ;;  %v2596_v5 = vpop.f32.mrb[3].mxu0  ;;  %12074 = vst [vmem:[#allocation21_spill] sm:$0xff] %v9460_v46 }
 0x35c   : > { %v2599_v40 = vsub.f32 0.0, %v2594_v0 }
 0x35d   : > { %v2600_v57 = vmul.f32 1.442695, %v2598_v13  ;;  %v9476_v5 = vpop.permute.xlu0 %3626 }
 0x35e   : > { %v2602_v37 = vmul.f32 1.442695, %v2599_v40  ;;  %v9464_v18 = vpop.permute.xlu1 %3238  ;;  %12079 = vst [vmem:[#allocation30_spill] sm:$0xff] %v9476_v5 }
 0x35f   : > { %7267 = vpow2.f32 %v2600_v57  ;;  %12076 = vst [vmem:[#allocation47_spill] sm:$0xff] %v9464_v18 }
 0x360   : > { %7269 = vpow2.f32 %v2602_v37 }
 0x362   : > { %v9468_v15 = vpop.permute.xlu1 %3622 }
 0x363   : > { %12078 = vst [vmem:[#allocation25_spill] sm:$0xff] %v9468_v15 }
 0x366   : > { %v9478_v40 = vpop.permute.xlu1 %3630 }
 0x367   : > { %12080 = vst [vmem:[#allocation45_spill] sm:$0xff] %v9478_v40 }
 0x369   : > { %v7268_v56 = vpop.eup %7267 }
 0x36a   : > { %v2604_v2 = vadd.f32 1.0, %v7268_v56  ;;  %v7270_v12 = vpop.eup %7269  ;;  %v9486_v56 = vpop.permute.xlu1 %3620 }
 0x36b   : > { %v2605_v36 = vadd.f32 1.0, %v7270_v12  ;;  %12082 = vst [vmem:[#allocation49_spill] sm:$0xff] %v9486_v56 }
 0x36c   : > { %7271 = vrcp.f32 %v2604_v2 }
 0x36d   : > { %7273 = vrcp.f32 %v2605_v36 }
 0x36e   : > { %v9500_v36 = vpop.permute.xlu1 %3628 }
 0x36f   : > { %12084 = vst [vmem:[#allocation27_spill] sm:$0xff] %v9500_v36 }
 0x376   : > { %v7272_v47 = vpop.eup %7271 }
 0x377   : > { %v2610_v39 = vrot.slane %v7272_v47, 4  ;;  %v7274_v57 = vpop.eup %7273 }
 0x378   : > { %v2611_v37 = vrot.slane %v7274_v57, 4 }
 0x379   : > { %v9470_v13 = vmul.f32 %v2610_v39, %v2592_v11  ;;  %v9484_v11 = vpop.permute.xlu0 %3616 }
 0x37a   : > { %12081 = vst [vmem:[#allocation46_spill] sm:$0xff] %v9484_v11  ;;  %v9492_v2 = vmul.f32 %v2611_v37, %v2594_v0  ;;  %v9508_v0 = vpop.permute.xlu1 %4386 }
 0x37b   : > { %2620 = vrot.lane.b32.xlu0 %v9470_v13, %s7419_s13  ;;  %2617 = vrot.lane.b32.xlu1 %v9470_v13, %s7424_s18  ;;  %12086 = vst [vmem:[#allocation33_spill] sm:$0xff] %v9508_v0 }
 0x37d   : > { %v9498_v12 = vpop.permute.xlu0 %3624 }
 0x37e   : > { %12083 = vst [vmem:[#allocation50_spill] sm:$0xff] %v9498_v12  ;;  %v9520_v57 = vpop.permute.xlu1 %4394 }
 0x37f   : > { %2626 = vrot.lane.b32.xlu0 %v9470_v13, %s7418_s16  ;;  %2623 = vrot.lane.b32.xlu1 %v9470_v13, %s7423_s26  ;;  %12088 = vst [vmem:[#allocation40_spill] sm:$0xff] %v9520_v57 }
 0x381   : > { %v9506_v47 = vpop.permute.xlu0 %4382 }
 0x382   : > { %12085 = vst [vmem:[#allocation31_spill] sm:$0xff] %v9506_v47  ;;  %v9524_v16 = vpop.permute.xlu1 %4776 }
 0x383   : > { %2632 = vrot.lane.b32.xlu0 %v9470_v13, %s7417_s29  ;;  %2629 = vrot.lane.b32.xlu1 %v9470_v13, %s7422_s20  ;;  %12090 = vst [vmem:[#allocation42_spill] sm:$0xff] %v9524_v16 }
 0x385   : > { %v9518_v39 = vpop.permute.xlu0 %4390 }
 0x386   : > { %12087 = vst [vmem:[#allocation57_spill] sm:$0xff] %v9518_v39  ;;  %v9528_v8 = vpop.permute.xlu1 %4784 }
 0x387   : > { %2639 = vrot.lane.b32.xlu0 %v9492_v2, %s7424_s18  ;;  %2635 = vrot.lane.b32.xlu1 %v9470_v13, %s7421_s14  ;;  %12092 = vst [vmem:[#allocation35_spill] sm:$0xff] %v9528_v8 }
 0x389   : > { %v9522_v37 = vpop.permute.xlu0 %4772 }
 0x38a   : > { %12089 = vst [vmem:[#allocation39_spill] sm:$0xff] %v9522_v37  ;;  %v9532_v61 = vpop.permute.xlu1 %4384 }
 0x38b   : > { %2645 = vrot.lane.b32.xlu0 %v9492_v2, %s7423_s26  ;;  %2642 = vrot.lane.b32.xlu1 %v9492_v2, %s7419_s13  ;;  %12094 = vst [vmem:[#allocation37_spill] sm:$0xff] %v9532_v61 }
 0x38d   : > { %v9526_v20 = vpop.permute.xlu0 %4780 }
 0x38e   : > { %12091 = vst [vmem:[#allocation41_spill] sm:$0xff] %v9526_v20  ;;  %v9536_v60 = vpop.permute.xlu1 %4392 }
 0x38f   : > { %2651 = vrot.lane.b32.xlu0 %v9492_v2, %s7422_s20  ;;  %2648 = vrot.lane.b32.xlu1 %v9492_v2, %s7418_s16  ;;  %12096 = vst [vmem:[#allocation51_spill] sm:$0xff] %v9536_v60 }
 0x391   : > { %v9530_v24 = vpop.permute.xlu0 %4380 }
 0x392   : > { %12093 = vst [vmem:[#allocation58_spill] sm:$0xff] %v9530_v24  ;;  %v9540_v45 = vpop.permute.xlu1 %4774 }
 0x393   : > { %2657 = vrot.lane.b32.xlu0 %v9492_v2, %s7421_s14  ;;  %2654 = vrot.lane.b32.xlu1 %v9492_v2, %s7417_s29  ;;  %12098 = vst [vmem:[#allocation54_spill] sm:$0xff] %v9540_v45 }
 0x395   : > { %v9534_v44 = vpop.permute.xlu0 %4388 }
 0x396   : > { %12095 = vst [vmem:[#allocation52_spill] sm:$0xff] %v9534_v44  ;;  %v9544_v52 = vpop.permute.xlu1 %4782 }
 0x397   : > { %12100 = vst [vmem:[#allocation56_spill] sm:$0xff] %v9544_v52 }
 0x399   : > { %v9538_v43 = vpop.permute.xlu0 %4770 }
 0x39a   : > { %12097 = vst [vmem:[#allocation59_spill] sm:$0xff] %v9538_v43  ;;  %v9548_v14 = vpop.permute.xlu1 %5540 }
 0x39b   : > { %12102 = vst [vmem:[#allocation44_spill] sm:$0xff] %v9548_v14 }
 0x39d   : > { %v9542_v1 = vpop.permute.xlu0 %4778 }
 0x39e   : > { %12099 = vst [vmem:[#allocation53_spill] sm:$0xff] %v9542_v1  ;;  %v9552_v27 = vpop.permute.xlu1 %5548 }
 0x39f   : > { %12104 = vst [vmem:[#allocation28_spill] sm:$0xff] %v9552_v27 }
 0x3a1   : > { %v9546_v38 = vpop.permute.xlu0 %5536 }
 0x3a2   : > { %12101 = vst [vmem:[#allocation55_spill] sm:$0xff] %v9546_v38  ;;  %v9556_v37 = vpop.permute.xlu1 %5538 }
 0x3a3   : > { %12106 = vst [vmem:[#allocation15_spill] sm:$0xff] %v9556_v37 }
 0x3a5   : > { %v9550_v30 = vpop.permute.xlu0 %5544 }
 0x3a6   : > { %12103 = vst [vmem:[#allocation43_spill] sm:$0xff] %v9550_v30  ;;  %v9560_v43 = vpop.permute.xlu1 %5546 }
 0x3a7   : > { %12108 = vst [vmem:[#allocation16_spill] sm:$0xff] %v9560_v43 }
 0x3a9   : > { %v9554_v26 = vpop.permute.xlu0 %5534 }
 0x3aa   : > { %12105 = vst [vmem:[#allocation29_spill] sm:$0xff] %v9554_v26  ;;  %v9564_v1 = vpop.permute.xlu1 %5926 }
 0x3ab   : > { %12110 = vst [vmem:[#allocation60_spill] sm:$0xff] %v9564_v1 }
 0x3ad   : > { %v9558_v20 = vpop.permute.xlu0 %5542 }
 0x3ae   : > { %12107 = vst [vmem:[#allocation32_spill] sm:$0xff] %v9558_v20  ;;  %v9568_v38 = vpop.permute.xlu1 %5930 }
 0x3af   : > { %12112 = vst [vmem:[#allocation62_spill] sm:$0xff] %v9568_v38 }
 0x3b1   : > { %v9562_v45 = vpop.permute.xlu0 %5924 }
 0x3b2   : > { %12109 = vst [vmem:[#allocation18_spill] sm:$0xff] %v9562_v45  ;;  %v9572_v30 = vpop.permute.xlu1 %5934 }
 0x3b3   : > { %12114 = vst [vmem:[#allocation64_spill] sm:$0xff] %v9572_v30 }
 0x3b5   : > { %v9566_v52 = vpop.permute.xlu0 %5928 }
 0x3b6   : > { %12111 = vst [vmem:[#allocation61_spill] sm:$0xff] %v9566_v52  ;;  %v9576_v26 = vpop.permute.xlu1 %5938 }
 0x3b7   : > { %12116 = vst [vmem:[#allocation66_spill] sm:$0xff] %v9576_v26 }
 0x3b9   : > { %v9570_v14 = vpop.permute.xlu0 %5932 }
 0x3ba   : > { %12113 = vst [vmem:[#allocation63_spill] sm:$0xff] %v9570_v14 }
 0x3bd   : > { %v9574_v27 = vpop.permute.xlu0 %5936 }
 0x3be   : > { %12115 = vst [vmem:[#allocation65_spill] sm:$0xff] %v9574_v27 }
 0x3ed   : > { %v2621_v37 = vpop.permute.xlu0 %2620  ;;  %v2618_v20 = vpop.permute.xlu1 %2617 }
 0x3ee   : > { %v2660_v1 = vcombine.low %v9470_v13, %v2621_v37 }
 0x3f0   : > { %v2667_v30 = vrot.slane %v2660_v1, %v12064_v59 }
 0x3f1   : > { %v2627_v61 = vpop.permute.xlu0 %2626  ;;  %v2624_v43 = vpop.permute.xlu1 %2623 }
 0x3f2   : > { %v2668_v60 = vcombine.low %v2618_v20, %v2624_v43  ;;  %v12117_v20 = vld [vmem:[#allocation14_spill] sm:$0xff] }
 0x3f4   : > { %v2675_v52 = vrot.slane %v2668_v60, %v12064_v59 }
 0x3f5   : > { %v2633_v45 = vpop.permute.xlu0 %2632  ;;  %v2630_v24 = vpop.permute.xlu1 %2629 }
 0x3f6   : > { %v2676_v38 = vcombine.low %v2627_v61, %v2633_v45  ;;  %v2692_v27 = vcombine.low %v2667_v30, %v2675_v52 }
 0x3f8   : > { %v2683_v26 = vrot.slane %v2676_v38, %v12064_v59  ;;  %v2700_v0 = vrot.slane %v2692_v27, %v12117_v20 }
 0x3f9   : > { %v2640_v44 = vpop.permute.xlu0 %2639  ;;  %v2636_v14 = vpop.permute.xlu1 %2635 }
 0x3fa   : > { %v2684_v16 = vcombine.low %v2630_v24, %v2636_v14  ;;  %v2693_v14 = vcombine.high %v2667_v30, %v2675_v52 }
 0x3fc   : > { %v2691_v8 = vrot.slane %v2684_v16, %v12064_v59 }
 0x3fd   : > { %v2646_v47 = vpop.permute.xlu0 %2645  ;;  %v2643_v39 = vpop.permute.xlu1 %2642 }
 0x3fe   : > { %v2708_v43 = vcombine.low %v2683_v26, %v2691_v8  ;;  %v2736_v37 = vcombine.low %v2640_v44, %v2646_v47  ;;  %v2728_v45 = vcombine.low %v9492_v2, %v2643_v39  ;;  %v2709_v57 = vcombine.high %v2683_v26, %v2691_v8 }
 0x3ff   : > { %v2707_v2 = vrot.slane %v2693_v14, %v12117_v20 }
 0x400   : > { %v2716_v13 = vrot.slane %v2708_v43, %v12117_v20  ;;  %v2743_v24 = vrot.slane %v2736_v37, %v12064_v59  ;;  %v2735_v38 = vrot.slane %v2728_v45, %v12064_v59  ;;  %v2723_v27 = vrot.slane %v2709_v57, %v12117_v20 }
 0x401   : > { %v2652_v60 = vpop.permute.xlu0 %2651  ;;  %v2649_v61 = vpop.permute.xlu1 %2648 }
 0x402   : > { %v2724_v1 = vcombine.low %v2700_v0, %v2716_v13  ;;  %v2725_v44 = vcombine.high %v2700_v0, %v2716_v13  ;;  %v2760_v47 = vcombine.low %v2735_v38, %v2743_v24  ;;  %v2726_v8 = vcombine.low %v2707_v2, %v2723_v27 }
 0x403   : > { %v2761_v13 = vcombine.high %v2735_v38, %v2743_v24  ;;  %v4038_v38 = vcombine.low %v9390_v41, %v9396_v10 }
 0x404   : > { %2804 = vrot.lane.b32.xlu0 %v2724_v1, %s7412_s8  ;;  %v2768_v39 = vrot.slane %v2760_v47, %v12117_v20 }
 0x405   : > { %v2658_v16 = vpop.permute.xlu0 %2657  ;;  %v2655_v56 = vpop.permute.xlu1 %2654 }
 0x406   : > { %v2752_v36 = vcombine.low %v2652_v60, %v2658_v16  ;;  %v2744_v43 = vcombine.low %v2649_v61, %v2655_v56  ;;  %v2727_v56 = vcombine.high %v2707_v2, %v2723_v27  ;;  %v2775_v60 = vrot.slane %v2761_v13, %v12117_v20 }
 0x407   : > { %v4054_v16 = vcombine.low %v9382_v29, %v9387_v19  ;;  %v4039_v27 = vcombine.high %v9390_v41, %v9396_v10  ;;  %v5208_v2 = vcombine.low %v9412_v53, %v9418_v21 }
 0x408   : > { %v2759_v26 = vrot.slane %v2752_v36, %v12064_v59  ;;  %v2751_v30 = vrot.slane %v2744_v43, %v12064_v59  ;;  %2808 = vrot.lane.b32.xlu0 %v2725_v44, %s7412_s8  ;;  %v4055_v43 = vcombine.high %v9382_v29, %v9387_v19  ;;  %v5192_v44 = vcombine.low %v9422_v34, %v9428_v49 }
 0x409   : > { %v4062_v41 = vrot.slane %v4054_v16, %v12064_v59  ;;  %v4053_v29 = vrot.slane %v4039_v27, %v12064_v59  ;;  %v12122_v27 = vcombine.low %v9258_v58, %v9270_v31 }
 0x40a   : > { %v2776_v52 = vcombine.low %v2751_v30, %v2759_v26  ;;  %v2777_v57 = vcombine.high %v2751_v30, %v2759_v26  ;;  %v4046_v30 = vrot.slane %v4038_v38, %v12064_v59  ;;  %v4069_v19 = vrot.slane %v4055_v43, %v12064_v59 }
 0x40b   : > { %v9626_v10 = vrot.slane %v5192_v44, %v12064_v59  ;;  %v12121_v38 = vcombine.high %v9297_v7, %v9322_v63  ;;  %v9659_v43 = vrot.slane %v12122_v27, %v12117_v20  ;;  %v12123_v44 = vcombine.low %v9300_v35, %v9325_v3 }
 0x40c   : > { %v2784_v37 = vrot.slane %v2776_v52, %v12117_v20  ;;  %2812 = vrot.lane.b32.xlu0 %v2726_v8, %s7412_s8  ;;  %v2791_v36 = vrot.slane %v2777_v57, %v12117_v20  ;;  %v9629_v52 = vrot.slane %v5208_v2, %v12064_v59  ;;  %v4102_v57 = vcombine.low %v4046_v30, %v4062_v41 }
 0x40d   : > { %12118 = vst [vmem:[#allocation14_spill] sm:$0xff] %v9626_v10  ;;  %v4119_v13 = vcombine.high %v4053_v29, %v4069_v19  ;;  %v9653_v16 = vrot.slane %v12121_v38, %v12117_v20  ;;  %v9665_v2 = vrot.slane %v12123_v44, %v12117_v20 }
 0x40e   : > { %v2792_v0 = vcombine.low %v2768_v39, %v2784_v37  ;;  %v2793_v45 = vcombine.high %v2768_v39, %v2784_v37  ;;  %v2794_v61 = vcombine.low %v2775_v60, %v2791_v36  ;;  %v2795_v1 = vcombine.high %v2775_v60, %v2791_v36  ;;  %12119 = vst [vmem:[#allocation67_spill] sm:$0xff] %v9629_v52 }
 0x40f   : > { %v9712_v44 = vrot.slane %v4119_v13, %v12117_v20 }
 0x410   : > { %2816 = vrot.lane.b32.xlu0 %v2727_v56, %s7412_s8  ;;  %2806 = vrot.lane.b32.xlu1 %v2792_v0, %s7412_s8  ;;  %v4103_v56 = vcombine.high %v4046_v30, %v4062_v41  ;;  %v4118_v0 = vcombine.low %v4053_v29, %v4069_v19  ;;  %v12124_v19 = vcombine.low %v9255_v22, %v9267_v42 }
 0x414   : > { %2810 = vrot.lane.b32.xlu1 %v2793_v45, %s7412_s8 }
 0x418   : > { %2814 = vrot.lane.b32.xlu1 %v2794_v61, %s7412_s8 }
 0x41c   : > { %2818 = vrot.lane.b32.xlu1 %v2795_v1, %s7412_s8 }
 0x476   : > { %v2805_v14 = vpop.permute.xlu0 %2804 }
 0x477   : > { %2828 = vst.msk [vmem:[#allocation3 + $0x1] sm:$0xff] %vm365_vm2, %v2805_v14  ;;  %v12120_v14 = vcombine.high %v9255_v22, %v9267_v42  ;;  %v9699_v22 = vrot.slane %v4118_v0, %v12117_v20  ;;  %v9702_v42 = vrot.slane %v4102_v57, %v12117_v20  ;;  %v12133_v57 = vcombine.low %v9303_v51, %v9328_v9 }
 0x478   : > { %v12135_v0 = vcombine.high %v9303_v51, %v9328_v9  ;;  %v12137_v9 = vcombine.low %v9315_v32, %v9337_v25 }
 0x479   : > { %12130 = vst [vmem:[#allocation70_spill] sm:$0xff] %v9702_v42 }
 0x47a   : > { %v2809_v24 = vpop.permute.xlu0 %2808 }
 0x47b   : > { %2830 = vst.msk [vmem:[#allocation3 + $0x19] sm:$0xff] %vm365_vm2, %v2809_v24  ;;  %v9647_v24 = vrot.slane %v12120_v14, %v12117_v20  ;;  %v12129_v14 = vcombine.high %v9300_v35, %v9325_v3  ;;  %v12131_v35 = vcombine.high %v9306_v23, %v9334_v48 }
 0x47d   : > { %v9696_v38 = vrot.slane %v12129_v14, %v12117_v20  ;;  %v9718_v3 = vrot.slane %v12131_v35, %v12117_v20  ;;  %v12139_v35 = vcombine.low %v9306_v23, %v9334_v48  ;;  %v12141_v23 = vcombine.high %v9315_v32, %v9337_v25 }
 0x47e   : > { %v2813_v47 = vpop.permute.xlu0 %2812  ;;  %v2836_v26 = vld [vmem:[#allocation3] sm:$0xff] }
 0x47f   : > { %2832 = vst.msk [vmem:[#allocation3 + $0x31] sm:$0xff] %vm365_vm2, %v2813_v47  ;;  %3600 = vrot.lane.b32.xlu0 %v2836_v26, %s7415_s15  ;;  %3210 = vrot.lane.b32.xlu1 %v2836_v26, %s7414_s7  ;;  %v9639_v61 = vld [vmem:[#allocation3 + $0x1] sm:$0xff]  ;;  %12132 = vst [vmem:[#allocation71_spill] sm:$0xff] %v9718_v3  ;;  %v9766_v48 = vrot.slane %v12141_v23, %v12117_v20 }
 0x481   : > { %12142 = vst [vmem:[#allocation76_spill] sm:$0xff] %v9766_v48  ;;  %v12237_v48 = vld [vmem:[#allocation52_spill] sm:$0xff] }
 0x482   : > { %v2817_v8 = vpop.permute.xlu0 %2816  ;;  %v2807_v39 = vpop.permute.xlu1 %2806  ;;  %v9631_v37 = vld [vmem:[#allocation3 + $0x18] sm:$0xff] }
 0x483   : > { %2834 = vst.msk [vmem:[#allocation3 + $0x49] sm:$0xff] %vm365_vm2, %v2817_v8  ;;  %2829 = vst.msk [vmem:[#allocation3 + $0x9] sm:$0xff] %vm365_vm2, %v2807_v39  ;;  %3214 = vrot.lane.b32.xlu1 %v9631_v37, %s7414_s7  ;;  %v9678_v8 = vrot.slane %v12124_v19, %v12117_v20  ;;  %v12126_v39 = vcombine.low %v9297_v7, %v9322_v63  ;;  %v9705_v7 = vrot.slane %v4103_v56, %v12117_v20 }
 0x484   : > { %v9724_v56 = vrot.slane %v12133_v57, %v12117_v20  ;;  %v9730_v19 = vrot.slane %v12135_v0, %v12117_v20  ;;  %v9753_v57 = vrot.slane %v12139_v35, %v12117_v20 }
 0x485   : > { %12125 = vst [vmem:[#allocation68_spill] sm:$0xff] %v9678_v8 }
 0x486   : > { %v2811_v45 = vpop.permute.xlu1 %2810  ;;  %v2840_v60 = vld [vmem:[#allocation3 + $0x30] sm:$0xff]  ;;  %12134 = vst [vmem:[#allocation72_spill] sm:$0xff] %v9724_v56  ;;  %12136 = vst [vmem:[#allocation73_spill] sm:$0xff] %v9730_v19  ;;  %v12244_v19 = vld [vmem:[#allocation54_spill] sm:$0xff] }
 0x487   : > { %v9641_v1 = vld [vmem:[#allocation3 + $0x31] sm:$0xff]  ;;  %2831 = vst.msk [vmem:[#allocation3 + $0x21] sm:$0xff] %vm365_vm2, %v2811_v45  ;;  %3608 = vrot.lane.b32.xlu0 %v2840_v60, %s7415_s15  ;;  %v2852_v47 = vcombine.low %v2836_v26, %v2840_v60  ;;  %v2853_v30 = vcombine.high %v2836_v26, %v2840_v60  ;;  %3218 = vrot.lane.b32.xlu1 %v2840_v60, %s7414_s7  ;;  %12140 = vst [vmem:[#allocation75_spill] sm:$0xff] %v9753_v57  ;;  %v12239_v57 = vld [vmem:[#allocation51_spill] sm:$0xff] }
 0x488   : > { %v4006_v41 = vcombine.low %v9639_v61, %v9641_v1  ;;  %v4007_v29 = vcombine.high %v9639_v61, %v9641_v1  ;;  %v9684_v45 = vrot.slane %v12126_v39, %v12117_v20  ;;  %v12128_v26 = vcombine.high %v9258_v58, %v9270_v31  ;;  %v9707_v58 = vld [vmem:[#allocation3 + $0x19] sm:$0xff] }
 0x489   : > { %v2860_v14 = vrot.slane %v2852_v47, %v12064_v59  ;;  %v2867_v0 = vrot.slane %v2853_v30, %v12064_v59 }
 0x48a   : > { %12127 = vst [vmem:[#allocation69_spill] sm:$0xff] %v9684_v45  ;;  %v9690_v60 = vrot.slane %v12128_v26, %v12117_v20  ;;  %v2815_v63 = vpop.permute.xlu1 %2814  ;;  %v2842_v27 = vld [vmem:[#allocation3 + $0x48] sm:$0xff]  ;;  %v4014_v6 = vrot.slane %v4006_v41, %v12064_v59 }
 0x48b   : > { %v9709_v31 = vld [vmem:[#allocation3 + $0x49] sm:$0xff]  ;;  %2833 = vst.msk [vmem:[#allocation3 + $0x39] sm:$0xff] %vm365_vm2, %v2815_v63  ;;  %4364 = vrot.lane.b32.xlu0 %v9639_v61, %s7414_s7  ;;  %v2868_v13 = vcombine.low %v9631_v37, %v2842_v27  ;;  %v2869_v39 = vcombine.high %v9631_v37, %v2842_v27  ;;  %3222 = vrot.lane.b32.xlu1 %v2842_v27, %s7414_s7 }
 0x48c   : > { %v4022_v26 = vcombine.low %v9707_v58, %v9709_v31  ;;  %v4023_v51 = vcombine.high %v9707_v58, %v9709_v31  ;;  %v9747_v63 = vrot.slane %v12137_v9, %v12117_v20  ;;  %v4021_v9 = vrot.slane %v4007_v29, %v12064_v59  ;;  %v9775_v32 = vld [vmem:[#allocation3 + $0x9] sm:$0xff] }
 0x48d   : > { %v2876_v36 = vrot.slane %v2868_v13, %v12064_v59  ;;  %v2883_v47 = vrot.slane %v2869_v39, %v12064_v59  ;;  %12143 = vst [vmem:[#allocation77_spill] sm:$0xff] %v9775_v32 }
 0x48e   : > { %12138 = vst [vmem:[#allocation74_spill] sm:$0xff] %v9747_v63  ;;  %v4030_v11 = vrot.slane %v4022_v26, %v12064_v59  ;;  %v2819_v12 = vpop.permute.xlu1 %2818  ;;  %v4037_v5 = vrot.slane %v4023_v51, %v12064_v59  ;;  %v9773_v51 = vld [vmem:[#allocation3 + $0x8] sm:$0xff]  ;;  %v9832_v17 = vld [vmem:[#allocation3 + $0x20] sm:$0xff] }
 0x48f   : > { %v2916_v30 = vcombine.low %v2860_v14, %v2876_v36  ;;  %v2917_v35 = vcombine.high %v2860_v14, %v2876_v36  ;;  %v2932_v13 = vcombine.low %v2867_v0, %v2883_v47  ;;  %v2933_v15 = vcombine.high %v2867_v0, %v2883_v47  ;;  %2835 = vst.msk [vmem:[#allocation3 + $0x51] sm:$0xff] %vm365_vm2, %v2819_v12  ;;  %v9836_v33 = vld [vmem:[#allocation3 + $0x21] sm:$0xff] }
 0x490   : > { %4372 = vrot.lane.b32.xlu0 %v9641_v1, %s7414_s7  ;;  %3604 = vrot.lane.b32.xlu1 %v9631_v37, %s7415_s15  ;;  %v4070_v41 = vcombine.low %v4014_v6, %v4030_v11  ;;  %v4071_v29 = vcombine.high %v4014_v6, %v4030_v11  ;;  %v4086_v39 = vcombine.low %v4021_v9, %v4037_v5  ;;  %v9874_v50 = vld [vmem:[#allocation3 + $0x1a] sm:$0xff] }
 0x491   : > { %v4087_v26 = vcombine.high %v4021_v9, %v4037_v5  ;;  %v9778_v25 = vrot.slane %v2917_v35, %v12117_v20  ;;  %v9781_v36 = vrot.slane %v2932_v13, %v12117_v20  ;;  %v9784_v12 = vrot.slane %v2916_v30, %v12117_v20  ;;  %v9817_v13 = vld [vmem:[#allocation3 + $0xa] sm:$0xff]  ;;  %12151 = vst [vmem:[#allocation85_spill] sm:$0xff] %v9836_v33 }
 0x492   : > { %v9787_v14 = vrot.slane %v2933_v15, %v12117_v20  ;;  %v9789_v37 = vld [vmem:[#allocation3 + $0x38] sm:$0xff]  ;;  %v9796_v11 = vrot.slane %v4086_v39, %v12117_v20  ;;  %v9799_v0 = vrot.slane %v4070_v41, %v12117_v20  ;;  %v9802_v47 = vrot.slane %v4071_v29, %v12117_v20  ;;  %12148 = vst [vmem:[#allocation82_spill] sm:$0xff] %v9817_v13  ;;  %v9819_v41 = vld [vmem:[#allocation3 + $0x2] sm:$0xff] }
 0x493   : > { %12144 = vst [vmem:[#allocation78_spill] sm:$0xff] %v9784_v12  ;;  %v9791_v6 = vld [vmem:[#allocation3 + $0x39] sm:$0xff]  ;;  %v9805_v9 = vrot.slane %v4087_v26, %v12117_v20  ;;  %v2988_v15 = vcombine.low %v9773_v51, %v9789_v37  ;;  %v2989_v23 = vcombine.high %v9773_v51, %v9789_v37  ;;  %12149 = vst [vmem:[#allocation83_spill] sm:$0xff] %v9819_v41 }
 0x494   : > { %12145 = vst [vmem:[#allocation79_spill] sm:$0xff] %v9791_v6  ;;  %v9793_v5 = vld [vmem:[#allocation3 + $0x3a] sm:$0xff]  ;;  %12147 = vst [vmem:[#allocation81_spill] sm:$0xff] %v9799_v0  ;;  %4754 = vrot.lane.b32.xlu0 %v9639_v61, %s7415_s15  ;;  %v4142_v30 = vcombine.low %v9775_v32, %v9791_v6  ;;  %v4143_v35 = vcombine.high %v9775_v32, %v9791_v6  ;;  %v9821_v29 = vld [vmem:[#allocation3 + $0x32] sm:$0xff]  ;;  %3612 = vrot.lane.b32.xlu1 %v2842_v27, %s7415_s15 }
 0x495   : > { %12146 = vst [vmem:[#allocation80_spill] sm:$0xff] %v9793_v5  ;;  %12150 = vst [vmem:[#allocation84_spill] sm:$0xff] %v9821_v29  ;;  %v5296_v61 = vcombine.low %v9817_v13, %v9793_v5  ;;  %v5297_v39 = vcombine.high %v9817_v13, %v9793_v5  ;;  %v5160_v26 = vcombine.low %v9819_v41, %v9821_v29 }
 0x496   : > { %v5161_v40 = vcombine.high %v9819_v41, %v9821_v29  ;;  %v2996_v28 = vrot.slane %v2988_v15, %v12064_v59  ;;  %v3003_v55 = vrot.slane %v2989_v23, %v12064_v59  ;;  %v9839_v27 = vrot.slane %v4142_v30, %v12064_v59  ;;  %v9844_v21 = vld [vmem:[#allocation3 + $0x50] sm:$0xff]  ;;  %12157 = vst [vmem:[#allocation91_spill] sm:$0xff] %v9874_v50 }
 0x497   : > { %v9842_v53 = vrot.slane %v4143_v35, %v12064_v59  ;;  %v9846_v34 = vld [vmem:[#allocation3 + $0x51] sm:$0xff]  ;;  %v9851_v4 = vrot.slane %v5296_v61, %v12064_v59  ;;  %v9854_v15 = vrot.slane %v5297_v39, %v12064_v59  ;;  %v9857_v23 = vrot.slane %v5160_v26, %v12064_v59  ;;  %v9872_v26 = vld [vmem:[#allocation3 + $0x22] sm:$0xff] }
 0x498   : > { %12152 = vst [vmem:[#allocation86_spill] sm:$0xff] %v9846_v34  ;;  %v9848_v49 = vld [vmem:[#allocation3 + $0x52] sm:$0xff]  ;;  %v9860_v30 = vrot.slane %v5161_v40, %v12064_v59  ;;  %4762 = vrot.lane.b32.xlu0 %v9641_v1, %s7415_s15  ;;  %v3004_v35 = vcombine.low %v9832_v17, %v9844_v21  ;;  %v3005_v18 = vcombine.high %v9832_v17, %v9844_v21  ;;  %12156 = vst [vmem:[#allocation90_spill] sm:$0xff] %v9872_v26  ;;  %v9876_v40 = vld [vmem:[#allocation3 + $0x4a] sm:$0xff] }
 0x499   : > { %12153 = vst [vmem:[#allocation87_spill] sm:$0xff] %v9848_v49  ;;  %12154 = vst [vmem:[#allocation88_spill] sm:$0xff] %v9857_v23  ;;  %v4158_v61 = vcombine.low %v9836_v33, %v9846_v34  ;;  %v4159_v39 = vcombine.high %v9836_v33, %v9846_v34  ;;  %4368 = vrot.lane.b32.xlu1 %v9707_v58, %s7414_s7  ;;  %v5312_v1 = vcombine.low %v9872_v26, %v9848_v49 }
 0x49a   : > { %12155 = vst [vmem:[#allocation89_spill] sm:$0xff] %v9860_v30  ;;  %12158 = vst [vmem:[#allocation92_spill] sm:$0xff] %v9876_v40  ;;  %v5313_v46 = vcombine.high %v9872_v26, %v9848_v49  ;;  %v5176_v29 = vcombine.low %v9874_v50, %v9876_v40  ;;  %v5177_v41 = vcombine.high %v9874_v50, %v9876_v40 }
 0x49b   : > { %v3012_v5 = vrot.slane %v3004_v35, %v12064_v59  ;;  %v3019_v13 = vrot.slane %v3005_v18, %v12064_v59  ;;  %v9891_v6 = vrot.slane %v4158_v61, %v12064_v59  ;;  %v9894_v34 = vrot.slane %v4159_v39, %v12064_v59 }
 0x49c   : > { %v9897_v32 = vrot.slane %v5312_v1, %v12064_v59  ;;  %v9900_v49 = vrot.slane %v5313_v46, %v12064_v59  ;;  %v9903_v26 = vrot.slane %v5176_v29, %v12064_v59  ;;  %v9906_v40 = vrot.slane %v5177_v41, %v12064_v59  ;;  %3212 = vrot.lane.b32.xlu0 %v9773_v51, %s7414_s7 }
 0x49d   : > { %v3052_v18 = vcombine.low %v2996_v28, %v3012_v5  ;;  %v3053_v35 = vcombine.high %v2996_v28, %v3012_v5  ;;  %v3068_v61 = vcombine.low %v3003_v55, %v3019_v13  ;;  %v3069_v39 = vcombine.high %v3003_v55, %v3019_v13  ;;  %4376 = vrot.lane.b32.xlu1 %v9709_v31, %s7414_s7 }
 0x49e   : > { %12159 = vst [vmem:[#allocation93_spill] sm:$0xff] %v9903_v26  ;;  %12160 = vst [vmem:[#allocation94_spill] sm:$0xff] %v9906_v40  ;;  %v4206_v46 = vcombine.low %v9839_v27, %v9891_v6  ;;  %v4207_v29 = vcombine.high %v9839_v27, %v9891_v6  ;;  %v4222_v41 = vcombine.low %v9842_v53, %v9894_v34 }
 0x49f   : > { %v4223_v1 = vcombine.high %v9842_v53, %v9894_v34  ;;  %v5360_v28 = vcombine.low %v9851_v4, %v9897_v32  ;;  %v5361_v55 = vcombine.high %v9851_v4, %v9897_v32  ;;  %v2982_v4 = vcombine.low %v9778_v25, %v9647_v24 }
 0x4a0   : > { %3216 = vrot.lane.b32.xlu0 %v9832_v17, %s7414_s7  ;;  %v3067_v32 = vrot.slane %v3053_v35, %v12117_v20  ;;  %v2984_v13 = vcombine.low %v9781_v36, %v9659_v43  ;;  %v3076_v5 = vrot.slane %v3068_v61, %v12117_v20  ;;  %v2981_v53 = vcombine.high %v9784_v12, %v9678_v8  ;;  %v12212_v8 = vld [vmem:[#allocation46_spill] sm:$0xff]  ;;  %v12214_v12 = vld [vmem:[#allocation49_spill] sm:$0xff] }
 0x4a1   : > { %4758 = vrot.lane.b32.xlu1 %v9707_v58, %s7415_s15  ;;  %v9949_v34 = vrot.slane %v3052_v18, %v12117_v20  ;;  %v2986_v27 = vcombine.low %v9787_v14, %v9690_v60  ;;  %v3083_v6 = vrot.slane %v3069_v39, %v12117_v20  ;;  %v2983_v61 = vcombine.high %v9778_v25, %v9647_v24 }
 0x4a2   : > { %v3118_v35 = vcombine.low %v3067_v32, %v9653_v16  ;;  %v3120_v40 = vcombine.low %v3076_v5, %v9665_v2  ;;  %v3119_v58 = vcombine.high %v3067_v32, %v9653_v16  ;;  %v2985_v59 = vcombine.high %v9781_v36, %v9659_v43  ;;  %v12202_v32 = vld [vmem:[#allocation26_spill] sm:$0xff] }
 0x4a3   : > { %12161 = vst [vmem:[#allocation95_spill] sm:$0xff] %v9949_v34  ;;  %v3117_v30 = vcombine.high %v9949_v34, %v9684_v45  ;;  %v3122_v18 = vcombine.low %v3083_v6, %v9696_v38  ;;  %v3121_v50 = vcombine.high %v3076_v5, %v9665_v2  ;;  %v2987_v16 = vcombine.high %v9787_v14, %v9690_v60  ;;  %v12211_v34 = vld [vmem:[#allocation50_spill] sm:$0xff] }
 0x4a4   : > { %3220 = vrot.lane.b32.xlu0 %v9789_v37, %s7414_s7  ;;  %v9967_v39 = vpack.i.bf16 %v3118_v35, %v2982_v4  ;;  %v9969_v33 = vpack.i.bf16 %v3120_v40, %v2984_v13  ;;  %v9971_v24 = vpack.i.bf16 %v3119_v58, %v2983_v61  ;;  %v3123_v36 = vcombine.high %v3083_v6, %v9696_v38  ;;  %v12201_v35 = vld [vmem:[#allocation20_spill] sm:$0xff]  ;;  %v12207_v38 = vld [vmem:[#allocation25_spill] sm:$0xff] }
 0x4a5   : > { %4766 = vrot.lane.b32.xlu1 %v9709_v31, %s7415_s15  ;;  %v9977_v25 = vpack.i.bf16 %v3117_v30, %v2981_v53  ;;  %v9979_v43 = vpack.i.bf16 %v3122_v18, %v2986_v27  ;;  %v9981_v2 = vpack.i.bf16 %v3121_v50, %v2985_v59  ;;  %v10003_v30 = vrot.slane %v4223_v1, %v12117_v20 }
 0x4a6   : > { %v9992_v14 = vpack.i.bf16 %v3123_v36, %v2987_v16  ;;  %v10006_v13 = vrot.slane %v4206_v46, %v12117_v20  ;;  %v10009_v6 = vrot.slane %v4207_v29, %v12117_v20  ;;  %v10012_v27 = vrot.slane %v5360_v28, %v12117_v20  ;;  %v12203_v28 = vld [vmem:[#allocation24_spill] sm:$0xff] }
 0x4a7   : > { %12162 = vst [vmem:[#allocation96_spill] sm:$0xff] %v10003_v30  ;;  %v10021_v1 = vrot.slane %v4222_v41, %v12117_v20  ;;  %v10024_v46 = vrot.slane %v5361_v55, %v12117_v20  ;;  %v12168_v16 = vcombine.low %v9331_v62, %v9340_v54  ;;  %v12170_v4 = vcombine.low %v9857_v23, %v9903_v26 }
 0x4a8   : > { %3224 = vrot.lane.b32.xlu0 %v9844_v21, %s7414_s7  ;;  %12163 = vst [vmem:[#allocation97_spill] sm:$0xff] %v10006_v13  ;;  %12164 = vst [vmem:[#allocation98_spill] sm:$0xff] %v10009_v6  ;;  %v12172_v53 = vcombine.low %v9854_v15, %v9900_v49 }
 0x4a9   : > { %12165 = vst [vmem:[#allocation99_spill] sm:$0xff] %v10012_v27  ;;  %3606 = vrot.lane.b32.xlu1 %v9832_v17, %s7415_s15  ;;  %12166 = vst [vmem:[#allocation100_spill] sm:$0xff] %v10021_v1  ;;  %v10052_v36 = vrot.slane %v12168_v16, %v12117_v20  ;;  %v12174_v16 = vcombine.high %v9854_v15, %v9900_v49  ;;  %v12181_v15 = vld [vmem:[#allocation77_spill] sm:$0xff]  ;;  %v12200_v49 = vld [vmem:[#allocation23_spill] sm:$0xff]  ;;  %v3442_v17 = vcombine.low %v12203_v28, %v12202_v32 }
 0x4aa   : > { %12167 = vst [vmem:[#allocation101_spill] sm:$0xff] %v10024_v46  ;;  %v10066_v18 = vrot.slane %v12172_v53, %v12117_v20  ;;  %v12178_v53 = vcombine.low %v9626_v10, %v9629_v52  ;;  %v3426_v41 = vcombine.low %v12201_v35, %v12200_v49 }
 0x4ab   : > { %12169 = vst [vmem:[#allocation102_spill] sm:$0xff] %v10052_v36  ;;  %v10072_v61 = vrot.slane %v12174_v16, %v12117_v20  ;;  %v12180_v16 = vld [vmem:[#allocation85_spill] sm:$0xff] }
 0x4ac   : > { %3602 = vrot.lane.b32.xlu0 %v9773_v51, %s7415_s15  ;;  %v10060_v51 = vrot.slane %v12170_v4, %v12117_v20  ;;  %12173 = vst [vmem:[#allocation104_spill] sm:$0xff] %v10066_v18  ;;  %v10086_v55 = vrot.slane %v12178_v53, %v12117_v20  ;;  %v12184_v4 = vld [vmem:[#allocation90_spill] sm:$0xff]  ;;  %v12221_v18 = vld [vmem:[#allocation40_spill] sm:$0xff] }
 0x4ad   : > { %3614 = vrot.lane.b32.xlu1 %v9844_v21, %s7415_s15  ;;  %12175 = vst [vmem:[#allocation105_spill] sm:$0xff] %v10072_v61  ;;  %v12176_v21 = vcombine.high %v9331_v62, %v9340_v54  ;;  %v12183_v54 = vld [vmem:[#allocation79_spill] sm:$0xff]  ;;  %v12185_v53 = vld [vmem:[#allocation82_spill] sm:$0xff]  ;;  %v12191_v62 = vld [vmem:[#allocation84_spill] sm:$0xff] }
 0x4ae   : > { %12171 = vst [vmem:[#allocation103_spill] sm:$0xff] %v10060_v51  ;;  %12179 = vst [vmem:[#allocation107_spill] sm:$0xff] %v10086_v55 }
 0x4af   : > { %v10078_v58 = vrot.slane %v12176_v21, %v12117_v20  ;;  %v12186_v21 = vld [vmem:[#allocation87_spill] sm:$0xff] }
 0x4b0   : > { %3610 = vrot.lane.b32.xlu0 %v9789_v37, %s7415_s15  ;;  %v12182_v37 = vld [vmem:[#allocation86_spill] sm:$0xff] }
 0x4b1   : > { %12177 = vst [vmem:[#allocation106_spill] sm:$0xff] %v10078_v58  ;;  %4370 = vrot.lane.b32.xlu1 %v12180_v16, %s7414_s7 }
 0x4b4   : > { %4366 = vrot.lane.b32.xlu0 %v12181_v15, %s7414_s7 }
 0x4b5   : > { %4378 = vrot.lane.b32.xlu1 %v12182_v37, %s7414_s7 }
 0x4b8   : > { %4374 = vrot.lane.b32.xlu0 %v12183_v54, %s7414_s7 }
 0x4b9   : > { %4760 = vrot.lane.b32.xlu1 %v12180_v16, %s7415_s15  ;;  %v12187_v16 = vld [vmem:[#allocation80_spill] sm:$0xff] }
 0x4bc   : > { %4756 = vrot.lane.b32.xlu0 %v12181_v15, %s7415_s15  ;;  %v12188_v15 = vld [vmem:[#allocation91_spill] sm:$0xff] }
 0x4bd   : > { %4768 = vrot.lane.b32.xlu1 %v12182_v37, %s7415_s15  ;;  %v12189_v37 = vld [vmem:[#allocation83_spill] sm:$0xff] }
 0x4c0   : > { %4764 = vrot.lane.b32.xlu0 %v12183_v54, %s7415_s15  ;;  %v12190_v54 = vld [vmem:[#allocation92_spill] sm:$0xff] }
 0x4c1   : > { %5524 = vrot.lane.b32.xlu1 %v12184_v4, %s7414_s7 }
 0x4c4   : > { %5520 = vrot.lane.b32.xlu0 %v12185_v53, %s7414_s7 }
 0x4c5   : > { %5532 = vrot.lane.b32.xlu1 %v12186_v21, %s7414_s7 }
 0x4c8   : > { %5528 = vrot.lane.b32.xlu0 %v12187_v16, %s7414_s7 }
 0x4c9   : > { %5522 = vrot.lane.b32.xlu1 %v12188_v15, %s7414_s7 }
 0x4cc   : > { %5518 = vrot.lane.b32.xlu0 %v12189_v37, %s7414_s7 }
 0x4cd   : > { %5530 = vrot.lane.b32.xlu1 %v12190_v54, %s7414_s7 }
 0x4d0   : > { %5526 = vrot.lane.b32.xlu0 %v12191_v62, %s7414_s7 }
 0x4d1   : > { %5910 = vrot.lane.b32.xlu1 %v12185_v53, %s7415_s15  ;;  %v12194_v53 = vld [vmem:[#allocation47_spill] sm:$0xff] }
 0x4d4   : > { %5908 = vrot.lane.b32.xlu0 %v12189_v37, %s7415_s15  ;;  %v12198_v37 = vld [vmem:[#allocation34_spill] sm:$0xff] }
 0x4d5   : > { %5914 = vrot.lane.b32.xlu1 %v12184_v4, %s7415_s15  ;;  %v12192_v4 = vld [vmem:[#allocation21_spill] sm:$0xff] }
 0x4d8   : > { %5912 = vrot.lane.b32.xlu0 %v12188_v15, %s7415_s15 }
 0x4d9   : > { %5918 = vrot.lane.b32.xlu1 %v12187_v16, %s7415_s15 }
 0x4dc   : > { %5916 = vrot.lane.b32.xlu0 %v12191_v62, %s7415_s15  ;;  %v12193_v62 = vld [vmem:[#allocation38_spill] sm:$0xff] }
 0x4dd   : > { %5922 = vrot.lane.b32.xlu1 %v12186_v21, %s7415_s15  ;;  %v3290_v21 = vcombine.low %v12193_v62, %v12192_v4 }
 0x4e0   : > { %5920 = vrot.lane.b32.xlu0 %v12190_v54, %s7415_s15 }
 0x4e1   : > { %6893 = vrot.lane.b32.xlu1 %v9967_v39, %s7417_s29  ;;  %v12195_v39 = vld [vmem:[#allocation22_spill] sm:$0xff] }
 0x4e2   : > { %v3306_v16 = vcombine.low %v12195_v39, %v12194_v53 }
 0x4e4   : > { %6888 = vrot.lane.b32.xlu0 %v9977_v25, %s7421_s14  ;;  %v3291_v25 = vcombine.high %v12193_v62, %v12192_v4  ;;  %v12204_v4 = vld [vmem:[#allocation13_spill] sm:$0xff] }
 0x4e5   : > { %6903 = vrot.lane.b32.xlu1 %v9969_v33, %s7418_s16  ;;  %v3307_v33 = vcombine.high %v12195_v39, %v12194_v53  ;;  %v3298_v62 = vrot.slane %v3290_v21, %v12204_v4  ;;  %v3314_v53 = vrot.slane %v3306_v16, %v12204_v4  ;;  %v3434_v16 = vrot.slane %v3426_v41, %v12204_v4 }
 0x4e6   : > { %v3305_v39 = vrot.slane %v3291_v25, %v12204_v4  ;;  %v12210_v25 = vld [vmem:[#allocation48_spill] sm:$0xff] }
 0x4e8   : > { %6898 = vrot.lane.b32.xlu0 %v9971_v24, %s7422_s20  ;;  %v12196_v24 = vld [vmem:[#allocation36_spill] sm:$0xff] }
 0x4e9   : > { %6913 = vrot.lane.b32.xlu1 %v9979_v43, %s7419_s13  ;;  %v12197_v43 = vld [vmem:[#allocation19_spill] sm:$0xff] }
 0x4ea   : > { %v5193_v15 = vcombine.high %v12197_v43, %v12196_v24  ;;  %v3443_v24 = vcombine.high %v12203_v28, %v12202_v32  ;;  %v3321_v43 = vrot.slane %v3307_v33, %v12204_v4  ;;  %v3354_v32 = vcombine.low %v3298_v62, %v3314_v53 }
 0x4eb   : > { %v3355_v33 = vcombine.high %v3298_v62, %v3314_v53  ;;  %v3680_v62 = vcombine.low %v12212_v8, %v12211_v34  ;;  %v12213_v53 = vld [vmem:[#allocation27_spill] sm:$0xff] }
 0x4ec   : > { %6908 = vrot.lane.b32.xlu0 %v9981_v2, %s7423_s26  ;;  %v12199_v2 = vld [vmem:[#allocation17_spill] sm:$0xff]  ;;  %v3457_v41 = vrot.slane %v3443_v24, %v12204_v4  ;;  %v3371_v5 = vcombine.high %v3305_v39, %v3321_v43 }
 0x4ed   : > { %v5209_v54 = vcombine.high %v12199_v2, %v12198_v37  ;;  %v10193_v37 = vrot.slane %v5193_v15, %v12204_v4  ;;  %v12206_v2 = vld [vmem:[#allocation45_spill] sm:$0xff] }
 0x4ee   : > { %v3832_v50 = vcombine.low %v12207_v38, %v12206_v2 }
 0x4ef   : > { %12205 = vst [vmem:[#allocation85_spill] sm:$0xff] %v10193_v37  ;;  %v10198_v21 = vrot.slane %v5209_v54, %v12204_v4  ;;  %v3833_v54 = vcombine.high %v12207_v38, %v12206_v2  ;;  %v10231_v2 = vrot.slane %v3354_v32, %v12117_v20  ;;  %v12232_v37 = vld [vmem:[#allocation42_spill] sm:$0xff] }
 0x4f0   : > { %6918 = vrot.lane.b32.xlu0 %v9992_v14, %s7424_s18  ;;  %v3427_v14 = vcombine.high %v12201_v35, %v12200_v49  ;;  %v3450_v35 = vrot.slane %v3442_v17, %v12204_v4  ;;  %v12209_v49 = vld [vmem:[#allocation30_spill] sm:$0xff]  ;;  %v3370_v17 = vcombine.low %v3305_v39, %v3321_v43  ;;  %v3840_v45 = vrot.slane %v3832_v50, %v12204_v4 }
 0x4f1   : > { %v10182_v29 = vpop.permute.xlu1 %3210  ;;  %12208 = vst [vmem:[#allocation77_spill] sm:$0xff] %v10198_v21  ;;  %v3816_v59 = vcombine.low %v12210_v25, %v12209_v49  ;;  %v10204_v31 = vpop.permute.xlu0 %3600  ;;  %v3817_v15 = vcombine.high %v12210_v25, %v12209_v49  ;;  %v3696_v49 = vcombine.low %v12214_v12, %v12213_v53  ;;  %v3697_v39 = vcombine.high %v12214_v12, %v12213_v53 }
 0x4f2   : > { %v3441_v60 = vrot.slane %v3427_v14, %v12204_v4  ;;  %v3490_v25 = vcombine.low %v3434_v16, %v3450_v35  ;;  %v3681_v14 = vcombine.high %v12212_v8, %v12211_v34  ;;  %v3491_v50 = vcombine.high %v3434_v16, %v3450_v35  ;;  %12215 = vst [vmem:[#allocation86_spill] sm:$0xff] %v10231_v2 }
 0x4f3   : > { %v3824_v38 = vrot.slane %v3816_v59, %v12204_v4  ;;  %v3831_v40 = vrot.slane %v3817_v15, %v12204_v4  ;;  %v3847_v58 = vrot.slane %v3833_v54, %v12204_v4  ;;  %v10236_v59 = vrot.slane %v3355_v33, %v12117_v20 }
 0x4f4   : > { %v3506_v61 = vcombine.low %v3441_v60, %v3457_v41  ;;  %v10239_v8 = vrot.slane %v3370_v17, %v12117_v20  ;;  %v10242_v12 = vrot.slane %v3371_v5, %v12117_v20  ;;  %v3507_v34 = vcombine.high %v3441_v60, %v3457_v41 }
 0x4f5   : > { %v10206_v28 = vpop.permute.xlu1 %3214  ;;  %12216 = vst [vmem:[#allocation79_spill] sm:$0xff] %v10236_v59  ;;  %v3688_v16 = vrot.slane %v3680_v62, %v12204_v4  ;;  %v3704_v35 = vrot.slane %v3696_v49, %v12204_v4  ;;  %v10249_v15 = vrot.slane %v3490_v25, %v12117_v20  ;;  %v3880_v54 = vcombine.low %v3824_v38, %v3840_v45 }
 0x4f6   : > { %12217 = vst [vmem:[#allocation90_spill] sm:$0xff] %v10239_v8  ;;  %12218 = vst [vmem:[#allocation82_spill] sm:$0xff] %v10242_v12  ;;  %v3695_v33 = vrot.slane %v3681_v14, %v12204_v4  ;;  %v3711_v17 = vrot.slane %v3697_v39, %v12204_v4  ;;  %v10258_v60 = vrot.slane %v3491_v50, %v12117_v20  ;;  %v12222_v14 = vld [vmem:[#allocation33_spill] sm:$0xff] }
 0x4f7   : > { %12219 = vst [vmem:[#allocation87_spill] sm:$0xff] %v10249_v15  ;;  %v3881_v41 = vcombine.high %v3824_v38, %v3840_v45  ;;  %v3896_v62 = vcombine.low %v3831_v40, %v3847_v58  ;;  %v10263_v25 = vrot.slane %v3506_v61, %v12117_v20  ;;  %v3897_v36 = vcombine.high %v3831_v40, %v3847_v58 }
 0x4f8   : > { %v4596_v51 = vcombine.low %v12222_v14, %v12221_v18  ;;  %v4597_v39 = vcombine.high %v12222_v14, %v12221_v18  ;;  %v3744_v55 = vcombine.low %v3688_v16, %v3704_v35  ;;  %v3745_v52 = vcombine.high %v3688_v16, %v3704_v35  ;;  %v12227_v35 = vld [vmem:[#allocation57_spill] sm:$0xff] }
 0x4f9   : > { %v10226_v24 = vpop.permute.xlu0 %3608  ;;  %v10228_v43 = vpop.permute.xlu1 %3218  ;;  %12220 = vst [vmem:[#allocation80_spill] sm:$0xff] %v10263_v25  ;;  %v10276_v38 = vrot.slane %v3507_v34, %v12117_v20  ;;  %v10279_v61 = vrot.slane %v3880_v54, %v12117_v20  ;;  %v3760_v40 = vcombine.low %v3695_v33, %v3711_v17  ;;  %v3761_v58 = vcombine.high %v3695_v33, %v3711_v17 }
 0x4fa   : > { %v3258_v32 = vcombine.low %v10182_v29, %v10228_v43  ;;  %v10284_v18 = vrot.slane %v3881_v41, %v12117_v20  ;;  %v10287_v16 = vrot.slane %v3896_v62, %v12117_v20  ;;  %v10294_v54 = vrot.slane %v3897_v36, %v12117_v20  ;;  %v12231_v41 = vld [vmem:[#allocation35_spill] sm:$0xff] }
 0x4fb   : > { %12223 = vst [vmem:[#allocation91_spill] sm:$0xff] %v10276_v38  ;;  %12224 = vst [vmem:[#allocation83_spill] sm:$0xff] %v10279_v61  ;;  %v10299_v17 = vrot.slane %v4596_v51, %v12204_v4  ;;  %v4986_v62 = vcombine.low %v12232_v37, %v12231_v41  ;;  %v10304_v21 = vrot.slane %v3744_v55, %v12117_v20 }
 0x4fc   : > { %v10270_v50 = vrot.slane %v3258_v32, %v12204_v4  ;;  %12225 = vst [vmem:[#allocation92_spill] sm:$0xff] %v10284_v18  ;;  %12226 = vst [vmem:[#allocation84_spill] sm:$0xff] %v10287_v16  ;;  %v12228_v32 = vld [vmem:[#allocation31_spill] sm:$0xff]  ;;  %v10307_v26 = vrot.slane %v3745_v52, %v12117_v20  ;;  %v10310_v23 = vrot.slane %v4597_v39, %v12204_v4 }
 0x4fd   : > { %v10253_v53 = vpop.permute.xlu0 %4364  ;;  %v10255_v5 = vpop.permute.xlu1 %3222  ;;  %12229 = vst [vmem:[#allocation21_spill] sm:$0xff] %v10294_v54  ;;  %v4581_v33 = vcombine.high %v12228_v32, %v12227_v35  ;;  %12230 = vst [vmem:[#allocation38_spill] sm:$0xff] %v10299_v17  ;;  %v10319_v51 = vrot.slane %v3761_v58, %v12117_v20  ;;  %v3649_v55 = vcombine.high %v10204_v31, %v10226_v24  ;;  %v12240_v58 = vld [vmem:[#allocation37_spill] sm:$0xff]  ;;  %v12247_v18 = vld [vmem:[#allocation59_spill] sm:$0xff] }
 0x4fe   : > { %v3274_v49 = vcombine.low %v10206_v28, %v10255_v5  ;;  %12233 = vst [vmem:[#allocation47_spill] sm:$0xff] %v10304_v21  ;;  %12234 = vst [vmem:[#allocation22_spill] sm:$0xff] %v10310_v23  ;;  %v4460_v1 = vcombine.low %v12240_v58, %v12239_v57  ;;  %v12252_v8 = vcombine.high %v9796_v11, %v9699_v22 }
 0x4ff   : > { %v10337_v63 = vrot.slane %v4581_v33, %v12204_v4  ;;  %v10352_v56 = vrot.slane %v3649_v55, %v12204_v4 }
 0x500   : > { %v10273_v45 = vrot.slane %v3274_v49, %v12204_v4  ;;  %v4580_v49 = vcombine.low %v12228_v32, %v12227_v35  ;;  %v10316_v35 = vrot.slane %v3760_v40, %v12117_v20  ;;  %v3648_v32 = vcombine.low %v10204_v31, %v10226_v24  ;;  %v12238_v40 = vld [vmem:[#allocation58_spill] sm:$0xff] }
 0x501   : > { %v4444_v46 = vcombine.low %v12238_v40, %v12237_v48  ;;  %12241 = vst [vmem:[#allocation34_spill] sm:$0xff] %v10337_v63  ;;  %v10340_v31 = vrot.slane %v4986_v62, %v12204_v4 }
 0x502   : > { %v10281_v10 = vpop.permute.xlu0 %4372  ;;  %v3322_v34 = vcombine.low %v10270_v50, %v10273_v45  ;;  %v3605_v14 = vpop.permute.xlu1 %3604  ;;  %v10328_v39 = vrot.slane %v4580_v49, %v12204_v4  ;;  %v4445_v49 = vcombine.high %v12238_v40, %v12237_v48  ;;  %v3656_v33 = vrot.slane %v3648_v32, %v12204_v4 }
 0x503   : > { %12242 = vst [vmem:[#allocation17_spill] sm:$0xff] %v10340_v31  ;;  %v4468_v40 = vrot.slane %v4460_v1, %v12204_v4 }
 0x504   : > { %v10313_v36 = vrot.slane %v3322_v34, %v12117_v20  ;;  %12236 = vst [vmem:[#allocation19_spill] sm:$0xff] %v10328_v39  ;;  %v4987_v34 = vcombine.high %v12232_v37, %v12231_v41  ;;  %v4461_v37 = vcombine.high %v12240_v58, %v12239_v57  ;;  %v12243_v41 = vld [vmem:[#allocation56_spill] sm:$0xff]  ;;  %v12246_v58 = vld [vmem:[#allocation53_spill] sm:$0xff]  ;;  %v4644_v55 = vcombine.low %v10328_v39, %v10299_v17 }
 0x505   : > { %v4850_v6 = vcombine.low %v12244_v19, %v12243_v41  ;;  %v4834_v32 = vcombine.low %v12247_v18, %v12246_v58  ;;  %v4851_v30 = vcombine.high %v12244_v19, %v12243_v41 }
 0x506   : > { %12235 = vst [vmem:[#allocation36_spill] sm:$0xff] %v10313_v36  ;;  %v10325_v52 = vpop.permute.xlu0 %4754  ;;  %v3613_v16 = vpop.permute.xlu1 %3612  ;;  %v10361_v57 = vrot.slane %v4987_v34, %v12204_v4  ;;  %v10379_v1 = vrot.slane %v4461_v37, %v12204_v4  ;;  %v4835_v37 = vcombine.high %v12247_v18, %v12246_v58  ;;  %v10404_v12 = vrot.slane %v4644_v55, %v12117_v20  ;;  %v12250_v58 = vld [vmem:[#allocation41_spill] sm:$0xff] }
 0x507   : > { %v3664_v24 = vcombine.low %v3605_v14, %v3613_v16  ;;  %v3665_v27 = vcombine.high %v3605_v14, %v3613_v16  ;;  %v4452_v14 = vrot.slane %v4444_v46, %v12204_v4  ;;  %v10376_v46 = vrot.slane %v4445_v49, %v12204_v4 }
 0x508   : > { %12245 = vst [vmem:[#allocation23_spill] sm:$0xff] %v10361_v57  ;;  %v4858_v57 = vrot.slane %v4850_v6, %v12204_v4  ;;  %v4842_v17 = vrot.slane %v4834_v32, %v12204_v4  ;;  %12249 = vst [vmem:[#allocation26_spill] sm:$0xff] %v10404_v12  ;;  %v12251_v32 = vld [vmem:[#allocation39_spill] sm:$0xff]  ;;  %v12253_v12 = vcombine.high %v9799_v0, %v9702_v42 }
 0x509   : > { %v3672_v62 = vrot.slane %v3664_v24, %v12204_v4  ;;  %v10356_v16 = vrot.slane %v3665_v27, %v12204_v4  ;;  %v4508_v49 = vcombine.low %v4452_v14, %v4468_v40  ;;  %v4509_v41 = vcombine.high %v4452_v14, %v4468_v40 }
 0x50a   : > { %v10358_v48 = vpop.permute.xlu0 %4762  ;;  %v4524_v14 = vcombine.low %v10376_v46, %v10379_v1  ;;  %v10423_v63 = vrot.slane %v4835_v37, %v12204_v4  ;;  %v10426_v31 = vrot.slane %v4851_v30, %v12204_v4  ;;  %v4898_v23 = vcombine.low %v4842_v17, %v4858_v57 }
 0x50b   : > { %v10367_v13 = vpop.permute.xlu1 %4368  ;;  %v3712_v24 = vcombine.low %v3656_v33, %v3672_v62  ;;  %v3713_v27 = vcombine.high %v3656_v33, %v3672_v62  ;;  %v3728_v3 = vcombine.low %v10352_v56, %v10356_v16  ;;  %v4412_v33 = vcombine.low %v10253_v53, %v10281_v10 }
 0x50c   : > { %v10430_v25 = vrot.slane %v4508_v49, %v12117_v20  ;;  %v10433_v59 = vrot.slane %v4509_v41, %v12117_v20  ;;  %v4899_v37 = vcombine.high %v4842_v17, %v4858_v57  ;;  %v4413_v30 = vcombine.high %v10253_v53, %v10281_v10 }
 0x50d   : > { %v10387_v62 = vrot.slane %v3712_v24, %v12117_v20  ;;  %v10390_v54 = vrot.slane %v3728_v3, %v12117_v20  ;;  %v3727_v19 = vrot.slane %v3713_v27, %v12117_v20  ;;  %v4420_v40 = vrot.slane %v4412_v33, %v12204_v4 }
 0x50e   : > { %v10392_v34 = vpop.permute.xlu0 %3212  ;;  %12254 = vst [vmem:[#allocation24_spill] sm:$0xff] %v10430_v25  ;;  %v10445_v41 = vrot.slane %v4524_v14, %v12117_v20  ;;  %v4914_v53 = vcombine.low %v10423_v63, %v10426_v31 }
 0x50f   : > { %12248 = vst [vmem:[#allocation20_spill] sm:$0xff] %v10387_v62  ;;  %v4377_v6 = vpop.permute.xlu1 %4376  ;;  %v3781_v24 = vcombine.high %v10390_v54, %v10316_v35  ;;  %v3777_v3 = vcombine.high %v10387_v62, %v10304_v21  ;;  %v3779_v14 = vcombine.high %v3727_v19, %v10307_v26  ;;  %v12282_v62 = vld [vmem:[#allocation38_spill] sm:$0xff] }
 0x510   : > { %v4428_v39 = vcombine.low %v10367_v13, %v4377_v6 }
 0x511   : > { %v6942_v55 = vpack.i.bf16 %v12252_v8, %v3781_v24  ;;  %v6922_v18 = vpack.i.bf16 %v12253_v12, %v3777_v3  ;;  %v4429_v24 = vcombine.high %v10367_v13, %v4377_v6  ;;  %v4802_v3 = vcombine.low %v10325_v52, %v10358_v48 }
 0x512   : > { %v4436_v27 = vrot.slane %v4428_v39, %v12204_v4  ;;  %v10414_v38 = vpop.permute.xlu0 %3216  ;;  %v3778_v39 = vcombine.low %v3727_v19, %v10307_v26  ;;  %v10457_v13 = vrot.slane %v4898_v23, %v12117_v20  ;;  %v12257_v6 = vcombine.low %v9802_v47, %v9705_v7 }
 0x513   : > { %v4759_v33 = vpop.permute.xlu1 %4758  ;;  %6943 = vrot.lane.b32.xlu0 %v6942_v55, %s7423_s26  ;;  %6923 = vrot.lane.b32.xlu1 %v6922_v18, %s7421_s14  ;;  %v4803_v55 = vcombine.high %v10325_v52, %v10358_v48  ;;  %v10468_v8 = vrot.slane %v4899_v37, %v12117_v20  ;;  %v10471_v23 = vrot.slane %v4413_v30, %v12204_v4 }
 0x514   : > { %v4476_v12 = vcombine.low %v4420_v40, %v4436_v27  ;;  %12256 = vst [vmem:[#allocation45_spill] sm:$0xff] %v10457_v13  ;;  %v6927_v18 = vpack.i.bf16 %v12257_v6, %v3778_v39  ;;  %v4477_v49 = vcombine.high %v4420_v40, %v4436_v27  ;;  %v10474_v21 = vrot.slane %v4429_v24, %v12204_v4 }
 0x515   : > { %v4810_v26 = vrot.slane %v4802_v3, %v12204_v4  ;;  %v10481_v19 = vrot.slane %v4803_v55, %v12204_v4  ;;  %v3729_v37 = vcombine.high %v10352_v56, %v10356_v16  ;;  %v3780_v55 = vcombine.low %v10390_v54, %v10316_v35 }
 0x516   : > { %v10452_v17 = vrot.slane %v4476_v12, %v12117_v20  ;;  %v10454_v10 = vpop.permute.xlu0 %3220  ;;  %v10498_v6 = vrot.slane %v4477_v49, %v12117_v20  ;;  %v10503_v56 = vrot.slane %v4914_v53, %v12117_v20  ;;  %v4492_v16 = vcombine.low %v10471_v23, %v10474_v21 }
 0x517   : > { %v4767_v57 = vpop.permute.xlu1 %4766  ;;  %v3394_v39 = vcombine.low %v10392_v34, %v10454_v10  ;;  %6928 = vrot.lane.b32.xlu1 %v6927_v18, %s7417_s29  ;;  %v3275_v54 = vcombine.high %v10206_v28, %v10255_v5  ;;  %v12260_v28 = vcombine.low %v9796_v11, %v9699_v22 }
 0x518   : > { %12255 = vst [vmem:[#allocation13_spill] sm:$0xff] %v10452_v17  ;;  %v4818_v48 = vcombine.low %v4759_v33, %v4767_v57  ;;  %v4819_v12 = vcombine.high %v4759_v33, %v4767_v57  ;;  %v12258_v57 = vcombine.high %v9802_v47, %v9705_v7 }
 0x519   : > { %v3402_v7 = vrot.slane %v3394_v39, %v12204_v4  ;;  %v6937_v5 = vpack.i.bf16 %v12260_v28, %v3780_v55  ;;  %v10569_v28 = vrot.slane %v3275_v54, %v12204_v4 }
 0x51a   : > { %v4826_v40 = vrot.slane %v4818_v48, %v12204_v4  ;;  %v10485_v27 = vrot.slane %v4819_v12, %v12204_v4  ;;  %v3225_v33 = vpop.permute.xlu0 %3224  ;;  %v6932_v3 = vpack.i.bf16 %v12258_v57, %v3779_v14  ;;  %v3395_v57 = vcombine.high %v10392_v34, %v10454_v10 }
 0x51b   : > { %v3410_v30 = vcombine.low %v10414_v38, %v3225_v33  ;;  %v10490_v24 = vpop.permute.xlu1 %3606  ;;  %v3411_v53 = vcombine.high %v10414_v38, %v3225_v33  ;;  %v4543_v33 = vcombine.high %v10498_v6, %v10433_v59 }
 0x51c   : > { %v4866_v18 = vcombine.low %v4810_v26, %v4826_v40  ;;  %v4867_v48 = vcombine.high %v4810_v26, %v4826_v40  ;;  %v4882_v12 = vcombine.low %v10481_v19, %v10485_v27  ;;  %6933 = vrot.lane.b32.xlu1 %v6932_v3, %s7422_s20  ;;  %v10522_v26 = vrot.slane %v3729_v37, %v12117_v20 }
 0x51d   : > { %v3418_v47 = vrot.slane %v3410_v30, %v12204_v4  ;;  %v3259_v3 = vcombine.high %v10182_v29, %v10228_v43  ;;  %v10552_v34 = vrot.slane %v3411_v53, %v12204_v4  ;;  %v4541_v29 = vcombine.high %v10452_v17, %v10430_v25  ;;  %v12281_v17 = vld [vmem:[#allocation19_spill] sm:$0xff] }
 0x51e   : > { %v10513_v35 = vrot.slane %v4866_v18, %v12117_v20  ;;  %v10516_v49 = vrot.slane %v4867_v48, %v12117_v20  ;;  %v10519_v14 = vpop.permute.xlu0 %3602  ;;  %v10525_v39 = vrot.slane %v4882_v12, %v12117_v20  ;;  %v10543_v18 = vrot.slane %v4492_v16, %v12117_v20 }
 0x51f   : > { %v3458_v40 = vcombine.low %v3402_v7, %v3418_v47  ;;  %v10527_v30 = vpop.permute.xlu1 %3614  ;;  %v3459_v48 = vcombine.high %v3402_v7, %v3418_v47  ;;  %v3782_v7 = vcombine.low %v10522_v26, %v10319_v51  ;;  %v3323_v47 = vcombine.high %v10270_v50, %v10273_v45 }
 0x520   : > { %12259 = vst [vmem:[#allocation25_spill] sm:$0xff] %v10513_v35  ;;  %v4933_v37 = vcombine.high %v10516_v49, %v10468_v8  ;;  %v3800_v11 = vcombine.low %v10490_v24, %v10527_v30  ;;  %6938 = vrot.lane.b32.xlu1 %v6937_v5, %s7418_s16  ;;  %v4931_v43 = vcombine.high %v10513_v35, %v10457_v13 }
 0x521   : > { %v10546_v22 = vrot.slane %v3458_v40, %v12117_v20  ;;  %v4934_v53 = vcombine.low %v10525_v39, %v10503_v56  ;;  %v3409_v5 = vrot.slane %v3395_v57, %v12204_v4  ;;  %v4544_v54 = vcombine.low %v10543_v18, %v10445_v41 }
 0x522   : > { %v10554_v10 = vpop.permute.xlu0 %3610  ;;  %v6967_v55 = vpack.i.bf16 %v4933_v37, %v4543_v33  ;;  %v6947_v33 = vpack.i.bf16 %v4931_v43, %v4541_v29  ;;  %v10577_v37 = vrot.slane %v3800_v11, %v12204_v4  ;;  %v12262_v29 = vcombine.low %v12251_v32, %v12250_v58 }
 0x523   : > { %12261 = vst [vmem:[#allocation30_spill] sm:$0xff] %v10546_v22  ;;  %v3784_v16 = vcombine.low %v10519_v14, %v10554_v10  ;;  %v10564_v40 = vpop.permute.xlu1 %4370  ;;  %v3273_v50 = vrot.slane %v3259_v3, %v12204_v4  ;;  %v3474_v45 = vcombine.low %v3409_v5, %v10552_v34  ;;  %v6972_v52 = vpack.i.bf16 %v4934_v53, %v4544_v54 }
 0x524   : > { %6968 = vrot.lane.b32.xlu1 %v6967_v55, %s7422_s20  ;;  %v10591_v43 = vrot.slane %v12262_v29, %v12204_v4  ;;  %6948 = vrot.lane.b32.xlu0 %v6947_v33, %s7421_s14  ;;  %v10599_v55 = vrot.slane %v3459_v48, %v12117_v20  ;;  %v3523_v29 = vcombine.high %v10546_v22, %v10249_v15 }
 0x525   : > { %v10580_v12 = vrot.slane %v3784_v16, %v12204_v4  ;;  %v12263_v3 = vcombine.high %v10376_v46, %v10379_v1  ;;  %v3338_v33 = vcombine.low %v3273_v50, %v10569_v28  ;;  %v12264_v48 = vcombine.low %v9805_v9, %v9712_v44 }
 0x526   : > { %v10596_v11 = vpop.permute.xlu0 %4366  ;;  %v4932_v35 = vcombine.low %v10516_v49, %v10468_v8  ;;  %v10620_v53 = vrot.slane %v3323_v47, %v12117_v20  ;;  %v3387_v1 = vcombine.high %v10313_v36, %v10231_v2  ;;  %v10633_v8 = vrot.slane %v3474_v45, %v12117_v20  ;;  %v12278_v2 = vld [vmem:[#allocation55_spill] sm:$0xff] }
 0x527   : > { %v3848_v16 = vcombine.low %v10580_v12, %v10577_v37  ;;  %v10603_v38 = vpop.permute.xlu1 %4378  ;;  %v10611_v57 = vrot.slane %v12263_v3, %v12117_v20  ;;  %v6952_v13 = vpack.i.bf16 %v12264_v48, %v3782_v7  ;;  %v3339_v3 = vcombine.high %v3273_v50, %v10569_v28 }
 0x528   : > { %v4564_v46 = vcombine.low %v10564_v40, %v10603_v38  ;;  %6973 = vrot.lane.b32.xlu1 %v6972_v52, %s7418_s16  ;;  %v3475_v7 = vcombine.high %v3409_v5, %v10552_v34  ;;  %v4542_v47 = vcombine.low %v10498_v6, %v10433_v59  ;;  %v6992_v28 = vpack.i.bf16 %v3523_v29, %v3387_v1  ;;  %v12266_v1 = vld [vmem:[#allocation79_spill] sm:$0xff] }
 0x529   : > { %v10623_v54 = vrot.slane %v3848_v16, %v12117_v20  ;;  %6953 = vrot.lane.b32.xlu0 %v6952_v13, %s7419_s13  ;;  %v3525_v34 = vcombine.high %v10599_v55, %v10258_v60  ;;  %v4883_v13 = vcombine.high %v10481_v19, %v10485_v27  ;;  %v3785_v5 = vcombine.high %v10519_v14, %v10554_v10  ;;  %v12268_v14 = vld [vmem:[#allocation44_spill] sm:$0xff]  ;;  %v12277_v52 = vld [vmem:[#allocation43_spill] sm:$0xff] }
 0x52a   : > { %v10636_v49 = vpop.permute.xlu0 %4374  ;;  %v6957_v50 = vpack.i.bf16 %v4932_v35, %v4542_v47  ;;  %v3783_v59 = vcombine.high %v10522_v26, %v10319_v51  ;;  %v10655_v6 = vrot.slane %v3338_v33, %v12117_v20  ;;  %v10658_v45 = vrot.slane %v4564_v46, %v12204_v4  ;;  %v12267_v35 = vld [vmem:[#allocation28_spill] sm:$0xff] }
 0x52b   : > { %12265 = vst [vmem:[#allocation48_spill] sm:$0xff] %v10623_v54  ;;  %v4548_v16 = vcombine.low %v10596_v11, %v10636_v49  ;;  %v10644_v48 = vpop.permute.xlu1 %4760  ;;  %v3389_v19 = vcombine.high %v10620_v53, %v12266_v1  ;;  %v4915_v27 = vcombine.high %v10423_v63, %v10426_v31  ;;  %v5750_v51 = vcombine.low %v12268_v14, %v12267_v35 }
 0x52c   : > { %6993 = vrot.lane.b32.xlu1 %v6992_v28, %s7421_s14  ;;  %v4493_v26 = vcombine.high %v10471_v23, %v10474_v21  ;;  %v3801_v10 = vcombine.high %v10490_v24, %v10527_v30  ;;  %v10678_v46 = vrot.slane %v3475_v7, %v12117_v20  ;;  %v4897_v21 = vrot.slane %v4883_v13, %v12117_v20  ;;  %v12273_v13 = vld [vmem:[#allocation90_spill] sm:$0xff] }
 0x52d   : > { %v10661_v29 = vrot.slane %v4548_v16, %v12204_v4  ;;  %6958 = vrot.lane.b32.xlu0 %v6957_v50, %s7417_s29  ;;  %v7002_v31 = vpack.i.bf16 %v3525_v34, %v3389_v19  ;;  %v12269_v16 = vld [vmem:[#allocation80_spill] sm:$0xff]  ;;  %v10688_v23 = vrot.slane %v3785_v5, %v12204_v4  ;;  %v12271_v24 = vcombine.high %v9805_v9, %v9712_v44 }
 0x52e   : > { %v10675_v33 = vpop.permute.xlu0 %4756  ;;  %v3527_v28 = vcombine.high %v10633_v8, %v12269_v16  ;;  %v4935_v7 = vcombine.high %v10525_v39, %v10503_v56  ;;  %v10696_v50 = vrot.slane %v3339_v3, %v12117_v20  ;;  %v3391_v5 = vcombine.high %v10655_v6, %v12273_v13 }
 0x52f   : > { %v4612_v47 = vcombine.low %v10661_v29, %v10658_v45  ;;  %v10682_v63 = vpop.permute.xlu1 %4768  ;;  %12270 = vst [vmem:[#allocation50_spill] sm:$0xff] %v10688_v23  ;;  %v6962_v30 = vpack.i.bf16 %v12271_v24, %v3783_v59  ;;  %v4929_v44 = vrot.slane %v4915_v27, %v12117_v20  ;;  %v4507_v9 = vrot.slane %v4493_v26, %v12117_v20  ;;  %v12275_v59 = vld [vmem:[#allocation26_spill] sm:$0xff]  ;;  %v12276_v26 = vld [vmem:[#allocation91_spill] sm:$0xff] }
 0x530   : > { %v4954_v19 = vcombine.low %v10644_v48, %v10682_v63  ;;  %7003 = vrot.lane.b32.xlu1 %v7002_v31, %s7422_s20  ;;  %v10709_v56 = vrot.slane %v3801_v10, %v12204_v4  ;;  %v4545_v3 = vcombine.high %v10543_v18, %v10445_v41  ;;  %v7012_v27 = vpack.i.bf16 %v3527_v28, %v3391_v5  ;;  %v12279_v18 = vld [vmem:[#allocation17_spill] sm:$0xff]  ;;  %v12280_v28 = vld [vmem:[#allocation82_spill] sm:$0xff] }
 0x531   : > { %v10699_v34 = vrot.slane %v4612_v47, %v12117_v20  ;;  %6963 = vrot.lane.b32.xlu0 %v6962_v30, %s7424_s18  ;;  %v3529_v10 = vcombine.high %v10678_v46, %v12276_v26  ;;  %v5734_v30 = vcombine.low %v12278_v2, %v12277_v52  ;;  %v4936_v41 = vcombine.low %v4897_v21, %v4929_v44 }
 0x532   : > { %12274 = vst [vmem:[#allocation27_spill] sm:$0xff] %v10709_v56  ;;  %v10712_v39 = vpop.permute.xlu0 %4764  ;;  %v3865_v36 = vcombine.high %v10688_v23, %v10709_v56  ;;  %v6977_v15 = vpack.i.bf16 %v4935_v7, %v4545_v3  ;;  %v5034_v47 = vcombine.low %v10591_v43, %v12279_v18  ;;  %v4962_v22 = vrot.slane %v4954_v19, %v12204_v4  ;;  %v12284_v7 = vld [vmem:[#allocation22_spill] sm:$0xff] }
 0x533   : > { %12272 = vst [vmem:[#allocation46_spill] sm:$0xff] %v10699_v34  ;;  %v4938_v31 = vcombine.low %v10675_v33, %v10712_v39  ;;  %v10720_v24 = vpop.permute.xlu1 %5524  ;;  %v3393_v5 = vcombine.high %v10696_v50, %v12280_v28  ;;  %v12283_v42 = vcombine.high %v12281_v17, %v12282_v62  ;;  %v12285_v3 = vld [vmem:[#allocation34_spill] sm:$0xff]  ;;  %v12286_v19 = vcombine.high %v12251_v32, %v12250_v58 }
 0x534   : > { %7013 = vrot.lane.b32.xlu1 %v7012_v27, %s7423_s26  ;;  %v4546_v27 = vcombine.low %v4507_v9, %v10611_v57  ;;  %v5035_v62 = vcombine.high %v10591_v43, %v12279_v18  ;;  %v10761_v58 = vrot.slane %v5734_v30, %v12204_v4  ;;  %v10764_v32 = vrot.slane %v3865_v36, %v12117_v20  ;;  %v12290_v30 = vld [vmem:[#allocation29_spill] sm:$0xff]  ;;  %v12292_v36 = vld [vmem:[#allocation15_spill] sm:$0xff] }
 0x535   : > { %v4946_v25 = vrot.slane %v4938_v31, %v12204_v4  ;;  %v10739_v0 = vrot.slane %v12283_v42, %v12117_v20  ;;  %v10747_v52 = vrot.slane %v12286_v19, %v12204_v4  ;;  %6978 = vrot.lane.b32.xlu0 %v6977_v15, %s7423_s26  ;;  %v10756_v42 = vrot.slane %v5750_v51, %v12204_v4 }
 0x536   : > { %v10750_v31 = vpop.permute.xlu0 %5520  ;;  %v7022_v14 = vpack.i.bf16 %v3529_v10, %v3393_v5  ;;  %v6982_v15 = vpack.i.bf16 %v4936_v41, %v4546_v27  ;;  %v4937_v19 = vcombine.high %v4897_v21, %v4929_v44  ;;  %v10767_v35 = vrot.slane %v5034_v47, %v12117_v20  ;;  %v12289_v10 = vld [vmem:[#allocation32_spill] sm:$0xff] }
 0x537   : > { %v5002_v17 = vcombine.low %v4946_v25, %v4962_v22  ;;  %v10758_v2 = vpop.permute.xlu1 %5532  ;;  %v5003_v23 = vcombine.high %v4946_v25, %v4962_v22  ;;  %v5598_v18 = vcombine.low %v12290_v30, %v12289_v10  ;;  %v12291_v5 = vld [vmem:[#allocation16_spill] sm:$0xff]  ;;  %v4613_v21 = vcombine.high %v10661_v29, %v10658_v45 }
 0x538   : > { %12287 = vst [vmem:[#allocation49_spill] sm:$0xff] %v10767_v35  ;;  %v5718_v51 = vcombine.low %v10720_v24, %v10758_v2  ;;  %7023 = vrot.lane.b32.xlu1 %v7022_v14, %s7424_s18  ;;  %v5614_v56 = vcombine.low %v12292_v36, %v12291_v5  ;;  %v4547_v22 = vcombine.high %v4507_v9, %v10611_v57  ;;  %v12293_v9 = vld [vmem:[#allocation21_spill] sm:$0xff] }
 0x539   : > { %v10770_v43 = vrot.slane %v5002_v17, %v12117_v20  ;;  %6983 = vrot.lane.b32.xlu0 %v6982_v15, %s7419_s13  ;;  %v4677_v41 = vcombine.high %v10699_v34, %v12275_v59  ;;  %v5798_v29 = vcombine.low %v10761_v58, %v10756_v42  ;;  %v3524_v57 = vcombine.low %v10599_v55, %v10258_v60 }
 0x53a   : > { %v10782_v25 = vpop.permute.xlu0 %5528  ;;  %v6987_v27 = vpack.i.bf16 %v4937_v19, %v4547_v22  ;;  %v3918_v17 = vcombine.low %v10764_v32, %v12293_v9  ;;  %v10802_v15 = vrot.slane %v5003_v23, %v12117_v20  ;;  %v10805_v44 = vrot.slane %v5718_v51, %v12204_v4 }
 0x53b   : > { %12288 = vst [vmem:[#allocation40_spill] sm:$0xff] %v10770_v43  ;;  %v5702_v14 = vcombine.low %v10750_v31, %v10782_v25  ;;  %v10789_v47 = vpop.permute.xlu1 %5522  ;;  %v5067_v45 = vcombine.high %v10770_v43, %v10767_v35  ;;  %v12294_v35 = vld [vmem:[#allocation23_spill] sm:$0xff]  ;;  %v10813_v19 = vrot.slane %v5598_v18, %v12204_v4  ;;  %v10816_v60 = vrot.slane %v5614_v56, %v12204_v4 }
 0x53c   : > { %v5050_v43 = vcombine.low %v10747_v52, %v12294_v35  ;;  %v3388_v23 = vcombine.low %v10620_v53, %v12266_v1  ;;  %v10824_v51 = vrot.slane %v5035_v62, %v12117_v20  ;;  %v5051_v22 = vcombine.high %v10747_v52, %v12294_v35 }
 0x53d   : > { %v10808_v59 = vrot.slane %v5702_v14, %v12204_v4  ;;  %v7052_v34 = vpack.i.bf16 %v5067_v45, %v4677_v41  ;;  %6988 = vrot.lane.b32.xlu0 %v6987_v27, %s7424_s18  ;;  %v10829_v14 = vrot.slane %v4613_v21, %v12117_v20  ;;  %v10837_v41 = vrot.slane %v5798_v29, %v12117_v20  ;;  %v12297_v21 = vld [vmem:[#allocation96_spill] sm:$0xff]  ;;  %v12298_v45 = vld [vmem:[#allocation71_spill] sm:$0xff] }
 0x53e   : > { %v10819_v55 = vpop.permute.xlu0 %5518  ;;  %v4939_v53 = vcombine.high %v10675_v33, %v10712_v39  ;;  %v6997_v1 = vpack.i.bf16 %v3524_v57, %v3388_v23  ;;  %v3526_v52 = vcombine.low %v10633_v8, %v12269_v16  ;;  %v12299_v27 = vcombine.low %v12297_v21, %v12298_v45  ;;  %v12311_v23 = vld [vmem:[#allocation62_spill] sm:$0xff] }
 0x53f   : > { %v5766_v56 = vcombine.low %v10808_v59, %v10805_v44  ;;  %v10833_v18 = vpop.permute.xlu1 %5530  ;;  %7053 = vrot.lane.b32.xlu1 %v7052_v34, %s7421_s14  ;;  %12295 = vst [vmem:[#allocation33_spill] sm:$0xff] %v10837_v41  ;;  %v5068_v29 = vcombine.low %v10802_v15, %v10824_v51  ;;  %v5662_v33 = vcombine.low %v10813_v19, %v10816_v60 }
 0x540   : > { %v5582_v62 = vcombine.low %v10789_v47, %v10833_v18  ;;  %v7057_v34 = vpack.i.bf16 %v12299_v27, %v3918_v17  ;;  %v4549_v39 = vcombine.high %v10596_v11, %v10636_v49  ;;  %v4955_v8 = vcombine.high %v10644_v48, %v10682_v63 }
 0x541   : > { %v10844_v35 = vrot.slane %v5766_v56, %v12117_v20  ;;  %6998 = vrot.lane.b32.xlu0 %v6997_v1, %s7417_s29  ;;  %v3390_v57 = vcombine.low %v10655_v6, %v12273_v13  ;;  %v3849_v17 = vcombine.high %v10580_v12, %v10577_v37  ;;  %v4678_v49 = vcombine.low %v10829_v14, %v10739_v0 }
 0x542   : > { %v10860_v16 = vpop.permute.xlu0 %5526  ;;  %v4565_v48 = vcombine.high %v10564_v40, %v10603_v38  ;;  %v10878_v6 = vrot.slane %v4939_v53, %v12204_v4  ;;  %v3528_v37 = vcombine.low %v10678_v46, %v12276_v26  ;;  %v10883_v63 = vrot.slane %v5582_v62, %v12204_v4 }
 0x543   : > { %12296 = vst [vmem:[#allocation57_spill] sm:$0xff] %v10844_v35  ;;  %v5566_v56 = vcombine.low %v10819_v55, %v10860_v16  ;;  %v10870_v11 = vpop.permute.xlu1 %5910  ;;  %7058 = vrot.lane.b32.xlu1 %v7057_v34, %s7419_s13  ;;  %v7007_v12 = vpack.i.bf16 %v3526_v52, %v3390_v57  ;;  %v7062_v1 = vpack.i.bf16 %v5068_v29, %v4678_v49  ;;  %v12306_v49 = vld [vmem:[#allocation63_spill] sm:$0xff] }
 0x544   : > { %12300 = vst [vmem:[#allocation31_spill] sm:$0xff] %v10870_v11  ;;  %v3919_v27 = vcombine.high %v10764_v32, %v12293_v9  ;;  %v12301_v38 = vcombine.high %v12285_v3, %v12284_v7  ;;  %v10897_v53 = vrot.slane %v4549_v39, %v12204_v4  ;;  %v10900_v46 = vrot.slane %v4955_v8, %v12204_v4 }
 0x545   : > { %v10886_v13 = vrot.slane %v5566_v56, %v12204_v4  ;;  %7008 = vrot.lane.b32.xlu0 %v7007_v12, %s7418_s16  ;;  %v3392_v52 = vcombine.low %v10696_v50, %v12280_v28  ;;  %v10908_v32 = vrot.slane %v5050_v43, %v12117_v20  ;;  %v10911_v9 = vrot.slane %v5051_v22, %v12117_v20 }
 0x546   : > { %v10894_v40 = vrot.slane %v12301_v38, %v12117_v20  ;;  %v10903_v26 = vpop.permute.xlu0 %5908  ;;  %v10914_v62 = vrot.slane %v3849_v17, %v12117_v20  ;;  %v10922_v39 = vrot.slane %v4565_v48, %v12204_v4  ;;  %v5019_v50 = vcombine.high %v10878_v6, %v10900_v46  ;;  %v12307_v48 = vld [vmem:[#allocation18_spill] sm:$0xff] }
 0x547   : > { %12302 = vst [vmem:[#allocation35_spill] sm:$0xff] %v10908_v32  ;;  %v5630_v34 = vcombine.low %v10886_v13, %v10883_v63  ;;  %v10918_v29 = vpop.permute.xlu1 %5914  ;;  %7063 = vrot.lane.b32.xlu1 %v7062_v1, %s7417_s29  ;;  %v7017_v28 = vpack.i.bf16 %v3528_v37, %v3392_v52  ;;  %v3913_v43 = vcombine.high %v10623_v54, %v10279_v61  ;;  %v12308_v37 = vld [vmem:[#allocation64_spill] sm:$0xff]  ;;  %v12310_v52 = vld [vmem:[#allocation66_spill] sm:$0xff] }
 0x548   : > { %v10929_v22 = vrot.slane %v5662_v33, %v12117_v20  ;;  %v12305_v57 = vcombine.high %v12297_v21, %v12298_v45  ;;  %v5069_v56 = vcombine.high %v10802_v15, %v10824_v51  ;;  %v5988_v12 = vcombine.low %v12307_v48, %v12306_v49  ;;  %v12309_v1 = vld [vmem:[#allocation60_spill] sm:$0xff]  ;;  %v12312_v21 = vld [vmem:[#allocation65_spill] sm:$0xff]  ;;  %v12314_v15 = vld [vmem:[#allocation27_spill] sm:$0xff] }
 0x549   : > { %v10932_v8 = vrot.slane %v5630_v34, %v12117_v20  ;;  %v6124_v38 = vcombine.low %v12309_v1, %v12308_v37  ;;  %v6140_v33 = vcombine.low %v12311_v23, %v12310_v52  ;;  %v4629_v34 = vcombine.high %v10897_v53, %v10922_v39  ;;  %7018 = vrot.lane.b32.xlu0 %v7017_v28, %s7419_s13  ;;  %v12313_v45 = vld [vmem:[#allocation61_spill] sm:$0xff]  ;;  %v12315_v51 = vld [vmem:[#allocation50_spill] sm:$0xff]  ;;  %v12316_v52 = vld [vmem:[#allocation28_spill] sm:$0xff] }
 0x54a   : > { %12303 = vst [vmem:[#allocation42_spill] sm:$0xff] %v10929_v22  ;;  %v7067_v17 = vpack.i.bf16 %v12305_v57, %v3919_v27  ;;  %v10948_v61 = vpop.permute.xlu0 %5912  ;;  %v6004_v27 = vcombine.low %v12313_v45, %v12312_v21  ;;  %v3864_v57 = vcombine.low %v12315_v51, %v12314_v15  ;;  %v4679_v23 = vcombine.high %v10829_v14, %v10739_v0  ;;  %v12317_v28 = vld [vmem:[#allocation44_spill] sm:$0xff]  ;;  %v12318_v45 = vld [vmem:[#allocation97_spill] sm:$0xff]  ;;  %v12323_v22 = vld [vmem:[#allocation55_spill] sm:$0xff] }
 0x54b   : > { %12304 = vst [vmem:[#allocation52_spill] sm:$0xff] %v10932_v8  ;;  %v10956_v48 = vpop.permute.xlu1 %5918  ;;  %v10964_v1 = vrot.slane %v5019_v50, %v12117_v20  ;;  %v12319_v21 = vld [vmem:[#allocation72_spill] sm:$0xff]  ;;  %v12322_v8 = vld [vmem:[#allocation43_spill] sm:$0xff]  ;;  %v5831_v14 = vcombine.high %v10844_v35, %v10837_v41  ;;  %v10978_v50 = vrot.slane %v6124_v38, %v12204_v4  ;;  %v10981_v49 = vrot.slane %v6140_v33, %v12204_v4 }
 0x54c   : > { %7068 = vrot.lane.b32.xlu1 %v7067_v17, %s7424_s18  ;;  %v12320_v37 = vcombine.high %v12318_v45, %v12319_v21  ;;  %v12321_v51 = vld [vmem:[#allocation92_spill] sm:$0xff]  ;;  %v5767_v17 = vcombine.high %v10808_v59, %v10805_v44  ;;  %v7072_v0 = vpack.i.bf16 %v5069_v56, %v4679_v23  ;;  %v5799_v59 = vcombine.high %v10761_v58, %v10756_v42  ;;  %v12330_v21 = vld [vmem:[#allocation74_spill] sm:$0xff] }
 0x54d   : > { %v3914_v54 = vcombine.low %v10914_v62, %v12321_v51  ;;  %12324 = vst [vmem:[#allocation58_spill] sm:$0xff] %v10978_v50  ;;  %12325 = vst [vmem:[#allocation51_spill] sm:$0xff] %v10981_v49  ;;  %v10994_v44 = vrot.slane %v5988_v12, %v12204_v4  ;;  %v10997_v23 = vrot.slane %v6004_v27, %v12204_v4 }
 0x54e   : > { %v7027_v15 = vpack.i.bf16 %v12320_v37, %v3913_v43  ;;  %v10984_v43 = vrot.slane %v4629_v34, %v12117_v20  ;;  %v6092_v37 = vcombine.low %v10870_v11, %v10956_v48  ;;  %v10989_v32 = vpop.permute.xlu0 %5916  ;;  %v3872_v56 = vrot.slane %v3864_v57, %v12117_v20  ;;  %v12326_v34 = vld [vmem:[#allocation98_spill] sm:$0xff] }
 0x54f   : > { %v11000_v38 = vpop.permute.xlu1 %5922  ;;  %v3915_v42 = vcombine.high %v10914_v62, %v12321_v51  ;;  %v5072_v58 = vcombine.low %v10964_v1, %v10911_v9  ;;  %v5615_v12 = vcombine.high %v12292_v36, %v12291_v5  ;;  %v11015_v27 = vrot.slane %v5767_v17, %v12117_v20 }
 0x550   : > { %7028 = vrot.lane.b32.xlu0 %v7027_v15, %s7421_s14  ;;  %7073 = vrot.lane.b32.xlu1 %v7072_v0, %s7422_s20  ;;  %v6108_v33 = vcombine.low %v10918_v29, %v11000_v38  ;;  %v12327_v15 = vld [vmem:[#allocation73_spill] sm:$0xff]  ;;  %v5956_v57 = vcombine.low %v10903_v26, %v10989_v32  ;;  %v12329_v0 = vld [vmem:[#allocation99_spill] sm:$0xff]  ;;  %v4682_v36 = vcombine.low %v10984_v43, %v10894_v40 }
 0x551   : > { %v12328_v41 = vcombine.low %v12326_v34, %v12327_v15  ;;  %v12331_v45 = vcombine.high %v12329_v0, %v12330_v21  ;;  %v11036_v51 = vrot.slane %v5799_v59, %v12117_v20  ;;  %v12334_v59 = vcombine.high %v12326_v34, %v12327_v15 }
 0x552   : > { %v11028_v62 = vrot.slane %v6108_v33, %v12204_v4  ;;  %v11031_v5 = vpop.permute.xlu0 %5920  ;;  %v7092_v0 = vpack.i.bf16 %v5072_v58, %v4682_v36  ;;  %v4628_v34 = vcombine.low %v10897_v53, %v10922_v39  ;;  %v5583_v15 = vcombine.high %v10789_v47, %v10833_v18  ;;  %v12339_v36 = vld [vmem:[#allocation76_spill] sm:$0xff] }
 0x553   : > { %v7032_v35 = vpack.i.bf16 %v12328_v41, %v3914_v54  ;;  %v7087_v11 = vpack.i.bf16 %v5831_v14, %v12331_v45  ;;  %v6188_v54 = vcombine.low %v10978_v50, %v10981_v49  ;;  %v11025_v41 = vrot.slane %v6092_v37, %v12204_v4  ;;  %v12333_v14 = vld [vmem:[#allocation84_spill] sm:$0xff] }
 0x554   : > { %v6052_v45 = vcombine.low %v10994_v44, %v10997_v23  ;;  %v5972_v17 = vcombine.low %v10948_v61, %v11031_v5  ;;  %v3916_v37 = vcombine.low %v3872_v56, %v12333_v14  ;;  %v7037_v21 = vpack.i.bf16 %v12334_v59, %v3915_v42  ;;  %v12335_v42 = vld [vmem:[#allocation100_spill] sm:$0xff] }
 0x555   : > { %12332 = vst [vmem:[#allocation37_spill] sm:$0xff] %v11025_v41  ;;  %7033 = vrot.lane.b32.xlu0 %v7032_v35, %s7417_s29  ;;  %7088 = vrot.lane.b32.xlu1 %v7087_v11, %s7421_s14  ;;  %v5018_v35 = vcombine.low %v10878_v6, %v10900_v46  ;;  %v6156_v33 = vcombine.low %v11025_v41, %v11028_v62 }
 0x556   : > { %v5567_v50 = vcombine.high %v10819_v55, %v10860_v16  ;;  %v11054_v49 = vrot.slane %v5956_v57, %v12204_v4  ;;  %v11057_v11 = vrot.slane %v5972_v17, %v12204_v4  ;;  %v5832_v6 = vcombine.low %v11015_v27, %v11036_v51 }
 0x557   : > { %v5599_v46 = vcombine.high %v12290_v30, %v12289_v10  ;;  %v11064_v41 = vrot.slane %v6188_v54, %v12117_v20  ;;  %v11069_v55 = vrot.slane %v6156_v33, %v12117_v20  ;;  %v11073_v16 = vrot.slane %v6052_v45, %v12117_v20  ;;  %v12343_v33 = vld [vmem:[#allocation35_spill] sm:$0xff] }
 0x558   : > { %v6020_v10 = vcombine.low %v11054_v49, %v11057_v11  ;;  %v3917_v30 = vcombine.high %v3872_v56, %v12333_v14  ;;  %v5026_v53 = vrot.slane %v5018_v35, %v12117_v20  ;;  %v5073_v54 = vcombine.high %v10964_v1, %v10911_v9 }
 0x559   : > { %7038 = vrot.lane.b32.xlu0 %v7037_v21, %s7422_s20  ;;  %7093 = vrot.lane.b32.xlu1 %v7092_v0, %s7419_s13  ;;  %v6220_v39 = vcombine.low %v11069_v55, %v11064_v41  ;;  %v12336_v21 = vld [vmem:[#allocation75_spill] sm:$0xff]  ;;  %v11090_v47 = vrot.slane %v5567_v50, %v12204_v4  ;;  %v5631_v18 = vcombine.high %v10886_v13, %v10883_v63  ;;  %v12338_v0 = vld [vmem:[#allocation101_spill] sm:$0xff] }
 0x55a   : > { %v12337_v58 = vcombine.low %v12335_v42, %v12336_v21  ;;  %v11095_v56 = vrot.slane %v6020_v10, %v12117_v20  ;;  %v12340_v45 = vcombine.low %v12338_v0, %v12339_v36  ;;  %v11101_v14 = vrot.slane %v5599_v46, %v12204_v4 }
 0x55b   : > { %v5663_v9 = vcombine.high %v10813_v19, %v10816_v60  ;;  %v4636_v1 = vrot.slane %v4628_v34, %v12117_v20  ;;  %v5703_v63 = vcombine.high %v10750_v31, %v10782_v25  ;;  %v11113_v13 = vrot.slane %v5583_v15, %v12204_v4 }
 0x55c   : > { %v7042_v57 = vpack.i.bf16 %v12337_v58, %v3916_v37  ;;  %v7102_v17 = vpack.i.bf16 %v5832_v6, %v12340_v45  ;;  %v11104_v37 = vrot.slane %v5615_v12, %v12204_v4  ;;  %v6084_v50 = vcombine.low %v11095_v56, %v11073_v16 }
 0x55d   : > { %v4683_v12 = vcombine.high %v10984_v43, %v10894_v40  ;;  %v12341_v19 = vcombine.low %v12285_v3, %v12284_v7  ;;  %v5719_v35 = vcombine.high %v10720_v24, %v10758_v2  ;;  %v12342_v31 = vcombine.high %v12335_v42, %v12336_v21  ;;  %v12349_v42 = vld [vmem:[#allocation77_spill] sm:$0xff] }
 0x55e   : > { %7043 = vrot.lane.b32.xlu0 %v7042_v57, %s7418_s16  ;;  %7103 = vrot.lane.b32.xlu1 %v7102_v17, %s7417_s29  ;;  %v5070_v59 = vcombine.low %v5026_v53, %v12343_v33  ;;  %v11131_v6 = vrot.slane %v5631_v18, %v12117_v20  ;;  %v5646_v40 = vcombine.low %v11090_v47, %v11113_v13  ;;  %v12351_v57 = vld [vmem:[#allocation14_spill] sm:$0xff] }
 0x55f   : > { %v4668_v60 = vrot.slane %v12341_v19, %v12117_v20  ;;  %v7047_v25 = vpack.i.bf16 %v12342_v31, %v3917_v30  ;;  %v7107_v43 = vpack.i.bf16 %v5073_v54, %v4683_v12  ;;  %v5833_v7 = vcombine.high %v11015_v27, %v11036_v51  ;;  %v12352_v54 = vld [vmem:[#allocation67_spill] sm:$0xff] }
 0x560   : > { %v12344_v2 = vcombine.high %v12323_v22, %v12322_v8  ;;  %v12345_v3 = vcombine.high %v12317_v28, %v12316_v52  ;;  %v5677_v15 = vrot.slane %v5663_v9, %v12117_v20  ;;  %v5678_v10 = vcombine.low %v11101_v14, %v11104_v37  ;;  %v12346_v22 = vld [vmem:[#allocation88_spill] sm:$0xff]  ;;  %v12347_v8 = vld [vmem:[#allocation93_spill] sm:$0xff] }
 0x561   : > { %v4680_v34 = vcombine.low %v4636_v1, %v4668_v60  ;;  %v5717_v27 = vrot.slane %v5703_v63, %v12204_v4  ;;  %v12348_v51 = vcombine.high %v12346_v22, %v12347_v8  ;;  %v12350_v52 = vld [vmem:[#allocation85_spill] sm:$0xff]  ;;  %v5071_v58 = vcombine.high %v5026_v53, %v12343_v33 }
 0x562   : > { %v5749_v24 = vrot.slane %v12344_v2, %v12204_v4  ;;  %v5765_v46 = vrot.slane %v12345_v3, %v12204_v4  ;;  %7048 = vrot.lane.b32.xlu0 %v7047_v25, %s7423_s26  ;;  %7108 = vrot.lane.b32.xlu1 %v7107_v43, %s7424_s18  ;;  %v5272_v28 = vcombine.low %v12350_v52, %v12349_v42 }
 0x563   : > { %v5239_v30 = vrot.slane %v12348_v51, %v12117_v20  ;;  %v7077_v21 = vpack.i.bf16 %v5070_v59, %v4680_v34  ;;  %v12353_v18 = vcombine.high %v12351_v57, %v12352_v54  ;;  %v5733_v17 = vrot.slane %v5719_v35, %v12204_v4  ;;  %v12358_v34 = vld [vmem:[#allocation42_spill] sm:$0xff]  ;;  %v12361_v51 = vld [vmem:[#allocation103_spill] sm:$0xff] }
 0x564   : > { %v11164_v9 = vrot.slane %v5646_v40, %v12117_v20  ;;  %v12354_v63 = vcombine.high %v12338_v0, %v12339_v36  ;;  %v5697_v19 = vcombine.high %v11131_v6, %v5677_v15  ;;  %v5273_v31 = vcombine.high %v12350_v52, %v12349_v42  ;;  %v12355_v0 = vld [vmem:[#allocation89_spill] sm:$0xff]  ;;  %v12356_v36 = vld [vmem:[#allocation94_spill] sm:$0xff] }
 0x565   : > { %v5271_v45 = vrot.slane %v12353_v18, %v12117_v20  ;;  %v5814_v53 = vcombine.low %v5749_v24, %v5765_v46  ;;  %v5815_v25 = vcombine.high %v5749_v24, %v5765_v46  ;;  %v4681_v33 = vcombine.high %v4636_v1, %v4668_v60  ;;  %v12359_v24 = vld [vmem:[#allocation52_spill] sm:$0xff] }
 0x566   : > { %v7117_v12 = vpack.i.bf16 %v5833_v7, %v12354_v63  ;;  %7078 = vrot.lane.b32.xlu0 %v7077_v21, %s7418_s16  ;;  %v11174_v59 = vrot.slane %v5678_v10, %v12117_v20  ;;  %v5782_v35 = vcombine.low %v5717_v27, %v5733_v17  ;;  %v12357_v43 = vcombine.low %v12355_v0, %v12356_v36 }
 0x567   : > { %v5291_v40 = vcombine.high %v5239_v30, %v5271_v45  ;;  %v5783_v2 = vcombine.high %v5717_v27, %v5733_v17  ;;  %v7082_v3 = vpack.i.bf16 %v5071_v58, %v4681_v33  ;;  %v5695_v46 = vcombine.high %v12359_v24, %v12358_v34  ;;  %v12360_v27 = vld [vmem:[#allocation107_spill] sm:$0xff]  ;;  %v12365_v33 = vld [vmem:[#allocation18_spill] sm:$0xff] }
 0x568   : > { %7118 = vrot.lane.b32.xlu1 %v7117_v12, %s7422_s20  ;;  %v11181_v7 = vrot.slane %v12357_v43, %v12117_v20  ;;  %v5679_v1 = vcombine.high %v11101_v14, %v11104_v37  ;;  %v11188_v10 = vrot.slane %v5272_v28, %v12117_v20  ;;  %v5698_v22 = vcombine.low %v11164_v9, %v11174_v59  ;;  %v12362_v37 = vld [vmem:[#allocation64_spill] sm:$0xff]  ;;  %v12367_v43 = vld [vmem:[#allocation61_spill] sm:$0xff] }
 0x569   : > { %v7122_v60 = vpack.i.bf16 %v5697_v19, %v5291_v40  ;;  %v11193_v8 = vrot.slane %v5814_v53, %v12117_v20  ;;  %v5289_v42 = vcombine.high %v12361_v51, %v12360_v27  ;;  %v11199_v52 = vrot.slane %v5273_v31, %v12117_v20  ;;  %v12363_v28 = vld [vmem:[#allocation60_spill] sm:$0xff]  ;;  %v12366_v40 = vld [vmem:[#allocation65_spill] sm:$0xff] }
 0x56a   : > { %7083 = vrot.lane.b32.xlu0 %v7082_v3, %s7423_s26  ;;  %v11202_v14 = vrot.slane %v5815_v25, %v12117_v20  ;;  %v6125_v21 = vcombine.high %v12363_v28, %v12362_v37  ;;  %v5790_v58 = vrot.slane %v5782_v35, %v12117_v20  ;;  %v5292_v57 = vcombine.low %v11181_v7, %v11188_v10  ;;  %v12364_v25 = vld [vmem:[#allocation63_spill] sm:$0xff] }
 0x56b   : > { %v11211_v54 = vrot.slane %v5783_v2, %v12117_v20  ;;  %v5647_v18 = vcombine.high %v11090_v47, %v11113_v13  ;;  %v7097_v17 = vpack.i.bf16 %v5695_v46, %v5289_v42  ;;  %v5696_v63 = vcombine.low %v11131_v6, %v5677_v15  ;;  %v12368_v47 = vld [vmem:[#allocation66_spill] sm:$0xff] }
 0x56c   : > { %7123 = vrot.lane.b32.xlu1 %v7122_v60, %s7422_s20  ;;  %v11217_v12 = vrot.slane %v5679_v1, %v12117_v20  ;;  %v5973_v19 = vcombine.high %v10948_v61, %v11031_v5  ;;  %v7132_v31 = vpack.i.bf16 %v5698_v22, %v5292_v57  ;;  %v6085_v53 = vcombine.high %v11095_v56, %v11073_v16  ;;  %v12369_v13 = vld [vmem:[#allocation62_spill] sm:$0xff]  ;;  %v12370_v22 = vld [vmem:[#allocation31_spill] sm:$0xff] }
 0x56d   : > { %v5989_v35 = vcombine.high %v12365_v33, %v12364_v25  ;;  %v6005_v2 = vcombine.high %v12367_v43, %v12366_v40  ;;  %v6141_v3 = vcombine.high %v12369_v13, %v12368_v47  ;;  %v5290_v6 = vcombine.low %v5239_v30, %v5271_v45  ;;  %v12379_v40 = vld [vmem:[#allocation106_spill] sm:$0xff] }
 0x56e   : > { %7098 = vrot.lane.b32.xlu0 %v7097_v17, %s7421_s14  ;;  %v11231_v15 = vrot.slane %v6125_v21, %v12204_v4  ;;  %v5957_v61 = vcombine.high %v10903_v26, %v10989_v32  ;;  %v6109_v5 = vcombine.high %v10918_v29, %v11000_v38  ;;  %v6221_v46 = vcombine.high %v11069_v55, %v11064_v41 }
 0x56f   : > { %v11241_v1 = vrot.slane %v5647_v18, %v12117_v20  ;;  %v7112_v60 = vpack.i.bf16 %v5696_v63, %v5290_v6  ;;  %v5834_v30 = vcombine.low %v5790_v58, %v11193_v8  ;;  %v5836_v45 = vcombine.low %v11211_v54, %v11202_v14  ;;  %v12371_v18 = vld [vmem:[#allocation37_spill] sm:$0xff] }
 0x570   : > { %7133 = vrot.lane.b32.xlu1 %v7132_v31, %s7418_s16  ;;  %v6093_v26 = vcombine.high %v12370_v22, %v10956_v48  ;;  %v5987_v32 = vrot.slane %v5973_v19, %v12204_v4  ;;  %v6021_v29 = vcombine.high %v11054_v49, %v11057_v11  ;;  %v7142_v38 = vpack.i.bf16 %v6221_v46, %v6085_v53  ;;  %v12375_v19 = vld [vmem:[#allocation104_spill] sm:$0xff]  ;;  %v12376_v31 = vld [vmem:[#allocation102_spill] sm:$0xff] }
 0x571   : > { %v6003_v42 = vrot.slane %v5989_v35, %v12204_v4  ;;  %v6019_v37 = vrot.slane %v6005_v2, %v12204_v4  ;;  %v6053_v28 = vcombine.high %v10994_v44, %v10997_v23  ;;  %v6155_v21 = vrot.slane %v6141_v3, %v12204_v4  ;;  %v12373_v44 = vld [vmem:[#allocation51_spill] sm:$0xff]  ;;  %v12374_v23 = vld [vmem:[#allocation58_spill] sm:$0xff]  ;;  %v12378_v35 = vld [vmem:[#allocation105_spill] sm:$0xff] }
 0x572   : > { %7113 = vrot.lane.b32.xlu0 %v7112_v60, %s7417_s29  ;;  %v5971_v57 = vrot.slane %v5957_v61, %v12204_v4  ;;  %v6123_v48 = vrot.slane %v6109_v5, %v12204_v4  ;;  %v6157_v17 = vcombine.high %v12371_v18, %v11028_v62  ;;  %v12372_v49 = vcombine.high %v12355_v0, %v12356_v36 }
 0x573   : > { %v6189_v63 = vcombine.high %v12374_v23, %v12373_v44  ;;  %v12377_v53 = vcombine.low %v12375_v19, %v12376_v31  ;;  %v5835_v33 = vcombine.high %v5790_v58, %v11193_v8  ;;  %v12380_v62 = vcombine.low %v12378_v35, %v12379_v40 }
 0x574   : > { %7143 = vrot.lane.b32.xlu1 %v7142_v38, %s7421_s14  ;;  %v11266_v11 = vrot.slane %v12372_v49, %v12117_v20  ;;  %v6107_v2 = vrot.slane %v6093_v26, %v12204_v4  ;;  %v6035_v47 = vrot.slane %v6021_v29, %v12117_v20  ;;  %v6036_v0 = vcombine.low %v5971_v57, %v5987_v32  ;;  %v11300_v49 = vpop.permute.xlu1 %6893 }
 0x575   : > { %v7127_v25 = vpack.i.bf16 %v5834_v30, %v12377_v53  ;;  %v7152_v43 = vpack.i.bf16 %v5836_v45, %v12380_v62  ;;  %v5700_v36 = vcombine.low %v11241_v1, %v11217_v12  ;;  %v6068_v13 = vcombine.low %v6003_v42, %v6019_v37 }
 0x576   : > { %v6067_v3 = vrot.slane %v6053_v28, %v12117_v20  ;;  %v6171_v6 = vrot.slane %v6157_v17, %v12117_v20  ;;  %v6172_v8 = vcombine.low %v6107_v2, %v6123_v48  ;;  %v5294_v58 = vcombine.low %v11266_v11, %v11199_v52 }
 0x577   : > { %7128 = vrot.lane.b32.xlu0 %v7127_v25, %s7418_s16  ;;  %v6203_v4 = vrot.slane %v6189_v63, %v12117_v20  ;;  %v6204_v61 = vcombine.low %v11231_v15, %v6155_v21  ;;  %v12381_v5 = vcombine.high %v12375_v19, %v12376_v31  ;;  %v5699_v60 = vcombine.high %v11164_v9, %v11174_v59 }
 0x578   : > { %7153 = vrot.lane.b32.xlu1 %v7152_v43, %s7419_s13  ;;  %v6037_v30 = vcombine.high %v5971_v57, %v5987_v32  ;;  %v6044_v45 = vrot.slane %v6036_v0, %v12117_v20  ;;  %v7162_v22 = vpack.i.bf16 %v5700_v36, %v5294_v58  ;;  %v6087_v26 = vcombine.high %v6035_v47, %v6067_v3  ;;  %v11313_v31 = vpop.permute.xlu1 %6903 }
 0x579   : > { %v7137_v46 = vpack.i.bf16 %v5835_v33, %v12381_v5  ;;  %v6069_v29 = vcombine.high %v6003_v42, %v6019_v37  ;;  %v5293_v38 = vcombine.high %v11181_v7, %v11188_v10  ;;  %v6076_v28 = vrot.slane %v6068_v13, %v12117_v20  ;;  %v11315_v33 = vpop.permute.xlu0 %6888 }
 0x57a   : > { %v6173_v18 = vcombine.high %v6107_v2, %v6123_v48  ;;  %v6180_v17 = vrot.slane %v6172_v8, %v12117_v20  ;;  %v6223_v9 = vcombine.high %v6171_v6, %v6203_v4  ;;  %v6205_v59 = vcombine.high %v11231_v15, %v6155_v21 }
 0x57b   : > { %7138 = vrot.lane.b32.xlu0 %v7137_v46, %s7423_s26  ;;  %v7147_v32 = vpack.i.bf16 %v5699_v60, %v5293_v38  ;;  %v6086_v57 = vcombine.low %v6035_v47, %v6067_v3  ;;  %v6212_v42 = vrot.slane %v6204_v61, %v12117_v20  ;;  %v6051_v37 = vrot.slane %v6037_v30, %v12117_v20 }
 0x57c   : > { %7163 = vrot.lane.b32.xlu1 %v7162_v22, %s7419_s13  ;;  %v7172_v44 = vpack.i.bf16 %v6223_v9, %v6087_v26  ;;  %v6088_v7 = vcombine.low %v6044_v45, %v6076_v28  ;;  %v6222_v10 = vcombine.low %v6171_v6, %v6203_v4  ;;  %v6083_v48 = vrot.slane %v6069_v29, %v12117_v20  ;;  %v11327_v47 = vpop.permute.xlu1 %6913 }
 0x57d   : > { %v6187_v23 = vrot.slane %v6173_v18, %v12117_v20  ;;  %v6224_v63 = vcombine.low %v6180_v17, %v6212_v42  ;;  %v5837_v15 = vcombine.high %v11211_v54, %v11202_v14  ;;  %v6219_v21 = vrot.slane %v6205_v59, %v12117_v20  ;;  %v11330_v0 = vpop.permute.xlu0 %6898  ;;  %v12383_v59 = vld [vmem:[#allocation81_spill] sm:$0xff] }
 0x57e   : > { %v7157_v19 = vpack.i.bf16 %v6222_v10, %v6086_v57  ;;  %v6090_v25 = vcombine.low %v6051_v37, %v6083_v48  ;;  %v12382_v43 = vcombine.high %v12378_v35, %v12379_v40  ;;  %v5701_v14 = vcombine.high %v11241_v1, %v11217_v12  ;;  %v6309_v35 = vld [vmem:[%s11665_s5] sm:$0xf] }
 0x57f   : > { %7148 = vrot.lane.b32.xlu0 %v7147_v32, %s7423_s26  ;;  %v7182_v53 = vpack.i.bf16 %v6224_v63, %v6088_v7  ;;  %v6226_v62 = vcombine.low %v6187_v23, %v6219_v21  ;;  %v5295_v20 = vcombine.high %v11266_v11, %v11199_v52  ;;  %v6089_v13 = vcombine.high %v6044_v45, %v6076_v28  ;;  %v12384_v32 = vld [vmem:[#allocation70_spill] sm:$0xff] }
 0x580   : > { %7173 = vrot.lane.b32.xlu1 %v7172_v44, %s7422_s20  ;;  %v7167_v2 = vpack.i.bf16 %v5837_v15, %v12382_v43  ;;  %v6225_v12 = vcombine.high %v6180_v17, %v6212_v42  ;;  %v6091_v3 = vcombine.high %v6051_v37, %v6083_v48  ;;  %v6227_v11 = vcombine.high %v6187_v23, %v6219_v21  ;;  %v12386_v37 = vld [vmem:[#allocation20_spill] sm:$0xff]  ;;  %v12387_v44 = vld [vmem:[#allocation47_spill] sm:$0xff] }
 0x581   : > { %v7192_v54 = vpack.i.bf16 %v6226_v62, %v6090_v25  ;;  %v7177_v36 = vpack.i.bf16 %v5701_v14, %v5295_v20  ;;  %v11336_v52 = vpop.permute.xlu0 %6908  ;;  %v12385_v57 = vcombine.low %v12383_v59, %v12384_v32  ;;  %v12388_v7 = vcombine.low %v12386_v37, %v12387_v44 }
 0x582   : > { %v7187_v40 = vpack.i.bf16 %v6225_v12, %v6089_v13  ;;  %v7197_v8 = vpack.i.bf16 %v6227_v11, %v6091_v3  ;;  %v6890_v37 = vunpack.i.l.bf16 %v11315_v33 }
 0x583   : > { %7158 = vrot.lane.b32.xlu0 %v7157_v19, %s7417_s29  ;;  %s6491_s29 = sshll.u32 %s7621_s17, 3 }
 0x584   : > { %7183 = vrot.lane.b32.xlu1 %v7182_v53, %s7418_s16  ;;  %s6503_s16 = sshll.u32 %s7482_s25, 7  ;;  %s7425_s25 = smov [#allocation9]  }
 0x585   : > { %v6924_v1 = vpop.permute.xlu1 %6923  ;;  %v11340_v4 = vpop.permute.xlu0 %6918  ;;  %s7339_s19 = sshll.u32 %s7425_s25, 4  ;;  %s7340_s19 = int_to_ptr.vmem [resolvable:$false] %s7339_s19 }
 0x586   : > { %v6926_v30 = vunpack.i.h.bf16 %v6924_v1  ;;  %v6925_v45 = vunpack.i.l.bf16 %v6924_v1  ;;  %s7341_s0 = scalar_lea.vmem %s7340_s19, 256 }
 0x587   : > { %7168 = vrot.lane.b32.xlu0 %v7167_v2, %s7424_s18 }
 0x588   : > { %7193 = vrot.lane.b32.xlu1 %v7192_v54, %s7419_s13  ;;  %v4334_v42 = vsel %vm647_vm3, %v12385_v57, %v6926_v30  ;;  %v3976_v10 = vsel %vm647_vm3, %v12388_v7, %v6925_v45  ;;  %v12389_v45 = vld [vmem:[#allocation13_spill] sm:$0xff]  ;;  %s309_s13 = scalar_lea.vmem [#allocation9], %s6491_s29 }
 0x589   : > { %v6929_v6 = vpop.permute.xlu1 %6928  ;;  %v6944_v5 = vpop.permute.xlu0 %6943  ;;  %s6386_s14 = sshll.u32 %s309_s13, 4  ;;  %s11618_s14 = int_to_ptr.vmem [resolvable:$true] %s6386_s14 }
 0x58a   : > { %v6931_v22 = vunpack.i.h.bf16 %v6929_v6  ;;  %v6930_v26 = vunpack.i.l.bf16 %v6929_v6  ;;  %v6946_v62 = vunpack.i.h.bf16 %v6944_v5  ;;  %v6945_v43 = vunpack.i.l.bf16 %v6944_v5  ;;  %s7335_s28 = scalar_lea.vmem %s11618_s14, 128  ;;  %p7342_p5 = scmp.lt.s32.totalorder %s11618_s14, %s7340_s19 }
 0x58b   : > { %7178 = vrot.lane.b32.xlu0 %v7177_v36, %s7424_s18  ;;  %p7336_p13 = scmp.ne.s32.totalorder %s11618_s14, %s7335_s28  ;;  %p7343_p7 = scmp.lt.s32.totalorder %s7341_s0, %s7335_s28 }
 0x58c   : > { %6312 = vperm.xlu1 %6886, %v6309_v35   ;;  %v3977_v48 = vsel %vm649_vm4, %v3976_v10, %v6930_v26  ;;  %v4335_v23 = vsel %vm649_vm4, %v4334_v42, %v6931_v22  ;;  %v12390_v22 = vld [vmem:[#allocation24_spill] sm:$0xff] }
 0x58d   : > { %v12391_v26 = vcombine.low %v12389_v45, %v12390_v22  ;;  %p7337_p12 = pnand %p7336_p13, %p12427_p1  ;;  %p7344_p9 = por %p7343_p7, %p7342_p5 }
 0x58e   : > { %v6934_v58 = vpop.permute.xlu1 %6933 }
 0x58f   : > { %7188 = vrot.lane.b32.xlu0 %v7187_v40, %s7423_s26  ;;  %v6936_v38 = vunpack.i.h.bf16 %v6934_v58  ;;  %v6935_v28 = vunpack.i.l.bf16 %v6934_v58  ;;  %p7338_p10 = pneg %p7337_p12 }
 0x591   : > { %v3978_v19 = vsel %vm651_vm5, %v3977_v48, %v6935_v28  ;;  %v4336_v15 = vsel %vm651_vm5, %v4335_v23, %v6936_v38  ;;  %v12392_v28 = vld [vmem:[#allocation25_spill] sm:$0xff]  ;;  %p7345_p11 = pnand %p7344_p9, %p7338_p10 }
 0x592   : > { %v6939_v61 = vpop.permute.xlu1 %6938 }
 0x593   : > { %7198 = vrot.lane.b32.xlu0 %v7197_v8, %s7424_s18  ;;  %v6941_v17 = vunpack.i.h.bf16 %v6939_v61  ;;  %v6940_v9 = vunpack.i.l.bf16 %v6939_v61  ;;  %s11616_s18 = scalar_lea.hbm %s11666_s6, %s6503_s16 }
 0x595   : > { %v3979_v53 = vsel %vm653_vm6, %v3978_v19, %v6940_v9  ;;  %v4337_v25 = vsel %vm653_vm6, %v4336_v15, %v6941_v17 }
 0x596   : > { %v6969_v46 = vpop.permute.xlu1 %6968  ;;  %v6949_v60 = vpop.permute.xlu0 %6948  ;;  %v3980_v20 = vsel %vm655_vm7, %v3979_v53, %v6945_v43  ;;  %v4338_v36 = vsel %vm655_vm7, %v4337_v25, %v6946_v62  ;;  %v6891_v62 = vunpack.i.h.bf16 %v11315_v33  ;;  %v12395_v43 = vld [vmem:[#allocation78_spill] sm:$0xff] }
 0x597   : > { %v6951_v35 = vunpack.i.h.bf16 %v6949_v60  ;;  %v6950_v12 = vunpack.i.l.bf16 %v6949_v60  ;;  %v6971_v57 = vunpack.i.h.bf16 %v6969_v46  ;;  %v6970_v42 = vunpack.i.l.bf16 %v6969_v46 }
 0x599   : > { %v4740_v38 = vsel %vm647_vm3, %v12391_v26, %v6950_v12  ;;  %v12398_v26 = vld [vmem:[#allocation95_spill] sm:$0xff] }
 0x59a   : > { %v6974_v29 = vpop.permute.xlu1 %6973 }
 0x59b   : > { %v6954_v18 = vpop.permute.xlu0 %6953  ;;  %v6976_v15 = vunpack.i.h.bf16 %v6974_v29 }
 0x59c   : > { %v6956_v2 = vunpack.i.h.bf16 %v6954_v18  ;;  %v6955_v14 = vunpack.i.l.bf16 %v6954_v18  ;;  %v12393_v18 = vld [vmem:[#allocation45_spill] sm:$0xff] }
 0x59d   : > { %v12394_v17 = vcombine.low %v12392_v28, %v12393_v18 }
 0x59e   : > { %v11352_v63 = vpop.permute.xlu1 %6993  ;;  %v3981_v3 = vsel %vm657_vm8, %v3980_v20, %v6955_v14  ;;  %v4339_v11 = vsel %vm657_vm8, %v4338_v36, %v6956_v2  ;;  %v12396_v2 = vld [vmem:[#allocation68_spill] sm:$0xff]  ;;  %v6900_v20 = vunpack.i.l.bf16 %v11330_v0 }
 0x59f   : > { %v6959_v21 = vpop.permute.xlu0 %6958  ;;  %v5130_v9 = vsel %vm647_vm3, %v12394_v17, %v6951_v35  ;;  %v12397_v46 = vcombine.low %v12395_v43, %v12396_v2  ;;  %v6996_v33 = vunpack.i.h.bf16 %v11352_v63  ;;  %v6901_v17 = vunpack.i.h.bf16 %v11330_v0 }
 0x5a0   : > { %v6961_v6 = vunpack.i.h.bf16 %v6959_v21  ;;  %v6960_v8 = vunpack.i.l.bf16 %v6959_v21  ;;  %v6975_v21 = vunpack.i.l.bf16 %v6974_v29 }
 0x5a1   : > { %v3180_v14 = vsel %vm647_vm3, %v12397_v46, %v6890_v37 }
 0x5a2   : > { %v11358_v54 = vpop.permute.xlu1 %7003  ;;  %v4741_v59 = vsel %vm649_vm4, %v4740_v38, %v6960_v8  ;;  %v5131_v32 = vsel %vm649_vm4, %v5130_v9, %v6961_v6  ;;  %v12399_v38 = vld [vmem:[#allocation69_spill] sm:$0xff] }
 0x5a3   : > { %v6964_v13 = vpop.permute.xlu0 %6963  ;;  %v4742_v7 = vsel %vm651_vm5, %v4741_v59, %v6970_v42  ;;  %v5132_v10 = vsel %vm651_vm5, %v5131_v32, %v6971_v57  ;;  %v12400_v28 = vcombine.low %v12398_v26, %v12399_v38  ;;  %v6896_v59 = vunpack.i.h.bf16 %v11300_v49 }
 0x5a4   : > { %v6966_v1 = vunpack.i.h.bf16 %v6964_v13  ;;  %v6965_v40 = vunpack.i.l.bf16 %v6964_v13  ;;  %v4743_v36 = vsel %vm653_vm6, %v4742_v7, %v6975_v21  ;;  %v5133_v13 = vsel %vm653_vm6, %v5132_v10, %v6976_v15  ;;  %v12401_v10 = vld [vmem:[#allocation30_spill] sm:$0xff]  ;;  %v12404_v15 = vld [vmem:[#allocation36_spill] sm:$0xff] }
 0x5a5   : > { %v3187_v18 = vsel %vm647_vm3, %v12400_v28, %v6891_v62  ;;  %v6910_v7 = vunpack.i.l.bf16 %v11336_v52  ;;  %v12405_v21 = vld [vmem:[#allocation86_spill] sm:$0xff] }
 0x5a6   : > { %v11364_v58 = vpop.permute.xlu1 %7013  ;;  %v11367_v61 = vsel %vm659_vm9, %v3981_v3, %v6965_v40  ;;  %v11370_v5 = vsel %vm659_vm9, %v4339_v11, %v6966_v1  ;;  %v6995_v11 = vunpack.i.l.bf16 %v11352_v63  ;;  %v3188_v62 = vsel %vm649_vm4, %v3187_v18, %v6896_v59 }
 0x5a7   : > { %v6979_v30 = vpop.permute.xlu0 %6978  ;;  %v6300_v60 = vpack.c.bf16 %v11370_v5, %v11367_v61  ;;  %v3189_v46 = vsel %vm651_vm5, %v3188_v62, %v6901_v17  ;;  %v7016_v26 = vunpack.i.h.bf16 %v11364_v58  ;;  %v7015_v38 = vunpack.i.l.bf16 %v11364_v58 }
 0x5a8   : > { %v6981_v48 = vunpack.i.h.bf16 %v6979_v30  ;;  %v6980_v23 = vunpack.i.l.bf16 %v6979_v30  ;;  %v6895_v30 = vunpack.i.l.bf16 %v11300_v49  ;;  %v6916_v17 = vunpack.i.h.bf16 %v11327_v47 }
 0x5aa   : > { %v11387_v19 = vpop.permute.xlu1 %7023  ;;  %v4744_v12 = vsel %vm655_vm7, %v4743_v36, %v6980_v23  ;;  %v5134_v29 = vsel %vm655_vm7, %v5133_v13, %v6981_v48  ;;  %v3181_v32 = vsel %vm649_vm4, %v3180_v14, %v6895_v30  ;;  %v12402_v48 = vld [vmem:[#allocation87_spill] sm:$0xff]  ;;  %v6911_v14 = vunpack.i.h.bf16 %v11336_v52 }
 0x5ab   : > { %v6984_v44 = vpop.permute.xlu0 %6983  ;;  %v12403_v23 = vcombine.low %v12401_v10, %v12402_v48  ;;  %v7005_v36 = vunpack.i.l.bf16 %v11358_v54  ;;  %v6921_v52 = vunpack.i.h.bf16 %v11340_v4  ;;  %v6920_v30 = vunpack.i.l.bf16 %v11340_v4 }
 0x5ac   : > { %v6986_v53 = vunpack.i.h.bf16 %v6984_v44  ;;  %v6985_v25 = vunpack.i.l.bf16 %v6984_v44  ;;  %v3182_v44 = vsel %vm651_vm5, %v3181_v32, %v6900_v20  ;;  %v7006_v20 = vunpack.i.h.bf16 %v11358_v54 }
 0x5ad   : > { %v3593_v0 = vsel %vm647_vm3, %v12403_v23, %v6996_v33 }
 0x5ae   : > { %v4745_v6 = vsel %vm657_vm8, %v4744_v12, %v6985_v25  ;;  %v5135_v8 = vsel %vm657_vm8, %v5134_v29, %v6986_v53  ;;  %v12406_v53 = vcombine.low %v12404_v15, %v12405_v21  ;;  %v6905_v25 = vunpack.i.l.bf16 %v11313_v31 }
 0x5af   : > { %v6989_v35 = vpop.permute.xlu0 %6988 }
 0x5b0   : > { %v6991_v1 = vunpack.i.h.bf16 %v6989_v35  ;;  %v6990_v40 = vunpack.i.l.bf16 %v6989_v35  ;;  %v3586_v49 = vsel %vm647_vm3, %v12406_v53, %v6995_v11  ;;  %v6906_v35 = vunpack.i.h.bf16 %v11313_v31 }
 0x5b1   : > { %v11399_v3 = vpop.permute.xlu1 %7053  ;;  %v3183_v12 = vsel %vm653_vm6, %v3182_v44, %v6905_v25  ;;  %v7025_v44 = vunpack.i.l.bf16 %v11387_v19 }
 0x5b2   : > { %v11407_v45 = vsel %vm659_vm9, %v4745_v6, %v6990_v40  ;;  %v11410_v22 = vsel %vm659_vm9, %v5135_v8, %v6991_v1  ;;  %v3184_v33 = vsel %vm655_vm7, %v3183_v12, %v6910_v7  ;;  %v3190_v31 = vsel %vm653_vm6, %v3189_v46, %v6906_v35 }
 0x5b3   : > { %v6999_v63 = vpop.permute.xlu0 %6998  ;;  %v6302_v9 = vpack.c.bf16 %v11410_v22, %v11407_v45  ;;  %v3191_v18 = vsel %vm655_vm7, %v3190_v31, %v6911_v14  ;;  %v12410_v31 = vld [vmem:[#allocation48_spill] sm:$0xff]  ;;  %v12420_v45 = vld [vmem:[#allocation33_spill] sm:$0xff] }
 0x5b4   : > { %v7001_v57 = vunpack.i.h.bf16 %v6999_v63  ;;  %v7000_v42 = vunpack.i.l.bf16 %v6999_v63  ;;  %v6915_v63 = vunpack.i.l.bf16 %v11327_v47  ;;  %v3192_v58 = vsel %vm657_vm8, %v3191_v18, %v6916_v17 }
 0x5b5   : > { %v11421_v37 = vpop.permute.xlu1 %7058  ;;  %v7055_v18 = vunpack.i.l.bf16 %v11399_v3 }
 0x5b6   : > { %v3587_v43 = vsel %vm649_vm4, %v3586_v49, %v7000_v42  ;;  %v3594_v2 = vsel %vm649_vm4, %v3593_v0, %v7001_v57  ;;  %v7026_v42 = vunpack.i.h.bf16 %v11387_v19  ;;  %v3185_v48 = vsel %vm657_vm8, %v3184_v33, %v6915_v63 }
 0x5b7   : > { %v7009_v13 = vpop.permute.xlu0 %7008  ;;  %v3588_v11 = vsel %vm651_vm5, %v3587_v43, %v7005_v36  ;;  %v3595_v6 = vsel %vm651_vm5, %v3594_v2, %v7006_v20  ;;  %v3193_v0 = vsel %vm659_vm9, %v3192_v58, %v6921_v52  ;;  %v3186_v21 = vsel %vm659_vm9, %v3185_v48, %v6920_v30  ;;  %v12408_v52 = vld [vmem:[#allocation72_spill] sm:$0xff]  ;;  %v12411_v30 = vld [vmem:[#allocation83_spill] sm:$0xff] }
 0x5b8   : > { %v7011_v29 = vunpack.i.h.bf16 %v7009_v13  ;;  %v7010_v1 = vunpack.i.l.bf16 %v7009_v13  ;;  %v7061_v58 = vunpack.i.h.bf16 %v11421_v37 }
 0x5b9   : > { %v11443_v40 = vpop.permute.xlu1 %7063 }
 0x5ba   : > { %v3589_v8 = vsel %vm653_vm6, %v3588_v11, %v7010_v1  ;;  %v3596_v54 = vsel %vm653_vm6, %v3595_v6, %v7011_v29  ;;  %v12407_v6 = vld [vmem:[#allocation97_spill] sm:$0xff] }
 0x5bb   : > { %v7019_v28 = vpop.permute.xlu0 %7018  ;;  %v3597_v4 = vsel %vm655_vm7, %v3596_v54, %v7016_v26  ;;  %v3590_v7 = vsel %vm655_vm7, %v3589_v8, %v7015_v38  ;;  %v12409_v8 = vcombine.low %v12407_v6, %v12408_v52  ;;  %v12412_v26 = vcombine.low %v12410_v31, %v12411_v30  ;;  %v12417_v6 = vld [vmem:[#allocation26_spill] sm:$0xff] }
 0x5bc   : > { %v7021_v59 = vunpack.i.h.bf16 %v7019_v28  ;;  %v7020_v32 = vunpack.i.l.bf16 %v7019_v28  ;;  %v7056_v28 = vunpack.i.h.bf16 %v11399_v3 }
 0x5be   : > { %v11458_v57 = vpop.permute.xlu1 %7068  ;;  %v3598_v10 = vsel %vm657_vm8, %v3597_v4, %v7021_v59  ;;  %v3591_v47 = vsel %vm657_vm8, %v3590_v7, %v7020_v32 }
 0x5bf   : > { %v3599_v15 = vsel %vm659_vm9, %v3598_v10, %v7026_v42  ;;  %v3592_v19 = vsel %vm659_vm9, %v3591_v47, %v7025_v44  ;;  %v7060_v10 = vunpack.i.l.bf16 %v11421_v37  ;;  %v7071_v47 = vunpack.i.h.bf16 %v11458_v57 }
 0x5c0   : > { %v6299_v53 = vpack.c.bf16 %v3599_v15, %v3193_v0  ;;  %v6298_v25 = vpack.c.bf16 %v3592_v19, %v3186_v21  ;;  %v7066_v21 = vunpack.i.h.bf16 %v11443_v40  ;;  %v7065_v19 = vunpack.i.l.bf16 %v11443_v40 }
 0x5c2   : > { %v7029_v23 = vpop.permute.xlu0 %7028  ;;  %v7074_v49 = vpop.permute.xlu1 %7073  ;;  %6325 = vmatprep.subr.bf16.mxu1 %v6299_v53 }
 0x5c3   : > { %6326 = vmatpush1.bf16.msra.mxu1 %v6298_v25  ;;  %v7031_v14 = vunpack.i.h.bf16 %v7029_v23  ;;  %v7030_v20 = vunpack.i.l.bf16 %v7029_v23  ;;  %v7070_v23 = vunpack.i.l.bf16 %v11458_v57 }
 0x5c5   : > { %v4341_v54 = vsel %vm647_vm3, %v12409_v8, %v7031_v14  ;;  %v3983_v38 = vsel %vm647_vm3, %v12412_v26, %v7030_v20 }
 0x5c7   : > { %v7034_v62 = vpop.permute.xlu0 %7033  ;;  %v11472_v43 = vpop.permute.xlu1 %7088 }
 0x5c8   : > { %v7036_v36 = vunpack.i.h.bf16 %v7034_v62  ;;  %v7035_v13 = vunpack.i.l.bf16 %v7034_v62  ;;  %v7076_v62 = vunpack.i.h.bf16 %v7074_v49 }
 0x5ca   : > { %v3984_v17 = vsel %vm649_vm4, %v3983_v38, %v7035_v13  ;;  %v4342_v63 = vsel %vm649_vm4, %v4341_v54, %v7036_v36 }
 0x5cb   : > { %v7039_v2 = vpop.permute.xlu0 %7038  ;;  %v11474_v46 = vpop.permute.xlu1 %7093 }
 0x5cc   : > { %v7041_v12 = vunpack.i.h.bf16 %v7039_v2  ;;  %v7040_v29 = vunpack.i.l.bf16 %v7039_v2  ;;  %v7075_v2 = vunpack.i.l.bf16 %v7074_v49 }
 0x5ce   : > { %v3985_v32 = vsel %vm651_vm5, %v3984_v17, %v7040_v29  ;;  %v4343_v42 = vsel %vm651_vm5, %v4342_v63, %v7041_v12  ;;  %v12413_v12 = vld [vmem:[#allocation40_spill] sm:$0xff]  ;;  %v12414_v29 = vld [vmem:[#allocation49_spill] sm:$0xff]  ;;  %v7096_v63 = vunpack.i.h.bf16 %v11474_v46 }
 0x5d0   : > { %v7044_v35 = vpop.permute.xlu0 %7043  ;;  %v11476_v1 = vpop.permute.xlu1 %7103 }
 0x5d1   : > { %v7046_v33 = vunpack.i.h.bf16 %v7044_v35  ;;  %v7045_v11 = vunpack.i.l.bf16 %v7044_v35 }
 0x5d3   : > { %v3986_v48 = vsel %vm653_vm6, %v3985_v32, %v7045_v11  ;;  %v4344_v3 = vsel %vm653_vm6, %v4343_v42, %v7046_v33  ;;  %v12415_v33 = vcombine.low %v12413_v12, %v12414_v29  ;;  %v12416_v11 = vld [vmem:[#allocation46_spill] sm:$0xff] }
 0x5d4   : > { %v7049_v59 = vpop.permute.xlu0 %7048  ;;  %v7109_v7 = vpop.permute.xlu1 %7108  ;;  %v12418_v52 = vcombine.low %v12416_v11, %v12417_v6  ;;  %v12425_v11 = vcombine.low %v12361_v51, %v12360_v27 }
 0x5d5   : > { %v7051_v44 = vunpack.i.h.bf16 %v7049_v59  ;;  %v7050_v4 = vunpack.i.l.bf16 %v7049_v59  ;;  %v5137_v40 = vsel %vm647_vm3, %v12415_v33, %v7056_v28  ;;  %v7111_v42 = vunpack.i.h.bf16 %v7109_v7 }
 0x5d6   : > { %v4747_v8 = vsel %vm647_vm3, %v12418_v52, %v7055_v18  ;;  %v5138_v54 = vsel %vm649_vm4, %v5137_v40, %v7066_v21  ;;  %v7095_v18 = vunpack.i.l.bf16 %v11474_v46  ;;  %v7090_v21 = vunpack.i.l.bf16 %v11472_v43 }
 0x5d7   : > { %v3987_v0 = vsel %vm655_vm7, %v3986_v48, %v7050_v4  ;;  %v4345_v15 = vsel %vm655_vm7, %v4344_v3, %v7051_v44  ;;  %v4748_v49 = vsel %vm649_vm4, %v4747_v8, %v7065_v19  ;;  %v5139_v26 = vsel %vm651_vm5, %v5138_v54, %v7076_v62 }
 0x5d8   : > { %v7079_v53 = vpop.permute.xlu0 %7078  ;;  %v3988_v25 = vsel %vm657_vm8, %v3987_v0, %v7060_v10  ;;  %v4346_v37 = vsel %vm657_vm8, %v4345_v15, %v7061_v58  ;;  %v4749_v30 = vsel %vm651_vm5, %v4748_v49, %v7075_v2  ;;  %v7110_v44 = vunpack.i.l.bf16 %v7109_v7 }
 0x5d9   : > { %v3989_v20 = vsel %vm659_vm9, %v3988_v25, %v7070_v23  ;;  %v4347_v57 = vsel %vm659_vm9, %v4346_v37, %v7071_v47  ;;  %v7081_v36 = vunpack.i.h.bf16 %v7079_v53  ;;  %v7080_v13 = vunpack.i.l.bf16 %v7079_v53 }
 0x5da   : > { %v11504_v14 = vpop.permute.xlu1 %7118  ;;  %v6301_v35 = vpack.c.bf16 %v4347_v57, %v3989_v20  ;;  %v7091_v15 = vunpack.i.h.bf16 %v11472_v43  ;;  %v7106_v19 = vunpack.i.h.bf16 %v11476_v1  ;;  %v7105_v53 = vunpack.i.l.bf16 %v11476_v1  ;;  %v12419_v57 = vld [vmem:[#allocation57_spill] sm:$0xff] }
 0x5db   : > { %v4750_v59 = vsel %vm653_vm6, %v4749_v30, %v7080_v13  ;;  %v5140_v32 = vsel %vm653_vm6, %v5139_v26, %v7081_v36  ;;  %v12421_v22 = vcombine.low %v12419_v57, %v12420_v45  ;;  %v12422_v36 = vld [vmem:[#allocation99_spill] sm:$0xff]  ;;  %v12423_v13 = vld [vmem:[#allocation74_spill] sm:$0xff]  ;;  %v7121_v43 = vunpack.i.h.bf16 %v11504_v14 }
 0x5dc   : > { %v7084_v31 = vpop.permute.xlu0 %7083  ;;  %6327 = vmatprep.subr.bf16.mxu1 %v6301_v35  ;;  %v12424_v35 = vcombine.low %v12422_v36, %v12423_v13  ;;  %v7120_v29 = vunpack.i.l.bf16 %v11504_v14  ;;  %v12426_v52 = vcombine.low %v12359_v24, %v12358_v34 }
 0x5dd   : > { %v7086_v38 = vunpack.i.h.bf16 %v7084_v31  ;;  %v7085_v17 = vunpack.i.l.bf16 %v7084_v31  ;;  %6328 = vmatpush1.bf16.msra.mxu1 %v6300_v60 }
 0x5de   : > { %v7124_v28 = vpop.permute.xlu1 %7123  ;;  %v5495_v12 = vsel %vm647_vm3, %v12424_v35, %v7090_v21 }
 0x5df   : > { %v4751_v4 = vsel %vm655_vm7, %v4750_v59, %v7085_v17  ;;  %v5141_v58 = vsel %vm655_vm7, %v5140_v32, %v7086_v38  ;;  %v5496_v33 = vsel %vm649_vm4, %v5495_v12, %v7105_v53  ;;  %v7126_v26 = vunpack.i.h.bf16 %v7124_v28 }
 0x5e0   : > { %v7099_v10 = vpop.permute.xlu0 %7098  ;;  %v4752_v48 = vsel %vm657_vm8, %v4751_v4, %v7095_v18  ;;  %v5142_v61 = vsel %vm657_vm8, %v5141_v58, %v7096_v63  ;;  %v7125_v38 = vunpack.i.l.bf16 %v7124_v28  ;;  %v5497_v27 = vsel %vm651_vm5, %v5496_v33, %v7120_v29 }
 0x5e1   : > { %v4753_v60 = vsel %vm659_vm9, %v4752_v48, %v7110_v44  ;;  %v5143_v46 = vsel %vm659_vm9, %v5142_v61, %v7111_v42  ;;  %v7101_v25 = vunpack.i.h.bf16 %v7099_v10  ;;  %v7100_v37 = vunpack.i.l.bf16 %v7099_v10 }
 0x5e2   : > { %v7134_v5 = vpop.permute.xlu1 %7133  ;;  %v6303_v3 = vpack.c.bf16 %v5143_v46, %v4753_v60 }
 0x5e3   : > { %v5488_v6 = vsel %vm647_vm3, %v12425_v11, %v7100_v37  ;;  %v5894_v8 = vsel %vm647_vm3, %v12426_v52, %v7101_v25  ;;  %v7136_v18 = vunpack.i.h.bf16 %v7134_v5  ;;  %v7135_v59 = vunpack.i.l.bf16 %v7134_v5 }
 0x5e4   : > { %v7114_v47 = vpop.permute.xlu0 %7113  ;;  %6329 = vmatprep.subr.bf16.mxu1 %v6303_v3 }
 0x5e5   : > { %6330 = vmatpush1.bf16.msra.mxu1 %v6302_v9  ;;  %v7116_v2 = vunpack.i.h.bf16 %v7114_v47  ;;  %v7115_v20 = vunpack.i.l.bf16 %v7114_v47  ;;  %v5901_v9 = vsel %vm647_vm3, %v12421_v22, %v7091_v15 }
 0x5e6   : > { %v11536_v7 = vpop.permute.xlu1 %7143  ;;  %v5902_v40 = vsel %vm649_vm4, %v5901_v9, %v7106_v19 }
 0x5e7   : > { %v5489_v54 = vsel %vm649_vm4, %v5488_v6, %v7115_v20  ;;  %v5895_v14 = vsel %vm649_vm4, %v5894_v8, %v7116_v2  ;;  %v5903_v51 = vsel %vm651_vm5, %v5902_v40, %v7121_v43  ;;  %v7146_v5 = vunpack.i.h.bf16 %v11536_v7 }
 0x5e8   : > { %v5490_v34 = vsel %vm651_vm5, %v5489_v54, %v7125_v38  ;;  %v5896_v24 = vsel %vm651_vm5, %v5895_v14, %v7126_v26  ;;  %v7145_v46 = vunpack.i.l.bf16 %v11536_v7 }
 0x5e9   : > { %v7129_v23 = vpop.permute.xlu0 %7128  ;;  %v5491_v3 = vsel %vm653_vm6, %v5490_v34, %v7135_v59  ;;  %v5897_v47 = vsel %vm653_vm6, %v5896_v24, %v7136_v18  ;;  %v6291_v7 = vsel %vm647_vm3, %v6220_v39, %v7146_v5 }
 0x5ea   : > { %v7154_v0 = vpop.permute.xlu1 %7153  ;;  %v7131_v31 = vunpack.i.h.bf16 %v7129_v23  ;;  %v7130_v30 = vunpack.i.l.bf16 %v7129_v23  ;;  %v6284_v9 = vsel %vm647_vm3, %v6084_v50, %v7145_v46 }
 0x5eb   : > { %v7156_v4 = vunpack.i.h.bf16 %v7154_v0  ;;  %v7155_v58 = vunpack.i.l.bf16 %v7154_v0 }
 0x5ec   : > { %v5498_v42 = vsel %vm653_vm6, %v5497_v27, %v7130_v30  ;;  %v5904_v44 = vsel %vm653_vm6, %v5903_v51, %v7131_v31 }
 0x5ed   : > { %v7139_v62 = vpop.permute.xlu0 %7138 }
 0x5ee   : > { %v7164_v1 = vpop.permute.xlu1 %7163  ;;  %v7141_v17 = vunpack.i.h.bf16 %v7139_v62  ;;  %v7140_v63 = vunpack.i.l.bf16 %v7139_v62 }
 0x5ef   : > { %v7166_v23 = vunpack.i.h.bf16 %v7164_v1  ;;  %v7165_v15 = vunpack.i.l.bf16 %v7164_v1 }
 0x5f0   : > { %v5499_v10 = vsel %vm655_vm7, %v5498_v42, %v7140_v63  ;;  %v5905_v48 = vsel %vm655_vm7, %v5904_v44, %v7141_v17 }
 0x5f1   : > { %v7149_v49 = vpop.permute.xlu0 %7148  ;;  %v5500_v0 = vsel %vm657_vm8, %v5499_v10, %v7155_v58  ;;  %v5906_v19 = vsel %vm657_vm8, %v5905_v48, %v7156_v4  ;;  %v6308_v4 = vld [vmem:[%s11664_s4] sm:$0x3] }
 0x5f2   : > { %v7174_v28 = vpop.permute.xlu1 %7173  ;;  %v7151_v61 = vunpack.i.h.bf16 %v7149_v49  ;;  %v7150_v60 = vunpack.i.l.bf16 %v7149_v49 }
 0x5f3   : > { %v7176_v36 = vunpack.i.h.bf16 %v7174_v28  ;;  %v7175_v13 = vunpack.i.l.bf16 %v7174_v28 }
 0x5f4   : > { %v5492_v37 = vsel %vm655_vm7, %v5491_v3, %v7150_v60  ;;  %v5898_v62 = vsel %vm655_vm7, %v5897_v47, %v7151_v61 }
 0x5f5   : > { %v7159_v32 = vpop.permute.xlu0 %7158  ;;  %v5493_v43 = vsel %vm657_vm8, %v5492_v37, %v7165_v15  ;;  %v5899_v41 = vsel %vm657_vm8, %v5898_v62, %v7166_v23 }
 0x5f6   : > { %v7161_v2 = vunpack.i.h.bf16 %v7159_v32  ;;  %v7160_v20 = vunpack.i.l.bf16 %v7159_v32  ;;  %v7184_v57 = vpop.permute.xlu1 %7183 }
 0x5f7   : > { %v7186_v33 = vunpack.i.h.bf16 %v7184_v57  ;;  %v7185_v40 = vunpack.i.l.bf16 %v7184_v57 }
 0x5f8   : > { %v6285_v29 = vsel %vm649_vm4, %v6284_v9, %v7160_v20  ;;  %v6292_v1 = vsel %vm649_vm4, %v6291_v7, %v7161_v2 }
 0x5f9   : > { %v7169_v21 = vpop.permute.xlu0 %7168  ;;  %v6286_v6 = vsel %vm651_vm5, %v6285_v29, %v7175_v13  ;;  %v6293_v52 = vsel %vm651_vm5, %v6292_v1, %v7176_v36 }
 0x5fa   : > { %v7171_v53 = vunpack.i.h.bf16 %v7169_v21  ;;  %v7170_v25 = vunpack.i.l.bf16 %v7169_v21  ;;  %v7194_v8 = vpop.permute.xlu1 %7193  ;;  %v6287_v14 = vsel %vm653_vm6, %v6286_v6, %v7185_v40  ;;  %v6294_v31 = vsel %vm653_vm6, %v6293_v52, %v7186_v33 }
 0x5fb   : > { %v7196_v38 = vunpack.i.h.bf16 %v7194_v8  ;;  %v7195_v17 = vunpack.i.l.bf16 %v7194_v8 }
 0x5fc   : > { %v5501_v45 = vsel %vm659_vm9, %v5500_v0, %v7170_v25  ;;  %v5907_v22 = vsel %vm659_vm9, %v5906_v19, %v7171_v53 }
 0x5fd   : > { %v7179_v35 = vpop.permute.xlu0 %7178  ;;  %v6305_v12 = vpack.c.bf16 %v5907_v22, %v5501_v45 }
 0x5fe   : > { %v7181_v55 = vunpack.i.h.bf16 %v7179_v35  ;;  %v7180_v39 = vunpack.i.l.bf16 %v7179_v35 }
 0x5ff   : > { %6331 = vmatprep.subr.bf16.mxu1 %v6305_v12 }
 0x600   : > { %v5494_v16 = vsel %vm659_vm9, %v5493_v43, %v7180_v39  ;;  %v5900_v56 = vsel %vm659_vm9, %v5899_v41, %v7181_v55 }
 0x601   : > { %v7189_v50 = vpop.permute.xlu0 %7188  ;;  %v6304_v11 = vpack.c.bf16 %v5900_v56, %v5494_v16 }
 0x602   : > { %v7191_v49 = vunpack.i.h.bf16 %v7189_v50  ;;  %v7190_v54 = vunpack.i.l.bf16 %v7189_v50 }
 0x603   : > { %6332 = vmatpush1.bf16.msra.mxu1 %v6304_v11 }
 0x604   : > { %v6288_v30 = vsel %vm655_vm7, %v6287_v14, %v7190_v54  ;;  %v6295_v26 = vsel %vm655_vm7, %v6294_v31, %v7191_v49 }
 0x605   : > { %v7199_v63 = vpop.permute.xlu0 %7198  ;;  %v6296_v18 = vsel %vm657_vm8, %v6295_v26, %v7196_v38  ;;  %v6289_v59 = vsel %vm657_vm8, %v6288_v30, %v7195_v17 }
 0x606   : > { %v7201_v27 = vunpack.i.h.bf16 %v7199_v63  ;;  %v7200_v51 = vunpack.i.l.bf16 %v7199_v63 }
 0x608   : > { %v6297_v34 = vsel %vm659_vm9, %v6296_v18, %v7201_v27  ;;  %v6290_v24 = vsel %vm659_vm9, %v6289_v59, %v7200_v51 }
 0x609   : > { %v6307_v32 = vpack.c.bf16 %v6297_v34, %v6297_v34  ;;  %v6306_v42 = vpack.c.bf16 %v6290_v24, %v6290_v24 }
 0x60b   : > { %6494 = vmatprep.subr.msk.bf16.mxu1 %vm2524_vm10, %v6307_v32  ;;  %v6320_v44 = vsel %vm2524_vm10, %v6306_v42, 0  ;;  %v6313_v58 = vpop.permute.xlu1 %6312 }
 0x60c   : > { %6334 = vmatpush1.bf16.msra.mxu1 %v6320_v44 }
 0x60f   : > { %6495 = vmatmul.mubr.msk.bf16.vlgmr.msra.gmra.mrb[0].mxu1 %vm6315_vm13, %v6308_v4 }
 0x6e2   : > { %v6359_v28 = vpop.f32.mrb[0].mxu1 }
 0x6e3   : > { %v6360_v10 = vadd.f32 %v6359_v28, %v6313_v58  ;;  %v6361_v48 = vpop.f32.mrb[1].mxu1 }
 0x6e4   : > { %v6362_v61 = vadd.f32 %v6361_v48, %v6313_v58  ;;  %v6363_v60 = vpop.f32.mrb[2].mxu1 }
 0x6e5   : > { %v6364_v5 = vpop.f32.mrb[3].mxu1 }
 0x6e6   : > { %v6368_v46 = vcombine.low %v6360_v10, %v6362_v61 }
 0x6e8   : > { %6370 = vst [vmem:[%s309_s13] sm:$0xff] %v6368_v46 }
 0x6e9   : > { %7348 = shalt.err (!%p7345_p11)
}
 0x6ea   : > { %s7349_s17 = scalar_lea.hbm %s11616_s18, 128  ;;  %s7353_s7 = scalar_lea.hbm %s11666_s6, 256 }
 0x6eb   : > { %p7350_p3 = scmp.ne.s32.totalorder %s11616_s18, %s7349_s17  ;;  %p7354_p2 = scmp.lt.u32.totalorder %s11616_s18, %s11666_s6 }
 0x6ec   : > { %p7355_p4 = scmp.lt.u32.totalorder %s7353_s7, %s7349_s17  ;;  %p7357_p13 = scmp.lt.u32.totalorder %s7349_s17, %s11616_s18 }
 0x6ed   : > { %p7351_p8 = pnand %p7350_p3, %p12427_p1 }
 0x6ee   : > { %p7356_p6 = por %p7355_p4, %p7354_p2 }
 0x6ef   : > { %p7352_p0 = pneg %p7351_p8 }
 0x6f0   : > { %p7358_p12 = por %p7357_p13, %p7356_p6 }
 0x6f2   : > { %p7359_p10 = pnand %p7358_p12, %p7352_p0 }
 0x6f4   : > { %7362 = shalt.err (!%p7359_p10)
}
 0x6f5   : > { %6508 = dma.vmem_to_hbm [thread:$0]  (%p12427_p1), %s11618_s14, 128, %s11616_s18, %s6372_s12  }
 0x6f6 PF: > { %s6398_s16 = sand.u32 1, %s7393_s21   ;;  %p12428_p5 = scmp.ne.s32.totalorder %s11906_s10, 0 }
 0x6f7   : > { %p12429_p7 = scmp.ge.s32.totalorder %s7405_s24, 2  ;;  %s6399_s13 = scalar_lea.sflag [#allocation6], %s6398_s16 }
 0x6f9   : > { %p6518_p9 = pnand %p12429_p7, %p12428_p5 }
 0x6fb   : > { %7388 = dma.done.wait (!%p6518_p9), %s6399_s13, 128  }
 0x6fc   : > { %7390 = vsyncadd (!%p6518_p9), %s6399_s13, 4294967168  ;;  %p22_p11 = scmp.ge.s32.totalorder %s7486_s27, 4   ;;  %s12430_s21 = smov %s7397_s22 }
 0x6fd   : > { %s12431_s22 = smov %s7401_s23  ;;  %s12432_s23 = smov %s7498_s30 }
 0x6fe   : > { %s12433_s24 = smov %s7486_s27  ;;  %24 = sbr.rel (!%p22_p11) target bundleno = 9 (0x9), region = 103 }
 0x705   :  { %6404 = vsyncpa [#allocation5], 1 }
 0x706   :  { %6406 = vsyncpa [#allocation5 + $0x1], 1 }
 0x707   :  { %6407 = vsyncpa [#allocation8], 1 }
 0x708   :  { %6409 = vsyncpa [#allocation8 + $0x1], 1 }
 0x709   :  { %6410 = vsyncpa [#allocation6], 1 }
 0x70a   :  { %6412 = vsyncpa [#allocation6 + $0x1], 1 }

</bundles_post_ra>
